<compile_context>
chip_gen: v7x
topology: tpu7x:2x2x1
jax: 0.10.0
libtpu: 0.0.40
codegen_flags: <defaults>
</compile_context>

<pallas_src>
import math

import jax
import jax.numpy as jnp
from jax.experimental import pallas as pl
from jax.experimental.pallas import tpu as pltpu  # noqa: F401  (TPU backend)

# ----------------------------- configuration --------------------------------
B = 2            # batch
S = 8            # sequence length (== max_seq_len)
D = 32           # hidden size
H = 4            # BERT attention heads
DH = D // H      # per-head dim
FF = 64          # BERT intermediate size
N_LAYERS = 2     # BERT encoder layers
VOCAB = 50
TYPE_VOCAB = 2
MAX_POS = S
NUM_LABELS = 3
GP_HEADS = NUM_LABELS - 1     # GlobalPointer heads (num_labels - 1)
GP_HEAD_SIZE = 16             # GlobalPointer head size
INIT_RANGE = 0.02             # initializer_range
LN_EPS = 1e-12

EMB_ROWS = VOCAB + MAX_POS + TYPE_VOCAB       # 60 rows in combined table

F32 = jnp.float32
BF16 = jnp.bfloat16

# --------- small-vector slab layout (one DMA for all tiny params) -----------
VEC_W = 128
ROW_EMB_LN = 0                                  # rows 0 (gamma), 1 (beta)
ROW_LAYER0 = 2                                  # 8 rows per layer:
ROWS_PER_LAYER = 8                              #   bqkv, bo, b1, b2, ln1_g,
ROW_GPB = ROW_LAYER0 + ROWS_PER_LAYER * N_LAYERS  # ln1_b, ln2_g, ln2_b
ROW_COS = ROW_GPB + 1                           # rows [ROW_COS, ROW_COS+S):
VEC_ROWS = ROW_COS + S                          #   cos cols [0:hs), sin [hs:2hs)

WBIG_COLS = 3 * D + D + FF                      # [Wqkv | Wo | W1] = 192


# ------------------------------ fused Pallas kernel ---------------------------
def _bertgp_fused_kernel(
    ids_ref,        # (B*S, 3) int32  [word_id, pos_id, type_id]
    mask_col_ref,   # (B, S)   f32    attention mask (1=keep, 0=pad)
    mask_row_ref,   # (B*S, 1) f32    same mask, row layout
    emb_tab_ref,    # (EMB_ROWS, D) f32  [word_emb; pos_emb; type_emb]
    vecs_ref,       # (VEC_ROWS, 128) f32  all small params (see layout above)
    wbig_ref,       # (L, D, 192) bf16  [Wqkv | Wo | W1]
    w2_ref,         # (L, FF, D)  bf16
    gpw_ref,        # (D, 128)    bf16  [Wgp | rotate_pairs(Wgp)]
    o_ref,          # (S, B*GP_HEADS*S) f32  lane-dense logit slab
):
    def layer_norm(x, g_row, b_row):
        mu = jnp.mean(x, axis=-1, keepdims=True)
        xc = x - mu
        var = jnp.mean(xc * xc, axis=-1, keepdims=True)
        return xc * jax.lax.rsqrt(var + LN_EPS) * g_row + b_row

    dot_tt = (((1,), (1,)), ((), ()))          # contract last dims (q @ k^T)

    # ---- embeddings: multi-hot gather-as-matmul (exact, f32) ---------------
    ids = ids_ref[...]                                          # (B*S, 3)
    tab_iota = jax.lax.broadcasted_iota(jnp.int32, (B * S, EMB_ROWS), 1)
    multihot = ((ids[:, 0:1] == tab_iota).astype(F32)
                + (ids[:, 1:2] == (tab_iota - VOCAB)).astype(F32)
                + (ids[:, 2:3] == (tab_iota - VOCAB - MAX_POS)).astype(F32))
    x = jnp.dot(multihot, emb_tab_ref[...],
                preferred_element_type=F32)                     # (B*S, D)

    # embedding LayerNorm (dropout p=0.1 is identity at inference)
    h = layer_norm(x, vecs_ref[0:1, 0:D], vecs_ref[1:2, 0:D])   # (B*S, D) f32

    mask_col = mask_col_ref[...]                                # (B, S)
    mask_row = mask_row_ref[...]                                # (B*S, 1)
    # hoisted per-batch key-mask bias (reused across all layers)
    m_adds = [(mask_col[b:b + 1, :] - 1.0) * 10000.0 for b in range(B)]

    inv_sqrt_dh = 1.0 / math.sqrt(DH)
    for l in range(N_LAYERS):
        base = ROW_LAYER0 + ROWS_PER_LAYER * l
        wbig_l = wbig_ref[l]                                    # (D, 192) bf16
        wqkv = wbig_l[:, 0:3 * D]
        wo = wbig_l[:, 3 * D:4 * D]
        w1 = wbig_l[:, 4 * D:4 * D + FF]
        w2 = w2_ref[l]                                          # (FF, D) bf16
        bqkv = vecs_ref[base + 0:base + 1, 0:3 * D]
        bo = vecs_ref[base + 1:base + 2, 0:D]
        b1 = vecs_ref[base + 2:base + 3, 0:FF]
        b2 = vecs_ref[base + 3:base + 4, 0:D]
        ln1_g = vecs_ref[base + 4:base + 5, 0:D]
        ln1_b = vecs_ref[base + 5:base + 6, 0:D]
        ln2_g = vecs_ref[base + 6:base + 7, 0:D]
        ln2_b = vecs_ref[base + 7:base + 8, 0:D]

        # ---- fused QKV projection: one (B*S, 3D) matmul (bf16 operands) ----
        qkv = jnp.dot(h.astype(BF16), wqkv,
                      preferred_element_type=F32) + bqkv        # (B*S, 3D) f32
        q_all = qkv[:, 0:D]
        k_all = qkv[:, D:2 * D]
        v_all = qkv[:, 2 * D:3 * D]

        # ---- self-attention (unrolled over batch & heads, all in VMEM) -----
        ctx_batches = []
        for b in range(B):
            r0 = b * S
            m_add = m_adds[b]
            ctx_heads = []
            for hh in range(H):
                c0 = hh * DH
                q = q_all[r0:r0 + S, c0:c0 + DH].astype(BF16)
                k = k_all[r0:r0 + S, c0:c0 + DH].astype(BF16)
                v = v_all[r0:r0 + S, c0:c0 + DH].astype(BF16)
                s = jax.lax.dot_general(q, k, dot_tt,
                                        preferred_element_type=F32)  # (S, S)
                s = s * inv_sqrt_dh + m_add
                s_max = jnp.max(s, axis=-1, keepdims=True)
                e = jnp.exp(s - s_max)
                p = e * pl.reciprocal(jnp.sum(e, axis=-1, keepdims=True),
                                      approx=True)
                ctx = jnp.dot(p.astype(BF16), v,
                              preferred_element_type=F32)        # (S, DH) f32
                ctx_heads.append(ctx)
            ctx_batches.append(jnp.concatenate(ctx_heads, axis=1))  # (S, D)
        ctx_all = jnp.concatenate(ctx_batches, axis=0)           # (B*S, D)

        # ---- single fused output projection + residual + LN ---------------
        attn_out = jnp.dot(ctx_all.astype(BF16), wo,
                           preferred_element_type=F32) + bo
        h = layer_norm(h + attn_out, ln1_g, ln1_b)

        # ---- FFN: matmul + bias + GELU + matmul + bias + residual + LN ----
        inter = jnp.dot(h.astype(BF16), w1, preferred_element_type=F32) + b1
        # TODO(synk): HF BERT default is exact erf-GELU; tanh approx used here.
        inter = jax.nn.gelu(inter, approximate=True)
        ffn = jnp.dot(inter.astype(BF16), w2, preferred_element_type=F32) + b2
        h = layer_norm(h + ffn, ln2_g, ln2_b)

    # ---- GlobalPointer head ------------------------------------------------
    # One lane-dense (B*S, 128) projection: columns [0:64) are the original
    # [qw|kw] per-head blocks, [64:128) are their RoPE pair-rotated copies
    # (rotation folded into the weight at pack time).
    hs = GP_HEAD_SIZE
    rot_off = GP_HEADS * 2 * hs
    gp = jnp.dot(h.astype(BF16), gpw_ref[...],
                 preferred_element_type=F32) + vecs_ref[ROW_GPB:ROW_GPB + 1,
                                                        0:2 * rot_off]
    cos = vecs_ref[ROW_COS:ROW_COS + S, 0:hs]                    # (S, hs)
    sin = vecs_ref[ROW_COS:ROW_COS + S, hs:2 * hs]
    inv_sqrt_hs = 1.0 / math.sqrt(hs)

    rows_i = jax.lax.broadcasted_iota(jnp.int32, (S, S), 0)
    cols_i = jax.lax.broadcasted_iota(jnp.int32, (S, S), 1)
    tri_pen = (rows_i > cols_i).astype(F32) * 1e12               # strict lower-tri

    blocks = []
    for b in range(B):
        r0 = b * S
        mcol = mask_col[b:b + 1, :]            # (1, S)
        mrow = mask_row[r0:r0 + S, :]          # (S, 1)
        pad_pen = (1.0 - mcol) * 1e12 + (1.0 - mrow) * 1e12 + tri_pen
        for gh in range(GP_HEADS):
            f0 = gh * 2 * hs
            qw = gp[r0:r0 + S, f0:f0 + hs]
            kw = gp[r0:r0 + S, f0 + hs:f0 + 2 * hs]
            qw2 = gp[r0:r0 + S, rot_off + f0:rot_off + f0 + hs]
            kw2 = gp[r0:r0 + S, rot_off + f0 + hs:rot_off + f0 + 2 * hs]
            q = qw * cos + qw2 * sin           # RoPE
            k = kw * cos + kw2 * sin
            logits = jax.lax.dot_general(q.astype(BF16), k.astype(BF16),
                                         dot_tt, preferred_element_type=F32)
            blocks.append((logits - pad_pen) * inv_sqrt_hs)      # (S, S)
    # single lane-dense store: columns [(b*GP_HEADS+gh)*S : +S) = head (b, gh)
    o_ref[...] = jnp.concatenate(blocks, axis=1)                 # (S, B*GH*S)


# ------------------------------ wrappers --------------------------------------
def _full_spec(a):
    nd = a.ndim
    return pl.BlockSpec(a.shape, lambda: (0,) * nd)


def pack_params(params):
    """One-time packing of the PyTorch-style params into kernel-friendly arrays."""
    layers = params["layers"]
    hs = GP_HEAD_SIZE

    # combined embedding table (stays f32 => exact lookup via multi-hot matmul)
    emb_tab = jnp.concatenate(
        [params["word_emb"], params["pos_emb"], params["type_emb"]], axis=0)

    # big per-layer weights, bf16, one slab: [Wqkv | Wo | W1]
    wbig = jnp.stack(
        [jnp.concatenate([l["wq"], l["wk"], l["wv"], l["wo"], l["w1"]], axis=1)
         for l in layers], axis=0).astype(BF16)                 # (L, D, 192)
    w2s = jnp.stack([l["w2"] for l in layers], axis=0).astype(BF16)  # (L, FF, D)

    # GlobalPointer: fold the RoPE pair-rotation into the projection
    # (rotate_pairs is linear in the feature axis) so the kernel gets qw/kw
    # and their rotated copies from one lane-dense (D, 128) matmul.
    def rot_feat(w):
        shp = w.shape
        w4 = w.reshape(shp[:-1] + (GP_HEADS, 2, hs))
        w4r = jnp.stack([-w4[..., 1::2], w4[..., ::2]], axis=-1).reshape(w4.shape)
        return w4r.reshape(shp)

    gpw, gpb = params["gp_w"], params["gp_b"]
    gpw_aug = jnp.concatenate([gpw, rot_feat(gpw)], axis=1).astype(BF16)  # (D,128)
    gpb_aug = jnp.concatenate([gpb, rot_feat(gpb)], axis=0)              # (128,)

    # RoPE sinusoidal tables
    pos = jnp.arange(S, dtype=F32)
    idx = jnp.arange(hs // 2, dtype=F32)
    freq = jnp.power(10000.0, -2.0 * idx / hs)
    ang = pos[:, None] * freq[None, :]                                   # (S, hs/2)
    cos_pos = jnp.repeat(jnp.cos(ang), 2, axis=-1)                       # (S, hs)
    sin_pos = jnp.repeat(jnp.sin(ang), 2, axis=-1)

    # small-vector slab: every tiny parameter in one (VEC_ROWS, 128) f32 ref
    def row(v):
        v = jnp.asarray(v, F32).reshape(-1)
        return jnp.pad(v, (0, VEC_W - v.shape[0]))[None, :]

    rows = [row(params["emb_ln_g"]), row(params["emb_ln_b"])]
    for l in layers:
        rows += [row(jnp.concatenate([l["bq"], l["bk"], l["bv"]])),
                 row(l["bo"]), row(l["b1"]), row(l["b2"]),
                 row(l["ln1_g"]), row(l["ln1_b"]),
                 row(l["ln2_g"]), row(l["ln2_b"])]
    rows.append(row(gpb_aug))
    rows.append(jnp.concatenate(
        [cos_pos, sin_pos, jnp.zeros((S, VEC_W - 2 * hs), F32)], axis=1))
    vecs = jnp.concatenate(rows, axis=0)
    assert vecs.shape == (VEC_ROWS, VEC_W)

    return dict(emb_tab=emb_tab, vecs=vecs, wbig=wbig, w2s=w2s, gpw=gpw_aug)


def bert_gp_forward(fp, input_ids, attention_masks, token_type_ids,
                    position_ids, label_ids=None):
    # Only tiny int/mask glue stays in XLA; embeddings + encoder + GP head run
    # in one fused Pallas kernel.
    ids3 = jnp.stack([input_ids, position_ids, token_type_ids],
                     axis=-1).reshape(B * S, 3).astype(jnp.int32)
    mask_col = attention_masks.astype(F32)                     # (B, S)
    mask_row = mask_col.reshape(B * S, 1)                      # (B*S, 1)

    args = (ids3, mask_col, mask_row, fp["emb_tab"], fp["vecs"],
            fp["wbig"], fp["w2s"], fp["gpw"])

    slab = pl.pallas_call(
        _bertgp_fused_kernel,
        out_shape=jax.ShapeDtypeStruct((S, B * GP_HEADS * S), F32),
        in_specs=[_full_spec(a) for a in args],
        out_specs=pl.BlockSpec((S, B * GP_HEADS * S), lambda: (0, 0)),
    )(*args)

    # lane-dense slab -> (B, GP_HEADS, S, S); layout plumbing only
    token_logits = slab.reshape(S, B, GP_HEADS, S).transpose(1, 2, 0, 3)
    # TODO(synk): label_ids / GlobalPointerLoss training path not implemented
    # (forward is exercised with label_ids=None, matching the inference branch).
    return token_logits


# ------------------------------ parameter init --------------------------------
def init_params(key):
    keys = list(jax.random.split(key, 8 * N_LAYERS + 8))
    it = iter(keys)

    def nrm(shape):
        return jax.random.normal(next(it), shape, F32) * INIT_RANGE

    params = {
        "word_emb": nrm((VOCAB, D)).at[0].set(0.0),   # padding_idx=0 zeroed
        "pos_emb": nrm((MAX_POS, D)),
        "type_emb": nrm((TYPE_VOCAB, D)),
        "emb_ln_g": jnp.ones((D,), F32),
        "emb_ln_b": jnp.zeros((D,), F32),
        "gp_w": nrm((D, GP_HEADS * 2 * GP_HEAD_SIZE)),
        "gp_b": jnp.zeros((GP_HEADS * 2 * GP_HEAD_SIZE,), F32),
        "layers": [],
    }
    for _ in range(N_LAYERS):
        params["layers"].append({
            "wq": nrm((D, D)), "bq": jnp.zeros((D,), F32),
            "wk": nrm((D, D)), "bk": jnp.zeros((D,), F32),
            "wv": nrm((D, D)), "bv": jnp.zeros((D,), F32),
            "wo": nrm((D, D)), "bo": jnp.zeros((D,), F32),
            "ln1_g": jnp.ones((D,), F32), "ln1_b": jnp.zeros((D,), F32),
            "w1": nrm((D, FF)), "b1": jnp.zeros((FF,), F32),
            "w2": nrm((FF, D)), "b2": jnp.zeros((D,), F32),
            "ln2_g": jnp.ones((D,), F32), "ln2_b": jnp.zeros((D,), F32),
        })
    return params


# ----------------------------------- main -------------------------------------
if __name__ == "__main__":
    key = jax.random.PRNGKey(0)
    pkey, dkey = jax.random.split(key)
    params = init_params(pkey)
    packed = pack_params(params)                      # pack once, offline

    input_ids = jax.random.randint(dkey, (B, S), 1, VOCAB, dtype=jnp.int32)
    attention_masks = jnp.array(
        [[1] * S, [1] * (S - 2) + [0, 0]], dtype=jnp.int32)   # second seq padded
    token_type_ids = jnp.zeros((B, S), jnp.int32)
    position_ids = jnp.broadcast_to(jnp.arange(S, dtype=jnp.int32), (B, S))

    forward = jax.jit(bert_gp_forward)
    logits = forward(packed, input_ids, attention_masks,
                     token_type_ids, position_ids)
    jax.block_until_ready(logits)
    assert logits.shape == (B, GP_HEADS, S, S)
    print("KERNEL_OK")
</pallas_src>

<mosaic_0001>
module attributes {stable_mosaic.version = 11 : i64} {
  func.func @_bertgp_fused_kernel(%arg0: memref<16x3xi32, #tpu.memory_space<vmem>>, %arg1: memref<2x8xf32, #tpu.memory_space<vmem>>, %arg2: memref<16x1xf32, #tpu.memory_space<vmem>>, %arg3: memref<60x32xf32, #tpu.memory_space<vmem>>, %arg4: memref<27x128xf32, #tpu.memory_space<vmem>>, %arg5: memref<2x32x192xbf16, #tpu.memory_space<vmem>>, %arg6: memref<2x64x32xbf16, #tpu.memory_space<vmem>>, %arg7: memref<32x128xbf16, #tpu.memory_space<vmem>>, %arg8: memref<8x32xf32, #tpu.memory_space<vmem>>) attributes {dimension_semantics = [], scalar_prefetch = 0 : i64, scratch_operands = 0 : i64, tpu.core_type = #tpu.core_type<tc>} {
    %c0 = arith.constant 0 : index
    %c0_0 = arith.constant 0 : index
    %0 = vector.load %arg0[%c0, %c0_0] : memref<16x3xi32, #tpu.memory_space<vmem>>, vector<16x3xi32>
    %1 = tpu.iota {dimensions = array<i32: 1>} : vector<16x60xi32>
    %2 = vector.extract_strided_slice %0 {offsets = [0, 0], sizes = [16, 1], strides = [1, 1]} : vector<16x3xi32> to vector<16x1xi32>
    %3 = vector.broadcast %2 : vector<16x1xi32> to vector<16x60xi32>
    %4 = arith.cmpi eq, %3, %1 : vector<16x60xi32>
    %5 = arith.extui %4 : vector<16x60xi1> to vector<16x60xi32>
    %6 = arith.sitofp %5 : vector<16x60xi32> to vector<16x60xf32>
    %7 = vector.extract_strided_slice %0 {offsets = [0, 1], sizes = [16, 1], strides = [1, 1]} : vector<16x3xi32> to vector<16x1xi32>
    %c50_i32 = arith.constant 50 : i32
    %8 = vector.broadcast %c50_i32 : i32 to vector<16x60xi32>
    %9 = arith.subi %1, %8 : vector<16x60xi32>
    %10 = vector.broadcast %7 : vector<16x1xi32> to vector<16x60xi32>
    %11 = arith.cmpi eq, %10, %9 : vector<16x60xi32>
    %12 = arith.extui %11 : vector<16x60xi1> to vector<16x60xi32>
    %13 = arith.sitofp %12 : vector<16x60xi32> to vector<16x60xf32>
    %14 = arith.addf %6, %13 : vector<16x60xf32>
    %15 = vector.extract_strided_slice %0 {offsets = [0, 2], sizes = [16, 1], strides = [1, 1]} : vector<16x3xi32> to vector<16x1xi32>
    %c50_i32_1 = arith.constant 50 : i32
    %16 = vector.broadcast %c50_i32_1 : i32 to vector<16x60xi32>
    %17 = arith.subi %1, %16 : vector<16x60xi32>
    %c8_i32 = arith.constant 8 : i32
    %18 = vector.broadcast %c8_i32 : i32 to vector<16x60xi32>
    %19 = arith.subi %17, %18 : vector<16x60xi32>
    %20 = vector.broadcast %15 : vector<16x1xi32> to vector<16x60xi32>
    %21 = arith.cmpi eq, %20, %19 : vector<16x60xi32>
    %22 = arith.extui %21 : vector<16x60xi1> to vector<16x60xi32>
    %23 = arith.sitofp %22 : vector<16x60xi32> to vector<16x60xf32>
    %24 = arith.addf %14, %23 : vector<16x60xf32>
    %c0_2 = arith.constant 0 : index
    %c0_3 = arith.constant 0 : index
    %25 = vector.load %arg3[%c0_2, %c0_3] : memref<60x32xf32, #tpu.memory_space<vmem>>, vector<60x32xf32>
    %cst = arith.constant dense<0.000000e+00> : vector<16x32xf32>
    %26 = tpu.matmul %24, %25, %cst {dimension_numbers = #tpu.dot_dimension_numbers<[1], [0], [0], [1], [0, 0, 1, 1], [], []>} : vector<16x60xf32>, vector<60x32xf32>, vector<16x32xf32> -> vector<16x32xf32>
    %c0_4 = arith.constant 0 : index
    %c0_5 = arith.constant 0 : index
    %27 = vector.load %arg4[%c0_4, %c0_5] : memref<27x128xf32, #tpu.memory_space<vmem>>, vector<1x32xf32>
    %c1 = arith.constant 1 : index
    %c0_6 = arith.constant 0 : index
    %28 = vector.load %arg4[%c1, %c0_6] : memref<27x128xf32, #tpu.memory_space<vmem>>, vector<1x32xf32>
    %cst_7 = arith.constant dense<0.000000e+00> : vector<16xf32>
    %29 = vector.multi_reduction <add>, %26, %cst_7 [1] : vector<16x32xf32> to vector<16xf32>
    %30 = vector.shape_cast %29 : vector<16xf32> to vector<16x1xf32>
    %cst_8 = arith.constant 3.200000e+01 : f32
    %31 = vector.broadcast %cst_8 : f32 to vector<16x1xf32>
    %32 = arith.divf %30, %31 : vector<16x1xf32>
    %33 = vector.broadcast %32 : vector<16x1xf32> to vector<16x32xf32>
    %34 = arith.subf %26, %33 : vector<16x32xf32>
    %35 = arith.mulf %34, %34 : vector<16x32xf32>
    %cst_9 = arith.constant dense<0.000000e+00> : vector<16xf32>
    %36 = vector.multi_reduction <add>, %35, %cst_9 [1] : vector<16x32xf32> to vector<16xf32>
    %37 = vector.shape_cast %36 : vector<16xf32> to vector<16x1xf32>
    %cst_10 = arith.constant 3.200000e+01 : f32
    %38 = vector.broadcast %cst_10 : f32 to vector<16x1xf32>
    %39 = arith.divf %37, %38 : vector<16x1xf32>
    %cst_11 = arith.constant 9.99999996E-13 : f32
    %40 = vector.broadcast %cst_11 : f32 to vector<16x1xf32>
    %41 = arith.addf %39, %40 : vector<16x1xf32>
    %42 = math.rsqrt %41 : vector<16x1xf32>
    %43 = vector.broadcast %42 : vector<16x1xf32> to vector<16x32xf32>
    %44 = arith.mulf %34, %43 : vector<16x32xf32>
    %45 = vector.broadcast %27 : vector<1x32xf32> to vector<16x32xf32>
    %46 = arith.mulf %44, %45 : vector<16x32xf32>
    %47 = vector.broadcast %28 : vector<1x32xf32> to vector<16x32xf32>
    %48 = arith.addf %46, %47 : vector<16x32xf32>
    %c0_12 = arith.constant 0 : index
    %c0_13 = arith.constant 0 : index
    %49 = vector.load %arg1[%c0_12, %c0_13] : memref<2x8xf32, #tpu.memory_space<vmem>>, vector<2x8xf32>
    %c0_14 = arith.constant 0 : index
    %c0_15 = arith.constant 0 : index
    %50 = vector.load %arg2[%c0_14, %c0_15] : memref<16x1xf32, #tpu.memory_space<vmem>>, vector<16x1xf32>
    %51 = vector.extract_strided_slice %49 {offsets = [0, 0], sizes = [1, 8], strides = [1, 1]} : vector<2x8xf32> to vector<1x8xf32>
    %cst_16 = arith.constant 1.000000e+00 : f32
    %52 = vector.broadcast %cst_16 : f32 to vector<1x8xf32>
    %53 = arith.subf %51, %52 : vector<1x8xf32>
    %cst_17 = arith.constant 1.000000e+04 : f32
    %54 = vector.broadcast %cst_17 : f32 to vector<1x8xf32>
    %55 = arith.mulf %53, %54 : vector<1x8xf32>
    %56 = vector.extract_strided_slice %49 {offsets = [1, 0], sizes = [1, 8], strides = [1, 1]} : vector<2x8xf32> to vector<1x8xf32>
    %cst_18 = arith.constant 1.000000e+00 : f32
    %57 = vector.broadcast %cst_18 : f32 to vector<1x8xf32>
    %58 = arith.subf %56, %57 : vector<1x8xf32>
    %cst_19 = arith.constant 1.000000e+04 : f32
    %59 = vector.broadcast %cst_19 : f32 to vector<1x8xf32>
    %60 = arith.mulf %58, %59 : vector<1x8xf32>
    %c0_20 = arith.constant 0 : index
    %c0_21 = arith.constant 0 : index
    %c0_22 = arith.constant 0 : index
    %61 = vector.load %arg5[%c0_20, %c0_21, %c0_22] : memref<2x32x192xbf16, #tpu.memory_space<vmem>>, vector<1x32x192xbf16>
    %62 = vector.shape_cast %61 : vector<1x32x192xbf16> to vector<32x192xbf16>
    %63 = vector.extract_strided_slice %62 {offsets = [0, 0], sizes = [32, 96], strides = [1, 1]} : vector<32x192xbf16> to vector<32x96xbf16>
    %64 = vector.extract_strided_slice %62 {offsets = [0, 96], sizes = [32, 32], strides = [1, 1]} : vector<32x192xbf16> to vector<32x32xbf16>
    %65 = vector.extract_strided_slice %62 {offsets = [0, 128], sizes = [32, 64], strides = [1, 1]} : vector<32x192xbf16> to vector<32x64xbf16>
    %c0_23 = arith.constant 0 : index
    %c0_24 = arith.constant 0 : index
    %c0_25 = arith.constant 0 : index
    %66 = vector.load %arg6[%c0_23, %c0_24, %c0_25] : memref<2x64x32xbf16, #tpu.memory_space<vmem>>, vector<1x64x32xbf16>
    %67 = vector.shape_cast %66 : vector<1x64x32xbf16> to vector<64x32xbf16>
    %c2 = arith.constant 2 : index
    %c0_26 = arith.constant 0 : index
    %68 = vector.load %arg4[%c2, %c0_26] : memref<27x128xf32, #tpu.memory_space<vmem>>, vector<1x96xf32>
    %c3 = arith.constant 3 : index
    %c0_27 = arith.constant 0 : index
    %69 = vector.load %arg4[%c3, %c0_27] : memref<27x128xf32, #tpu.memory_space<vmem>>, vector<1x32xf32>
    %c4 = arith.constant 4 : index
    %c0_28 = arith.constant 0 : index
    %70 = vector.load %arg4[%c4, %c0_28] : memref<27x128xf32, #tpu.memory_space<vmem>>, vector<1x64xf32>
    %c5 = arith.constant 5 : index
    %c0_29 = arith.constant 0 : index
    %71 = vector.load %arg4[%c5, %c0_29] : memref<27x128xf32, #tpu.memory_space<vmem>>, vector<1x32xf32>
    %c6 = arith.constant 6 : index
    %c0_30 = arith.constant 0 : index
    %72 = vector.load %arg4[%c6, %c0_30] : memref<27x128xf32, #tpu.memory_space<vmem>>, vector<1x32xf32>
    %c7 = arith.constant 7 : index
    %c0_31 = arith.constant 0 : index
    %73 = vector.load %arg4[%c7, %c0_31] : memref<27x128xf32, #tpu.memory_space<vmem>>, vector<1x32xf32>
    %c8 = arith.constant 8 : index
    %c0_32 = arith.constant 0 : index
    %74 = vector.load %arg4[%c8, %c0_32] : memref<27x128xf32, #tpu.memory_space<vmem>>, vector<1x32xf32>
    %c9 = arith.constant 9 : index
    %c0_33 = arith.constant 0 : index
    %75 = vector.load %arg4[%c9, %c0_33] : memref<27x128xf32, #tpu.memory_space<vmem>>, vector<1x32xf32>
    %76 = arith.truncf %48 : vector<16x32xf32> to vector<16x32xbf16>
    %cst_34 = arith.constant dense<0.000000e+00> : vector<16x96xf32>
    %77 = tpu.matmul %76, %63, %cst_34 {dimension_numbers = #tpu.dot_dimension_numbers<[1], [0], [0], [1], [0, 0, 1, 1], [], []>} : vector<16x32xbf16>, vector<32x96xbf16>, vector<16x96xf32> -> vector<16x96xf32>
    %78 = vector.broadcast %68 : vector<1x96xf32> to vector<16x96xf32>
    %79 = arith.addf %77, %78 : vector<16x96xf32>
    %80 = vector.extract_strided_slice %79 {offsets = [0, 0], sizes = [16, 32], strides = [1, 1]} : vector<16x96xf32> to vector<16x32xf32>
    %81 = vector.extract_strided_slice %79 {offsets = [0, 32], sizes = [16, 32], strides = [1, 1]} : vector<16x96xf32> to vector<16x32xf32>
    %82 = vector.extract_strided_slice %79 {offsets = [0, 64], sizes = [16, 32], strides = [1, 1]} : vector<16x96xf32> to vector<16x32xf32>
    %83 = vector.extract_strided_slice %80 {offsets = [0, 0], sizes = [8, 8], strides = [1, 1]} : vector<16x32xf32> to vector<8x8xf32>
    %84 = arith.truncf %83 : vector<8x8xf32> to vector<8x8xbf16>
    %85 = vector.extract_strided_slice %81 {offsets = [0, 0], sizes = [8, 8], strides = [1, 1]} : vector<16x32xf32> to vector<8x8xf32>
    %86 = arith.truncf %85 : vector<8x8xf32> to vector<8x8xbf16>
    %87 = vector.extract_strided_slice %82 {offsets = [0, 0], sizes = [8, 8], strides = [1, 1]} : vector<16x32xf32> to vector<8x8xf32>
    %88 = arith.truncf %87 : vector<8x8xf32> to vector<8x8xbf16>
    %cst_35 = arith.constant dense<0.000000e+00> : vector<8x8xf32>
    %89 = tpu.matmul %84, %86, %cst_35 {dimension_numbers = #tpu.dot_dimension_numbers<[1], [1], [0], [0], [0, 0, 1, 0], [], []>} : vector<8x8xbf16>, vector<8x8xbf16>, vector<8x8xf32> -> vector<8x8xf32>
    %cst_36 = arith.constant 0.353553385 : f32
    %90 = vector.broadcast %cst_36 : f32 to vector<8x8xf32>
    %91 = arith.mulf %89, %90 : vector<8x8xf32>
    %92 = vector.broadcast %55 : vector<1x8xf32> to vector<8x8xf32>
    %93 = arith.addf %91, %92 : vector<8x8xf32>
    %cst_37 = arith.constant dense<0xFF800000> : vector<8xf32>
    %94 = vector.multi_reduction <maximumf>, %93, %cst_37 [1] : vector<8x8xf32> to vector<8xf32>
    %95 = vector.shape_cast %94 : vector<8xf32> to vector<8x1xf32>
    %96 = vector.broadcast %95 : vector<8x1xf32> to vector<8x8xf32>
    %97 = arith.subf %93, %96 : vector<8x8xf32>
    %98 = math.exp %97 : vector<8x8xf32>
    %cst_38 = arith.constant dense<0.000000e+00> : vector<8xf32>
    %99 = vector.multi_reduction <add>, %98, %cst_38 [1] : vector<8x8xf32> to vector<8xf32>
    %100 = vector.shape_cast %99 : vector<8xf32> to vector<8x1xf32>
    %101 = tpu.reciprocal %100 {approx = true} : vector<8x1xf32> -> vector<8x1xf32>
    %102 = vector.broadcast %101 : vector<8x1xf32> to vector<8x8xf32>
    %103 = arith.mulf %98, %102 : vector<8x8xf32>
    %104 = arith.truncf %103 : vector<8x8xf32> to vector<8x8xbf16>
    %cst_39 = arith.constant dense<0.000000e+00> : vector<8x8xf32>
    %105 = tpu.matmul %104, %88, %cst_39 {dimension_numbers = #tpu.dot_dimension_numbers<[1], [0], [0], [1], [0, 0, 1, 1], [], []>} : vector<8x8xbf16>, vector<8x8xbf16>, vector<8x8xf32> -> vector<8x8xf32>
    %106 = vector.extract_strided_slice %80 {offsets = [0, 8], sizes = [8, 8], strides = [1, 1]} : vector<16x32xf32> to vector<8x8xf32>
    %107 = arith.truncf %106 : vector<8x8xf32> to vector<8x8xbf16>
    %108 = vector.extract_strided_slice %81 {offsets = [0, 8], sizes = [8, 8], strides = [1, 1]} : vector<16x32xf32> to vector<8x8xf32>
    %109 = arith.truncf %108 : vector<8x8xf32> to vector<8x8xbf16>
    %110 = vector.extract_strided_slice %82 {offsets = [0, 8], sizes = [8, 8], strides = [1, 1]} : vector<16x32xf32> to vector<8x8xf32>
    %111 = arith.truncf %110 : vector<8x8xf32> to vector<8x8xbf16>
    %cst_40 = arith.constant dense<0.000000e+00> : vector<8x8xf32>
    %112 = tpu.matmul %107, %109, %cst_40 {dimension_numbers = #tpu.dot_dimension_numbers<[1], [1], [0], [0], [0, 0, 1, 0], [], []>} : vector<8x8xbf16>, vector<8x8xbf16>, vector<8x8xf32> -> vector<8x8xf32>
    %cst_41 = arith.constant 0.353553385 : f32
    %113 = vector.broadcast %cst_41 : f32 to vector<8x8xf32>
    %114 = arith.mulf %112, %113 : vector<8x8xf32>
    %115 = vector.broadcast %55 : vector<1x8xf32> to vector<8x8xf32>
    %116 = arith.addf %114, %115 : vector<8x8xf32>
    %cst_42 = arith.constant dense<0xFF800000> : vector<8xf32>
    %117 = vector.multi_reduction <maximumf>, %116, %cst_42 [1] : vector<8x8xf32> to vector<8xf32>
    %118 = vector.shape_cast %117 : vector<8xf32> to vector<8x1xf32>
    %119 = vector.broadcast %118 : vector<8x1xf32> to vector<8x8xf32>
    %120 = arith.subf %116, %119 : vector<8x8xf32>
    %121 = math.exp %120 : vector<8x8xf32>
    %cst_43 = arith.constant dense<0.000000e+00> : vector<8xf32>
    %122 = vector.multi_reduction <add>, %121, %cst_43 [1] : vector<8x8xf32> to vector<8xf32>
    %123 = vector.shape_cast %122 : vector<8xf32> to vector<8x1xf32>
    %124 = tpu.reciprocal %123 {approx = true} : vector<8x1xf32> -> vector<8x1xf32>
    %125 = vector.broadcast %124 : vector<8x1xf32> to vector<8x8xf32>
    %126 = arith.mulf %121, %125 : vector<8x8xf32>
    %127 = arith.truncf %126 : vector<8x8xf32> to vector<8x8xbf16>
    %cst_44 = arith.constant dense<0.000000e+00> : vector<8x8xf32>
    %128 = tpu.matmul %127, %111, %cst_44 {dimension_numbers = #tpu.dot_dimension_numbers<[1], [0], [0], [1], [0, 0, 1, 1], [], []>} : vector<8x8xbf16>, vector<8x8xbf16>, vector<8x8xf32> -> vector<8x8xf32>
    %129 = vector.extract_strided_slice %80 {offsets = [0, 16], sizes = [8, 8], strides = [1, 1]} : vector<16x32xf32> to vector<8x8xf32>
    %130 = arith.truncf %129 : vector<8x8xf32> to vector<8x8xbf16>
    %131 = vector.extract_strided_slice %81 {offsets = [0, 16], sizes = [8, 8], strides = [1, 1]} : vector<16x32xf32> to vector<8x8xf32>
    %132 = arith.truncf %131 : vector<8x8xf32> to vector<8x8xbf16>
    %133 = vector.extract_strided_slice %82 {offsets = [0, 16], sizes = [8, 8], strides = [1, 1]} : vector<16x32xf32> to vector<8x8xf32>
    %134 = arith.truncf %133 : vector<8x8xf32> to vector<8x8xbf16>
    %cst_45 = arith.constant dense<0.000000e+00> : vector<8x8xf32>
    %135 = tpu.matmul %130, %132, %cst_45 {dimension_numbers = #tpu.dot_dimension_numbers<[1], [1], [0], [0], [0, 0, 1, 0], [], []>} : vector<8x8xbf16>, vector<8x8xbf16>, vector<8x8xf32> -> vector<8x8xf32>
    %cst_46 = arith.constant 0.353553385 : f32
    %136 = vector.broadcast %cst_46 : f32 to vector<8x8xf32>
    %137 = arith.mulf %135, %136 : vector<8x8xf32>
    %138 = vector.broadcast %55 : vector<1x8xf32> to vector<8x8xf32>
    %139 = arith.addf %137, %138 : vector<8x8xf32>
    %cst_47 = arith.constant dense<0xFF800000> : vector<8xf32>
    %140 = vector.multi_reduction <maximumf>, %139, %cst_47 [1] : vector<8x8xf32> to vector<8xf32>
    %141 = vector.shape_cast %140 : vector<8xf32> to vector<8x1xf32>
    %142 = vector.broadcast %141 : vector<8x1xf32> to vector<8x8xf32>
    %143 = arith.subf %139, %142 : vector<8x8xf32>
    %144 = math.exp %143 : vector<8x8xf32>
    %cst_48 = arith.constant dense<0.000000e+00> : vector<8xf32>
    %145 = vector.multi_reduction <add>, %144, %cst_48 [1] : vector<8x8xf32> to vector<8xf32>
    %146 = vector.shape_cast %145 : vector<8xf32> to vector<8x1xf32>
    %147 = tpu.reciprocal %146 {approx = true} : vector<8x1xf32> -> vector<8x1xf32>
    %148 = vector.broadcast %147 : vector<8x1xf32> to vector<8x8xf32>
    %149 = arith.mulf %144, %148 : vector<8x8xf32>
    %150 = arith.truncf %149 : vector<8x8xf32> to vector<8x8xbf16>
    %cst_49 = arith.constant dense<0.000000e+00> : vector<8x8xf32>
    %151 = tpu.matmul %150, %134, %cst_49 {dimension_numbers = #tpu.dot_dimension_numbers<[1], [0], [0], [1], [0, 0, 1, 1], [], []>} : vector<8x8xbf16>, vector<8x8xbf16>, vector<8x8xf32> -> vector<8x8xf32>
    %152 = vector.extract_strided_slice %80 {offsets = [0, 24], sizes = [8, 8], strides = [1, 1]} : vector<16x32xf32> to vector<8x8xf32>
    %153 = arith.truncf %152 : vector<8x8xf32> to vector<8x8xbf16>
    %154 = vector.extract_strided_slice %81 {offsets = [0, 24], sizes = [8, 8], strides = [1, 1]} : vector<16x32xf32> to vector<8x8xf32>
    %155 = arith.truncf %154 : vector<8x8xf32> to vector<8x8xbf16>
    %156 = vector.extract_strided_slice %82 {offsets = [0, 24], sizes = [8, 8], strides = [1, 1]} : vector<16x32xf32> to vector<8x8xf32>
    %157 = arith.truncf %156 : vector<8x8xf32> to vector<8x8xbf16>
    %cst_50 = arith.constant dense<0.000000e+00> : vector<8x8xf32>
    %158 = tpu.matmul %153, %155, %cst_50 {dimension_numbers = #tpu.dot_dimension_numbers<[1], [1], [0], [0], [0, 0, 1, 0], [], []>} : vector<8x8xbf16>, vector<8x8xbf16>, vector<8x8xf32> -> vector<8x8xf32>
    %cst_51 = arith.constant 0.353553385 : f32
    %159 = vector.broadcast %cst_51 : f32 to vector<8x8xf32>
    %160 = arith.mulf %158, %159 : vector<8x8xf32>
    %161 = vector.broadcast %55 : vector<1x8xf32> to vector<8x8xf32>
    %162 = arith.addf %160, %161 : vector<8x8xf32>
    %cst_52 = arith.constant dense<0xFF800000> : vector<8xf32>
    %163 = vector.multi_reduction <maximumf>, %162, %cst_52 [1] : vector<8x8xf32> to vector<8xf32>
    %164 = vector.shape_cast %163 : vector<8xf32> to vector<8x1xf32>
    %165 = vector.broadcast %164 : vector<8x1xf32> to vector<8x8xf32>
    %166 = arith.subf %162, %165 : vector<8x8xf32>
    %167 = math.exp %166 : vector<8x8xf32>
    %cst_53 = arith.constant dense<0.000000e+00> : vector<8xf32>
    %168 = vector.multi_reduction <add>, %167, %cst_53 [1] : vector<8x8xf32> to vector<8xf32>
    %169 = vector.shape_cast %168 : vector<8xf32> to vector<8x1xf32>
    %170 = tpu.reciprocal %169 {approx = true} : vector<8x1xf32> -> vector<8x1xf32>
    %171 = vector.broadcast %170 : vector<8x1xf32> to vector<8x8xf32>
    %172 = arith.mulf %167, %171 : vector<8x8xf32>
    %173 = arith.truncf %172 : vector<8x8xf32> to vector<8x8xbf16>
    %cst_54 = arith.constant dense<0.000000e+00> : vector<8x8xf32>
    %174 = tpu.matmul %173, %157, %cst_54 {dimension_numbers = #tpu.dot_dimension_numbers<[1], [0], [0], [1], [0, 0, 1, 1], [], []>} : vector<8x8xbf16>, vector<8x8xbf16>, vector<8x8xf32> -> vector<8x8xf32>
    %175 = tpu.concatenate %105, %128, %151, %174 in 1 : vector<8x8xf32>, vector<8x8xf32>, vector<8x8xf32>, vector<8x8xf32> -> vector<8x32xf32>
    %176 = vector.extract_strided_slice %80 {offsets = [8, 0], sizes = [8, 8], strides = [1, 1]} : vector<16x32xf32> to vector<8x8xf32>
    %177 = arith.truncf %176 : vector<8x8xf32> to vector<8x8xbf16>
    %178 = vector.extract_strided_slice %81 {offsets = [8, 0], sizes = [8, 8], strides = [1, 1]} : vector<16x32xf32> to vector<8x8xf32>
    %179 = arith.truncf %178 : vector<8x8xf32> to vector<8x8xbf16>
    %180 = vector.extract_strided_slice %82 {offsets = [8, 0], sizes = [8, 8], strides = [1, 1]} : vector<16x32xf32> to vector<8x8xf32>
    %181 = arith.truncf %180 : vector<8x8xf32> to vector<8x8xbf16>
    %cst_55 = arith.constant dense<0.000000e+00> : vector<8x8xf32>
    %182 = tpu.matmul %177, %179, %cst_55 {dimension_numbers = #tpu.dot_dimension_numbers<[1], [1], [0], [0], [0, 0, 1, 0], [], []>} : vector<8x8xbf16>, vector<8x8xbf16>, vector<8x8xf32> -> vector<8x8xf32>
    %cst_56 = arith.constant 0.353553385 : f32
    %183 = vector.broadcast %cst_56 : f32 to vector<8x8xf32>
    %184 = arith.mulf %182, %183 : vector<8x8xf32>
    %185 = vector.broadcast %60 : vector<1x8xf32> to vector<8x8xf32>
    %186 = arith.addf %184, %185 : vector<8x8xf32>
    %cst_57 = arith.constant dense<0xFF800000> : vector<8xf32>
    %187 = vector.multi_reduction <maximumf>, %186, %cst_57 [1] : vector<8x8xf32> to vector<8xf32>
    %188 = vector.shape_cast %187 : vector<8xf32> to vector<8x1xf32>
    %189 = vector.broadcast %188 : vector<8x1xf32> to vector<8x8xf32>
    %190 = arith.subf %186, %189 : vector<8x8xf32>
    %191 = math.exp %190 : vector<8x8xf32>
    %cst_58 = arith.constant dense<0.000000e+00> : vector<8xf32>
    %192 = vector.multi_reduction <add>, %191, %cst_58 [1] : vector<8x8xf32> to vector<8xf32>
    %193 = vector.shape_cast %192 : vector<8xf32> to vector<8x1xf32>
    %194 = tpu.reciprocal %193 {approx = true} : vector<8x1xf32> -> vector<8x1xf32>
    %195 = vector.broadcast %194 : vector<8x1xf32> to vector<8x8xf32>
    %196 = arith.mulf %191, %195 : vector<8x8xf32>
    %197 = arith.truncf %196 : vector<8x8xf32> to vector<8x8xbf16>
    %cst_59 = arith.constant dense<0.000000e+00> : vector<8x8xf32>
    %198 = tpu.matmul %197, %181, %cst_59 {dimension_numbers = #tpu.dot_dimension_numbers<[1], [0], [0], [1], [0, 0, 1, 1], [], []>} : vector<8x8xbf16>, vector<8x8xbf16>, vector<8x8xf32> -> vector<8x8xf32>
    %199 = vector.extract_strided_slice %80 {offsets = [8, 8], sizes = [8, 8], strides = [1, 1]} : vector<16x32xf32> to vector<8x8xf32>
    %200 = arith.truncf %199 : vector<8x8xf32> to vector<8x8xbf16>
    %201 = vector.extract_strided_slice %81 {offsets = [8, 8], sizes = [8, 8], strides = [1, 1]} : vector<16x32xf32> to vector<8x8xf32>
    %202 = arith.truncf %201 : vector<8x8xf32> to vector<8x8xbf16>
    %203 = vector.extract_strided_slice %82 {offsets = [8, 8], sizes = [8, 8], strides = [1, 1]} : vector<16x32xf32> to vector<8x8xf32>
    %204 = arith.truncf %203 : vector<8x8xf32> to vector<8x8xbf16>
    %cst_60 = arith.constant dense<0.000000e+00> : vector<8x8xf32>
    %205 = tpu.matmul %200, %202, %cst_60 {dimension_numbers = #tpu.dot_dimension_numbers<[1], [1], [0], [0], [0, 0, 1, 0], [], []>} : vector<8x8xbf16>, vector<8x8xbf16>, vector<8x8xf32> -> vector<8x8xf32>
    %cst_61 = arith.constant 0.353553385 : f32
    %206 = vector.broadcast %cst_61 : f32 to vector<8x8xf32>
    %207 = arith.mulf %205, %206 : vector<8x8xf32>
    %208 = vector.broadcast %60 : vector<1x8xf32> to vector<8x8xf32>
    %209 = arith.addf %207, %208 : vector<8x8xf32>
    %cst_62 = arith.constant dense<0xFF800000> : vector<8xf32>
    %210 = vector.multi_reduction <maximumf>, %209, %cst_62 [1] : vector<8x8xf32> to vector<8xf32>
    %211 = vector.shape_cast %210 : vector<8xf32> to vector<8x1xf32>
    %212 = vector.broadcast %211 : vector<8x1xf32> to vector<8x8xf32>
    %213 = arith.subf %209, %212 : vector<8x8xf32>
    %214 = math.exp %213 : vector<8x8xf32>
    %cst_63 = arith.constant dense<0.000000e+00> : vector<8xf32>
    %215 = vector.multi_reduction <add>, %214, %cst_63 [1] : vector<8x8xf32> to vector<8xf32>
    %216 = vector.shape_cast %215 : vector<8xf32> to vector<8x1xf32>
    %217 = tpu.reciprocal %216 {approx = true} : vector<8x1xf32> -> vector<8x1xf32>
    %218 = vector.broadcast %217 : vector<8x1xf32> to vector<8x8xf32>
    %219 = arith.mulf %214, %218 : vector<8x8xf32>
    %220 = arith.truncf %219 : vector<8x8xf32> to vector<8x8xbf16>
    %cst_64 = arith.constant dense<0.000000e+00> : vector<8x8xf32>
    %221 = tpu.matmul %220, %204, %cst_64 {dimension_numbers = #tpu.dot_dimension_numbers<[1], [0], [0], [1], [0, 0, 1, 1], [], []>} : vector<8x8xbf16>, vector<8x8xbf16>, vector<8x8xf32> -> vector<8x8xf32>
    %222 = vector.extract_strided_slice %80 {offsets = [8, 16], sizes = [8, 8], strides = [1, 1]} : vector<16x32xf32> to vector<8x8xf32>
    %223 = arith.truncf %222 : vector<8x8xf32> to vector<8x8xbf16>
    %224 = vector.extract_strided_slice %81 {offsets = [8, 16], sizes = [8, 8], strides = [1, 1]} : vector<16x32xf32> to vector<8x8xf32>
    %225 = arith.truncf %224 : vector<8x8xf32> to vector<8x8xbf16>
    %226 = vector.extract_strided_slice %82 {offsets = [8, 16], sizes = [8, 8], strides = [1, 1]} : vector<16x32xf32> to vector<8x8xf32>
    %227 = arith.truncf %226 : vector<8x8xf32> to vector<8x8xbf16>
    %cst_65 = arith.constant dense<0.000000e+00> : vector<8x8xf32>
    %228 = tpu.matmul %223, %225, %cst_65 {dimension_numbers = #tpu.dot_dimension_numbers<[1], [1], [0], [0], [0, 0, 1, 0], [], []>} : vector<8x8xbf16>, vector<8x8xbf16>, vector<8x8xf32> -> vector<8x8xf32>
    %cst_66 = arith.constant 0.353553385 : f32
    %229 = vector.broadcast %cst_66 : f32 to vector<8x8xf32>
    %230 = arith.mulf %228, %229 : vector<8x8xf32>
    %231 = vector.broadcast %60 : vector<1x8xf32> to vector<8x8xf32>
    %232 = arith.addf %230, %231 : vector<8x8xf32>
    %cst_67 = arith.constant dense<0xFF800000> : vector<8xf32>
    %233 = vector.multi_reduction <maximumf>, %232, %cst_67 [1] : vector<8x8xf32> to vector<8xf32>
    %234 = vector.shape_cast %233 : vector<8xf32> to vector<8x1xf32>
    %235 = vector.broadcast %234 : vector<8x1xf32> to vector<8x8xf32>
    %236 = arith.subf %232, %235 : vector<8x8xf32>
    %237 = math.exp %236 : vector<8x8xf32>
    %cst_68 = arith.constant dense<0.000000e+00> : vector<8xf32>
    %238 = vector.multi_reduction <add>, %237, %cst_68 [1] : vector<8x8xf32> to vector<8xf32>
    %239 = vector.shape_cast %238 : vector<8xf32> to vector<8x1xf32>
    %240 = tpu.reciprocal %239 {approx = true} : vector<8x1xf32> -> vector<8x1xf32>
    %241 = vector.broadcast %240 : vector<8x1xf32> to vector<8x8xf32>
    %242 = arith.mulf %237, %241 : vector<8x8xf32>
    %243 = arith.truncf %242 : vector<8x8xf32> to vector<8x8xbf16>
    %cst_69 = arith.constant dense<0.000000e+00> : vector<8x8xf32>
    %244 = tpu.matmul %243, %227, %cst_69 {dimension_numbers = #tpu.dot_dimension_numbers<[1], [0], [0], [1], [0, 0, 1, 1], [], []>} : vector<8x8xbf16>, vector<8x8xbf16>, vector<8x8xf32> -> vector<8x8xf32>
    %245 = vector.extract_strided_slice %80 {offsets = [8, 24], sizes = [8, 8], strides = [1, 1]} : vector<16x32xf32> to vector<8x8xf32>
    %246 = arith.truncf %245 : vector<8x8xf32> to vector<8x8xbf16>
    %247 = vector.extract_strided_slice %81 {offsets = [8, 24], sizes = [8, 8], strides = [1, 1]} : vector<16x32xf32> to vector<8x8xf32>
    %248 = arith.truncf %247 : vector<8x8xf32> to vector<8x8xbf16>
    %249 = vector.extract_strided_slice %82 {offsets = [8, 24], sizes = [8, 8], strides = [1, 1]} : vector<16x32xf32> to vector<8x8xf32>
    %250 = arith.truncf %249 : vector<8x8xf32> to vector<8x8xbf16>
    %cst_70 = arith.constant dense<0.000000e+00> : vector<8x8xf32>
    %251 = tpu.matmul %246, %248, %cst_70 {dimension_numbers = #tpu.dot_dimension_numbers<[1], [1], [0], [0], [0, 0, 1, 0], [], []>} : vector<8x8xbf16>, vector<8x8xbf16>, vector<8x8xf32> -> vector<8x8xf32>
    %cst_71 = arith.constant 0.353553385 : f32
    %252 = vector.broadcast %cst_71 : f32 to vector<8x8xf32>
    %253 = arith.mulf %251, %252 : vector<8x8xf32>
    %254 = vector.broadcast %60 : vector<1x8xf32> to vector<8x8xf32>
    %255 = arith.addf %253, %254 : vector<8x8xf32>
    %cst_72 = arith.constant dense<0xFF800000> : vector<8xf32>
    %256 = vector.multi_reduction <maximumf>, %255, %cst_72 [1] : vector<8x8xf32> to vector<8xf32>
    %257 = vector.shape_cast %256 : vector<8xf32> to vector<8x1xf32>
    %258 = vector.broadcast %257 : vector<8x1xf32> to vector<8x8xf32>
    %259 = arith.subf %255, %258 : vector<8x8xf32>
    %260 = math.exp %259 : vector<8x8xf32>
    %cst_73 = arith.constant dense<0.000000e+00> : vector<8xf32>
    %261 = vector.multi_reduction <add>, %260, %cst_73 [1] : vector<8x8xf32> to vector<8xf32>
    %262 = vector.shape_cast %261 : vector<8xf32> to vector<8x1xf32>
    %263 = tpu.reciprocal %262 {approx = true} : vector<8x1xf32> -> vector<8x1xf32>
    %264 = vector.broadcast %263 : vector<8x1xf32> to vector<8x8xf32>
    %265 = arith.mulf %260, %264 : vector<8x8xf32>
    %266 = arith.truncf %265 : vector<8x8xf32> to vector<8x8xbf16>
    %cst_74 = arith.constant dense<0.000000e+00> : vector<8x8xf32>
    %267 = tpu.matmul %266, %250, %cst_74 {dimension_numbers = #tpu.dot_dimension_numbers<[1], [0], [0], [1], [0, 0, 1, 1], [], []>} : vector<8x8xbf16>, vector<8x8xbf16>, vector<8x8xf32> -> vector<8x8xf32>
    %268 = tpu.concatenate %198, %221, %244, %267 in 1 : vector<8x8xf32>, vector<8x8xf32>, vector<8x8xf32>, vector<8x8xf32> -> vector<8x32xf32>
    %269 = tpu.concatenate %175, %268 in 0 : vector<8x32xf32>, vector<8x32xf32> -> vector<16x32xf32>
    %270 = arith.truncf %269 : vector<16x32xf32> to vector<16x32xbf16>
    %cst_75 = arith.constant dense<0.000000e+00> : vector<16x32xf32>
    %271 = tpu.matmul %270, %64, %cst_75 {dimension_numbers = #tpu.dot_dimension_numbers<[1], [0], [0], [1], [0, 0, 1, 1], [], []>} : vector<16x32xbf16>, vector<32x32xbf16>, vector<16x32xf32> -> vector<16x32xf32>
    %272 = vector.broadcast %69 : vector<1x32xf32> to vector<16x32xf32>
    %273 = arith.addf %271, %272 : vector<16x32xf32>
    %274 = arith.addf %48, %273 : vector<16x32xf32>
    %cst_76 = arith.constant dense<0.000000e+00> : vector<16xf32>
    %275 = vector.multi_reduction <add>, %274, %cst_76 [1] : vector<16x32xf32> to vector<16xf32>
    %276 = vector.shape_cast %275 : vector<16xf32> to vector<16x1xf32>
    %cst_77 = arith.constant 3.200000e+01 : f32
    %277 = vector.broadcast %cst_77 : f32 to vector<16x1xf32>
    %278 = arith.divf %276, %277 : vector<16x1xf32>
    %279 = vector.broadcast %278 : vector<16x1xf32> to vector<16x32xf32>
    %280 = arith.subf %274, %279 : vector<16x32xf32>
    %281 = arith.mulf %280, %280 : vector<16x32xf32>
    %cst_78 = arith.constant dense<0.000000e+00> : vector<16xf32>
    %282 = vector.multi_reduction <add>, %281, %cst_78 [1] : vector<16x32xf32> to vector<16xf32>
    %283 = vector.shape_cast %282 : vector<16xf32> to vector<16x1xf32>
    %cst_79 = arith.constant 3.200000e+01 : f32
    %284 = vector.broadcast %cst_79 : f32 to vector<16x1xf32>
    %285 = arith.divf %283, %284 : vector<16x1xf32>
    %cst_80 = arith.constant 9.99999996E-13 : f32
    %286 = vector.broadcast %cst_80 : f32 to vector<16x1xf32>
    %287 = arith.addf %285, %286 : vector<16x1xf32>
    %288 = math.rsqrt %287 : vector<16x1xf32>
    %289 = vector.broadcast %288 : vector<16x1xf32> to vector<16x32xf32>
    %290 = arith.mulf %280, %289 : vector<16x32xf32>
    %291 = vector.broadcast %72 : vector<1x32xf32> to vector<16x32xf32>
    %292 = arith.mulf %290, %291 : vector<16x32xf32>
    %293 = vector.broadcast %73 : vector<1x32xf32> to vector<16x32xf32>
    %294 = arith.addf %292, %293 : vector<16x32xf32>
    %295 = arith.truncf %294 : vector<16x32xf32> to vector<16x32xbf16>
    %cst_81 = arith.constant dense<0.000000e+00> : vector<16x64xf32>
    %296 = tpu.matmul %295, %65, %cst_81 {dimension_numbers = #tpu.dot_dimension_numbers<[1], [0], [0], [1], [0, 0, 1, 1], [], []>} : vector<16x32xbf16>, vector<32x64xbf16>, vector<16x64xf32> -> vector<16x64xf32>
    %297 = vector.broadcast %70 : vector<1x64xf32> to vector<16x64xf32>
    %298 = arith.addf %296, %297 : vector<16x64xf32>
    %299 = arith.mulf %298, %298 : vector<16x64xf32>
    %300 = arith.mulf %298, %299 : vector<16x64xf32>
    %cst_82 = arith.constant 4.471500e-02 : f32
    %301 = vector.broadcast %cst_82 : f32 to vector<16x64xf32>
    %302 = arith.mulf %301, %300 : vector<16x64xf32>
    %303 = arith.addf %298, %302 : vector<16x64xf32>
    %cst_83 = arith.constant 0.797884583 : f32
    %304 = vector.broadcast %cst_83 : f32 to vector<16x64xf32>
    %305 = arith.mulf %304, %303 : vector<16x64xf32>
    %306 = math.tanh %305 : vector<16x64xf32>
    %cst_84 = arith.constant 1.000000e+00 : f32
    %307 = vector.broadcast %cst_84 : f32 to vector<16x64xf32>
    %308 = arith.addf %307, %306 : vector<16x64xf32>
    %cst_85 = arith.constant 5.000000e-01 : f32
    %309 = vector.broadcast %cst_85 : f32 to vector<16x64xf32>
    %310 = arith.mulf %309, %308 : vector<16x64xf32>
    %311 = arith.mulf %298, %310 : vector<16x64xf32>
    %312 = arith.truncf %311 : vector<16x64xf32> to vector<16x64xbf16>
    %cst_86 = arith.constant dense<0.000000e+00> : vector<16x32xf32>
    %313 = tpu.matmul %312, %67, %cst_86 {dimension_numbers = #tpu.dot_dimension_numbers<[1], [0], [0], [1], [0, 0, 1, 1], [], []>} : vector<16x64xbf16>, vector<64x32xbf16>, vector<16x32xf32> -> vector<16x32xf32>
    %314 = vector.broadcast %71 : vector<1x32xf32> to vector<16x32xf32>
    %315 = arith.addf %313, %314 : vector<16x32xf32>
    %316 = arith.addf %294, %315 : vector<16x32xf32>
    %cst_87 = arith.constant dense<0.000000e+00> : vector<16xf32>
    %317 = vector.multi_reduction <add>, %316, %cst_87 [1] : vector<16x32xf32> to vector<16xf32>
    %318 = vector.shape_cast %317 : vector<16xf32> to vector<16x1xf32>
    %cst_88 = arith.constant 3.200000e+01 : f32
    %319 = vector.broadcast %cst_88 : f32 to vector<16x1xf32>
    %320 = arith.divf %318, %319 : vector<16x1xf32>
    %321 = vector.broadcast %320 : vector<16x1xf32> to vector<16x32xf32>
    %322 = arith.subf %316, %321 : vector<16x32xf32>
    %323 = arith.mulf %322, %322 : vector<16x32xf32>
    %cst_89 = arith.constant dense<0.000000e+00> : vector<16xf32>
    %324 = vector.multi_reduction <add>, %323, %cst_89 [1] : vector<16x32xf32> to vector<16xf32>
    %325 = vector.shape_cast %324 : vector<16xf32> to vector<16x1xf32>
    %cst_90 = arith.constant 3.200000e+01 : f32
    %326 = vector.broadcast %cst_90 : f32 to vector<16x1xf32>
    %327 = arith.divf %325, %326 : vector<16x1xf32>
    %cst_91 = arith.constant 9.99999996E-13 : f32
    %328 = vector.broadcast %cst_91 : f32 to vector<16x1xf32>
    %329 = arith.addf %327, %328 : vector<16x1xf32>
    %330 = math.rsqrt %329 : vector<16x1xf32>
    %331 = vector.broadcast %330 : vector<16x1xf32> to vector<16x32xf32>
    %332 = arith.mulf %322, %331 : vector<16x32xf32>
    %333 = vector.broadcast %74 : vector<1x32xf32> to vector<16x32xf32>
    %334 = arith.mulf %332, %333 : vector<16x32xf32>
    %335 = vector.broadcast %75 : vector<1x32xf32> to vector<16x32xf32>
    %336 = arith.addf %334, %335 : vector<16x32xf32>
    %c1_92 = arith.constant 1 : index
    %c0_93 = arith.constant 0 : index
    %c0_94 = arith.constant 0 : index
    %337 = vector.load %arg5[%c1_92, %c0_93, %c0_94] : memref<2x32x192xbf16, #tpu.memory_space<vmem>>, vector<1x32x192xbf16>
    %338 = vector.shape_cast %337 : vector<1x32x192xbf16> to vector<32x192xbf16>
    %339 = vector.extract_strided_slice %338 {offsets = [0, 0], sizes = [32, 96], strides = [1, 1]} : vector<32x192xbf16> to vector<32x96xbf16>
    %340 = vector.extract_strided_slice %338 {offsets = [0, 96], sizes = [32, 32], strides = [1, 1]} : vector<32x192xbf16> to vector<32x32xbf16>
    %341 = vector.extract_strided_slice %338 {offsets = [0, 128], sizes = [32, 64], strides = [1, 1]} : vector<32x192xbf16> to vector<32x64xbf16>
    %c1_95 = arith.constant 1 : index
    %c0_96 = arith.constant 0 : index
    %c0_97 = arith.constant 0 : index
    %342 = vector.load %arg6[%c1_95, %c0_96, %c0_97] : memref<2x64x32xbf16, #tpu.memory_space<vmem>>, vector<1x64x32xbf16>
    %343 = vector.shape_cast %342 : vector<1x64x32xbf16> to vector<64x32xbf16>
    %c10 = arith.constant 10 : index
    %c0_98 = arith.constant 0 : index
    %344 = vector.load %arg4[%c10, %c0_98] : memref<27x128xf32, #tpu.memory_space<vmem>>, vector<1x96xf32>
    %c11 = arith.constant 11 : index
    %c0_99 = arith.constant 0 : index
    %345 = vector.load %arg4[%c11, %c0_99] : memref<27x128xf32, #tpu.memory_space<vmem>>, vector<1x32xf32>
    %c12 = arith.constant 12 : index
    %c0_100 = arith.constant 0 : index
    %346 = vector.load %arg4[%c12, %c0_100] : memref<27x128xf32, #tpu.memory_space<vmem>>, vector<1x64xf32>
    %c13 = arith.constant 13 : index
    %c0_101 = arith.constant 0 : index
    %347 = vector.load %arg4[%c13, %c0_101] : memref<27x128xf32, #tpu.memory_space<vmem>>, vector<1x32xf32>
    %c14 = arith.constant 14 : index
    %c0_102 = arith.constant 0 : index
    %348 = vector.load %arg4[%c14, %c0_102] : memref<27x128xf32, #tpu.memory_space<vmem>>, vector<1x32xf32>
    %c15 = arith.constant 15 : index
    %c0_103 = arith.constant 0 : index
    %349 = vector.load %arg4[%c15, %c0_103] : memref<27x128xf32, #tpu.memory_space<vmem>>, vector<1x32xf32>
    %c16 = arith.constant 16 : index
    %c0_104 = arith.constant 0 : index
    %350 = vector.load %arg4[%c16, %c0_104] : memref<27x128xf32, #tpu.memory_space<vmem>>, vector<1x32xf32>
    %c17 = arith.constant 17 : index
    %c0_105 = arith.constant 0 : index
    %351 = vector.load %arg4[%c17, %c0_105] : memref<27x128xf32, #tpu.memory_space<vmem>>, vector<1x32xf32>
    %352 = arith.truncf %336 : vector<16x32xf32> to vector<16x32xbf16>
    %cst_106 = arith.constant dense<0.000000e+00> : vector<16x96xf32>
    %353 = tpu.matmul %352, %339, %cst_106 {dimension_numbers = #tpu.dot_dimension_numbers<[1], [0], [0], [1], [0, 0, 1, 1], [], []>} : vector<16x32xbf16>, vector<32x96xbf16>, vector<16x96xf32> -> vector<16x96xf32>
    %354 = vector.broadcast %344 : vector<1x96xf32> to vector<16x96xf32>
    %355 = arith.addf %353, %354 : vector<16x96xf32>
    %356 = vector.extract_strided_slice %355 {offsets = [0, 0], sizes = [16, 32], strides = [1, 1]} : vector<16x96xf32> to vector<16x32xf32>
    %357 = vector.extract_strided_slice %355 {offsets = [0, 32], sizes = [16, 32], strides = [1, 1]} : vector<16x96xf32> to vector<16x32xf32>
    %358 = vector.extract_strided_slice %355 {offsets = [0, 64], sizes = [16, 32], strides = [1, 1]} : vector<16x96xf32> to vector<16x32xf32>
    %359 = vector.extract_strided_slice %356 {offsets = [0, 0], sizes = [8, 8], strides = [1, 1]} : vector<16x32xf32> to vector<8x8xf32>
    %360 = arith.truncf %359 : vector<8x8xf32> to vector<8x8xbf16>
    %361 = vector.extract_strided_slice %357 {offsets = [0, 0], sizes = [8, 8], strides = [1, 1]} : vector<16x32xf32> to vector<8x8xf32>
    %362 = arith.truncf %361 : vector<8x8xf32> to vector<8x8xbf16>
    %363 = vector.extract_strided_slice %358 {offsets = [0, 0], sizes = [8, 8], strides = [1, 1]} : vector<16x32xf32> to vector<8x8xf32>
    %364 = arith.truncf %363 : vector<8x8xf32> to vector<8x8xbf16>
    %cst_107 = arith.constant dense<0.000000e+00> : vector<8x8xf32>
    %365 = tpu.matmul %360, %362, %cst_107 {dimension_numbers = #tpu.dot_dimension_numbers<[1], [1], [0], [0], [0, 0, 1, 0], [], []>} : vector<8x8xbf16>, vector<8x8xbf16>, vector<8x8xf32> -> vector<8x8xf32>
    %cst_108 = arith.constant 0.353553385 : f32
    %366 = vector.broadcast %cst_108 : f32 to vector<8x8xf32>
    %367 = arith.mulf %365, %366 : vector<8x8xf32>
    %368 = vector.broadcast %55 : vector<1x8xf32> to vector<8x8xf32>
    %369 = arith.addf %367, %368 : vector<8x8xf32>
    %cst_109 = arith.constant dense<0xFF800000> : vector<8xf32>
    %370 = vector.multi_reduction <maximumf>, %369, %cst_109 [1] : vector<8x8xf32> to vector<8xf32>
    %371 = vector.shape_cast %370 : vector<8xf32> to vector<8x1xf32>
    %372 = vector.broadcast %371 : vector<8x1xf32> to vector<8x8xf32>
    %373 = arith.subf %369, %372 : vector<8x8xf32>
    %374 = math.exp %373 : vector<8x8xf32>
    %cst_110 = arith.constant dense<0.000000e+00> : vector<8xf32>
    %375 = vector.multi_reduction <add>, %374, %cst_110 [1] : vector<8x8xf32> to vector<8xf32>
    %376 = vector.shape_cast %375 : vector<8xf32> to vector<8x1xf32>
    %377 = tpu.reciprocal %376 {approx = true} : vector<8x1xf32> -> vector<8x1xf32>
    %378 = vector.broadcast %377 : vector<8x1xf32> to vector<8x8xf32>
    %379 = arith.mulf %374, %378 : vector<8x8xf32>
    %380 = arith.truncf %379 : vector<8x8xf32> to vector<8x8xbf16>
    %cst_111 = arith.constant dense<0.000000e+00> : vector<8x8xf32>
    %381 = tpu.matmul %380, %364, %cst_111 {dimension_numbers = #tpu.dot_dimension_numbers<[1], [0], [0], [1], [0, 0, 1, 1], [], []>} : vector<8x8xbf16>, vector<8x8xbf16>, vector<8x8xf32> -> vector<8x8xf32>
    %382 = vector.extract_strided_slice %356 {offsets = [0, 8], sizes = [8, 8], strides = [1, 1]} : vector<16x32xf32> to vector<8x8xf32>
    %383 = arith.truncf %382 : vector<8x8xf32> to vector<8x8xbf16>
    %384 = vector.extract_strided_slice %357 {offsets = [0, 8], sizes = [8, 8], strides = [1, 1]} : vector<16x32xf32> to vector<8x8xf32>
    %385 = arith.truncf %384 : vector<8x8xf32> to vector<8x8xbf16>
    %386 = vector.extract_strided_slice %358 {offsets = [0, 8], sizes = [8, 8], strides = [1, 1]} : vector<16x32xf32> to vector<8x8xf32>
    %387 = arith.truncf %386 : vector<8x8xf32> to vector<8x8xbf16>
    %cst_112 = arith.constant dense<0.000000e+00> : vector<8x8xf32>
    %388 = tpu.matmul %383, %385, %cst_112 {dimension_numbers = #tpu.dot_dimension_numbers<[1], [1], [0], [0], [0, 0, 1, 0], [], []>} : vector<8x8xbf16>, vector<8x8xbf16>, vector<8x8xf32> -> vector<8x8xf32>
    %cst_113 = arith.constant 0.353553385 : f32
    %389 = vector.broadcast %cst_113 : f32 to vector<8x8xf32>
    %390 = arith.mulf %388, %389 : vector<8x8xf32>
    %391 = vector.broadcast %55 : vector<1x8xf32> to vector<8x8xf32>
    %392 = arith.addf %390, %391 : vector<8x8xf32>
    %cst_114 = arith.constant dense<0xFF800000> : vector<8xf32>
    %393 = vector.multi_reduction <maximumf>, %392, %cst_114 [1] : vector<8x8xf32> to vector<8xf32>
    %394 = vector.shape_cast %393 : vector<8xf32> to vector<8x1xf32>
    %395 = vector.broadcast %394 : vector<8x1xf32> to vector<8x8xf32>
    %396 = arith.subf %392, %395 : vector<8x8xf32>
    %397 = math.exp %396 : vector<8x8xf32>
    %cst_115 = arith.constant dense<0.000000e+00> : vector<8xf32>
    %398 = vector.multi_reduction <add>, %397, %cst_115 [1] : vector<8x8xf32> to vector<8xf32>
    %399 = vector.shape_cast %398 : vector<8xf32> to vector<8x1xf32>
    %400 = tpu.reciprocal %399 {approx = true} : vector<8x1xf32> -> vector<8x1xf32>
    %401 = vector.broadcast %400 : vector<8x1xf32> to vector<8x8xf32>
    %402 = arith.mulf %397, %401 : vector<8x8xf32>
    %403 = arith.truncf %402 : vector<8x8xf32> to vector<8x8xbf16>
    %cst_116 = arith.constant dense<0.000000e+00> : vector<8x8xf32>
    %404 = tpu.matmul %403, %387, %cst_116 {dimension_numbers = #tpu.dot_dimension_numbers<[1], [0], [0], [1], [0, 0, 1, 1], [], []>} : vector<8x8xbf16>, vector<8x8xbf16>, vector<8x8xf32> -> vector<8x8xf32>
    %405 = vector.extract_strided_slice %356 {offsets = [0, 16], sizes = [8, 8], strides = [1, 1]} : vector<16x32xf32> to vector<8x8xf32>
    %406 = arith.truncf %405 : vector<8x8xf32> to vector<8x8xbf16>
    %407 = vector.extract_strided_slice %357 {offsets = [0, 16], sizes = [8, 8], strides = [1, 1]} : vector<16x32xf32> to vector<8x8xf32>
    %408 = arith.truncf %407 : vector<8x8xf32> to vector<8x8xbf16>
    %409 = vector.extract_strided_slice %358 {offsets = [0, 16], sizes = [8, 8], strides = [1, 1]} : vector<16x32xf32> to vector<8x8xf32>
    %410 = arith.truncf %409 : vector<8x8xf32> to vector<8x8xbf16>
    %cst_117 = arith.constant dense<0.000000e+00> : vector<8x8xf32>
    %411 = tpu.matmul %406, %408, %cst_117 {dimension_numbers = #tpu.dot_dimension_numbers<[1], [1], [0], [0], [0, 0, 1, 0], [], []>} : vector<8x8xbf16>, vector<8x8xbf16>, vector<8x8xf32> -> vector<8x8xf32>
    %cst_118 = arith.constant 0.353553385 : f32
    %412 = vector.broadcast %cst_118 : f32 to vector<8x8xf32>
    %413 = arith.mulf %411, %412 : vector<8x8xf32>
    %414 = vector.broadcast %55 : vector<1x8xf32> to vector<8x8xf32>
    %415 = arith.addf %413, %414 : vector<8x8xf32>
    %cst_119 = arith.constant dense<0xFF800000> : vector<8xf32>
    %416 = vector.multi_reduction <maximumf>, %415, %cst_119 [1] : vector<8x8xf32> to vector<8xf32>
    %417 = vector.shape_cast %416 : vector<8xf32> to vector<8x1xf32>
    %418 = vector.broadcast %417 : vector<8x1xf32> to vector<8x8xf32>
    %419 = arith.subf %415, %418 : vector<8x8xf32>
    %420 = math.exp %419 : vector<8x8xf32>
    %cst_120 = arith.constant dense<0.000000e+00> : vector<8xf32>
    %421 = vector.multi_reduction <add>, %420, %cst_120 [1] : vector<8x8xf32> to vector<8xf32>
    %422 = vector.shape_cast %421 : vector<8xf32> to vector<8x1xf32>
    %423 = tpu.reciprocal %422 {approx = true} : vector<8x1xf32> -> vector<8x1xf32>
    %424 = vector.broadcast %423 : vector<8x1xf32> to vector<8x8xf32>
    %425 = arith.mulf %420, %424 : vector<8x8xf32>
    %426 = arith.truncf %425 : vector<8x8xf32> to vector<8x8xbf16>
    %cst_121 = arith.constant dense<0.000000e+00> : vector<8x8xf32>
    %427 = tpu.matmul %426, %410, %cst_121 {dimension_numbers = #tpu.dot_dimension_numbers<[1], [0], [0], [1], [0, 0, 1, 1], [], []>} : vector<8x8xbf16>, vector<8x8xbf16>, vector<8x8xf32> -> vector<8x8xf32>
    %428 = vector.extract_strided_slice %356 {offsets = [0, 24], sizes = [8, 8], strides = [1, 1]} : vector<16x32xf32> to vector<8x8xf32>
    %429 = arith.truncf %428 : vector<8x8xf32> to vector<8x8xbf16>
    %430 = vector.extract_strided_slice %357 {offsets = [0, 24], sizes = [8, 8], strides = [1, 1]} : vector<16x32xf32> to vector<8x8xf32>
    %431 = arith.truncf %430 : vector<8x8xf32> to vector<8x8xbf16>
    %432 = vector.extract_strided_slice %358 {offsets = [0, 24], sizes = [8, 8], strides = [1, 1]} : vector<16x32xf32> to vector<8x8xf32>
    %433 = arith.truncf %432 : vector<8x8xf32> to vector<8x8xbf16>
    %cst_122 = arith.constant dense<0.000000e+00> : vector<8x8xf32>
    %434 = tpu.matmul %429, %431, %cst_122 {dimension_numbers = #tpu.dot_dimension_numbers<[1], [1], [0], [0], [0, 0, 1, 0], [], []>} : vector<8x8xbf16>, vector<8x8xbf16>, vector<8x8xf32> -> vector<8x8xf32>
    %cst_123 = arith.constant 0.353553385 : f32
    %435 = vector.broadcast %cst_123 : f32 to vector<8x8xf32>
    %436 = arith.mulf %434, %435 : vector<8x8xf32>
    %437 = vector.broadcast %55 : vector<1x8xf32> to vector<8x8xf32>
    %438 = arith.addf %436, %437 : vector<8x8xf32>
    %cst_124 = arith.constant dense<0xFF800000> : vector<8xf32>
    %439 = vector.multi_reduction <maximumf>, %438, %cst_124 [1] : vector<8x8xf32> to vector<8xf32>
    %440 = vector.shape_cast %439 : vector<8xf32> to vector<8x1xf32>
    %441 = vector.broadcast %440 : vector<8x1xf32> to vector<8x8xf32>
    %442 = arith.subf %438, %441 : vector<8x8xf32>
    %443 = math.exp %442 : vector<8x8xf32>
    %cst_125 = arith.constant dense<0.000000e+00> : vector<8xf32>
    %444 = vector.multi_reduction <add>, %443, %cst_125 [1] : vector<8x8xf32> to vector<8xf32>
    %445 = vector.shape_cast %444 : vector<8xf32> to vector<8x1xf32>
    %446 = tpu.reciprocal %445 {approx = true} : vector<8x1xf32> -> vector<8x1xf32>
    %447 = vector.broadcast %446 : vector<8x1xf32> to vector<8x8xf32>
    %448 = arith.mulf %443, %447 : vector<8x8xf32>
    %449 = arith.truncf %448 : vector<8x8xf32> to vector<8x8xbf16>
    %cst_126 = arith.constant dense<0.000000e+00> : vector<8x8xf32>
    %450 = tpu.matmul %449, %433, %cst_126 {dimension_numbers = #tpu.dot_dimension_numbers<[1], [0], [0], [1], [0, 0, 1, 1], [], []>} : vector<8x8xbf16>, vector<8x8xbf16>, vector<8x8xf32> -> vector<8x8xf32>
    %451 = tpu.concatenate %381, %404, %427, %450 in 1 : vector<8x8xf32>, vector<8x8xf32>, vector<8x8xf32>, vector<8x8xf32> -> vector<8x32xf32>
    %452 = vector.extract_strided_slice %356 {offsets = [8, 0], sizes = [8, 8], strides = [1, 1]} : vector<16x32xf32> to vector<8x8xf32>
    %453 = arith.truncf %452 : vector<8x8xf32> to vector<8x8xbf16>
    %454 = vector.extract_strided_slice %357 {offsets = [8, 0], sizes = [8, 8], strides = [1, 1]} : vector<16x32xf32> to vector<8x8xf32>
    %455 = arith.truncf %454 : vector<8x8xf32> to vector<8x8xbf16>
    %456 = vector.extract_strided_slice %358 {offsets = [8, 0], sizes = [8, 8], strides = [1, 1]} : vector<16x32xf32> to vector<8x8xf32>
    %457 = arith.truncf %456 : vector<8x8xf32> to vector<8x8xbf16>
    %cst_127 = arith.constant dense<0.000000e+00> : vector<8x8xf32>
    %458 = tpu.matmul %453, %455, %cst_127 {dimension_numbers = #tpu.dot_dimension_numbers<[1], [1], [0], [0], [0, 0, 1, 0], [], []>} : vector<8x8xbf16>, vector<8x8xbf16>, vector<8x8xf32> -> vector<8x8xf32>
    %cst_128 = arith.constant 0.353553385 : f32
    %459 = vector.broadcast %cst_128 : f32 to vector<8x8xf32>
    %460 = arith.mulf %458, %459 : vector<8x8xf32>
    %461 = vector.broadcast %60 : vector<1x8xf32> to vector<8x8xf32>
    %462 = arith.addf %460, %461 : vector<8x8xf32>
    %cst_129 = arith.constant dense<0xFF800000> : vector<8xf32>
    %463 = vector.multi_reduction <maximumf>, %462, %cst_129 [1] : vector<8x8xf32> to vector<8xf32>
    %464 = vector.shape_cast %463 : vector<8xf32> to vector<8x1xf32>
    %465 = vector.broadcast %464 : vector<8x1xf32> to vector<8x8xf32>
    %466 = arith.subf %462, %465 : vector<8x8xf32>
    %467 = math.exp %466 : vector<8x8xf32>
    %cst_130 = arith.constant dense<0.000000e+00> : vector<8xf32>
    %468 = vector.multi_reduction <add>, %467, %cst_130 [1] : vector<8x8xf32> to vector<8xf32>
    %469 = vector.shape_cast %468 : vector<8xf32> to vector<8x1xf32>
    %470 = tpu.reciprocal %469 {approx = true} : vector<8x1xf32> -> vector<8x1xf32>
    %471 = vector.broadcast %470 : vector<8x1xf32> to vector<8x8xf32>
    %472 = arith.mulf %467, %471 : vector<8x8xf32>
    %473 = arith.truncf %472 : vector<8x8xf32> to vector<8x8xbf16>
    %cst_131 = arith.constant dense<0.000000e+00> : vector<8x8xf32>
    %474 = tpu.matmul %473, %457, %cst_131 {dimension_numbers = #tpu.dot_dimension_numbers<[1], [0], [0], [1], [0, 0, 1, 1], [], []>} : vector<8x8xbf16>, vector<8x8xbf16>, vector<8x8xf32> -> vector<8x8xf32>
    %475 = vector.extract_strided_slice %356 {offsets = [8, 8], sizes = [8, 8], strides = [1, 1]} : vector<16x32xf32> to vector<8x8xf32>
    %476 = arith.truncf %475 : vector<8x8xf32> to vector<8x8xbf16>
    %477 = vector.extract_strided_slice %357 {offsets = [8, 8], sizes = [8, 8], strides = [1, 1]} : vector<16x32xf32> to vector<8x8xf32>
    %478 = arith.truncf %477 : vector<8x8xf32> to vector<8x8xbf16>
    %479 = vector.extract_strided_slice %358 {offsets = [8, 8], sizes = [8, 8], strides = [1, 1]} : vector<16x32xf32> to vector<8x8xf32>
    %480 = arith.truncf %479 : vector<8x8xf32> to vector<8x8xbf16>
    %cst_132 = arith.constant dense<0.000000e+00> : vector<8x8xf32>
    %481 = tpu.matmul %476, %478, %cst_132 {dimension_numbers = #tpu.dot_dimension_numbers<[1], [1], [0], [0], [0, 0, 1, 0], [], []>} : vector<8x8xbf16>, vector<8x8xbf16>, vector<8x8xf32> -> vector<8x8xf32>
    %cst_133 = arith.constant 0.353553385 : f32
    %482 = vector.broadcast %cst_133 : f32 to vector<8x8xf32>
    %483 = arith.mulf %481, %482 : vector<8x8xf32>
    %484 = vector.broadcast %60 : vector<1x8xf32> to vector<8x8xf32>
    %485 = arith.addf %483, %484 : vector<8x8xf32>
    %cst_134 = arith.constant dense<0xFF800000> : vector<8xf32>
    %486 = vector.multi_reduction <maximumf>, %485, %cst_134 [1] : vector<8x8xf32> to vector<8xf32>
    %487 = vector.shape_cast %486 : vector<8xf32> to vector<8x1xf32>
    %488 = vector.broadcast %487 : vector<8x1xf32> to vector<8x8xf32>
    %489 = arith.subf %485, %488 : vector<8x8xf32>
    %490 = math.exp %489 : vector<8x8xf32>
    %cst_135 = arith.constant dense<0.000000e+00> : vector<8xf32>
    %491 = vector.multi_reduction <add>, %490, %cst_135 [1] : vector<8x8xf32> to vector<8xf32>
    %492 = vector.shape_cast %491 : vector<8xf32> to vector<8x1xf32>
    %493 = tpu.reciprocal %492 {approx = true} : vector<8x1xf32> -> vector<8x1xf32>
    %494 = vector.broadcast %493 : vector<8x1xf32> to vector<8x8xf32>
    %495 = arith.mulf %490, %494 : vector<8x8xf32>
    %496 = arith.truncf %495 : vector<8x8xf32> to vector<8x8xbf16>
    %cst_136 = arith.constant dense<0.000000e+00> : vector<8x8xf32>
    %497 = tpu.matmul %496, %480, %cst_136 {dimension_numbers = #tpu.dot_dimension_numbers<[1], [0], [0], [1], [0, 0, 1, 1], [], []>} : vector<8x8xbf16>, vector<8x8xbf16>, vector<8x8xf32> -> vector<8x8xf32>
    %498 = vector.extract_strided_slice %356 {offsets = [8, 16], sizes = [8, 8], strides = [1, 1]} : vector<16x32xf32> to vector<8x8xf32>
    %499 = arith.truncf %498 : vector<8x8xf32> to vector<8x8xbf16>
    %500 = vector.extract_strided_slice %357 {offsets = [8, 16], sizes = [8, 8], strides = [1, 1]} : vector<16x32xf32> to vector<8x8xf32>
    %501 = arith.truncf %500 : vector<8x8xf32> to vector<8x8xbf16>
    %502 = vector.extract_strided_slice %358 {offsets = [8, 16], sizes = [8, 8], strides = [1, 1]} : vector<16x32xf32> to vector<8x8xf32>
    %503 = arith.truncf %502 : vector<8x8xf32> to vector<8x8xbf16>
    %cst_137 = arith.constant dense<0.000000e+00> : vector<8x8xf32>
    %504 = tpu.matmul %499, %501, %cst_137 {dimension_numbers = #tpu.dot_dimension_numbers<[1], [1], [0], [0], [0, 0, 1, 0], [], []>} : vector<8x8xbf16>, vector<8x8xbf16>, vector<8x8xf32> -> vector<8x8xf32>
    %cst_138 = arith.constant 0.353553385 : f32
    %505 = vector.broadcast %cst_138 : f32 to vector<8x8xf32>
    %506 = arith.mulf %504, %505 : vector<8x8xf32>
    %507 = vector.broadcast %60 : vector<1x8xf32> to vector<8x8xf32>
    %508 = arith.addf %506, %507 : vector<8x8xf32>
    %cst_139 = arith.constant dense<0xFF800000> : vector<8xf32>
    %509 = vector.multi_reduction <maximumf>, %508, %cst_139 [1] : vector<8x8xf32> to vector<8xf32>
    %510 = vector.shape_cast %509 : vector<8xf32> to vector<8x1xf32>
    %511 = vector.broadcast %510 : vector<8x1xf32> to vector<8x8xf32>
    %512 = arith.subf %508, %511 : vector<8x8xf32>
    %513 = math.exp %512 : vector<8x8xf32>
    %cst_140 = arith.constant dense<0.000000e+00> : vector<8xf32>
    %514 = vector.multi_reduction <add>, %513, %cst_140 [1] : vector<8x8xf32> to vector<8xf32>
    %515 = vector.shape_cast %514 : vector<8xf32> to vector<8x1xf32>
    %516 = tpu.reciprocal %515 {approx = true} : vector<8x1xf32> -> vector<8x1xf32>
    %517 = vector.broadcast %516 : vector<8x1xf32> to vector<8x8xf32>
    %518 = arith.mulf %513, %517 : vector<8x8xf32>
    %519 = arith.truncf %518 : vector<8x8xf32> to vector<8x8xbf16>
    %cst_141 = arith.constant dense<0.000000e+00> : vector<8x8xf32>
    %520 = tpu.matmul %519, %503, %cst_141 {dimension_numbers = #tpu.dot_dimension_numbers<[1], [0], [0], [1], [0, 0, 1, 1], [], []>} : vector<8x8xbf16>, vector<8x8xbf16>, vector<8x8xf32> -> vector<8x8xf32>
    %521 = vector.extract_strided_slice %356 {offsets = [8, 24], sizes = [8, 8], strides = [1, 1]} : vector<16x32xf32> to vector<8x8xf32>
    %522 = arith.truncf %521 : vector<8x8xf32> to vector<8x8xbf16>
    %523 = vector.extract_strided_slice %357 {offsets = [8, 24], sizes = [8, 8], strides = [1, 1]} : vector<16x32xf32> to vector<8x8xf32>
    %524 = arith.truncf %523 : vector<8x8xf32> to vector<8x8xbf16>
    %525 = vector.extract_strided_slice %358 {offsets = [8, 24], sizes = [8, 8], strides = [1, 1]} : vector<16x32xf32> to vector<8x8xf32>
    %526 = arith.truncf %525 : vector<8x8xf32> to vector<8x8xbf16>
    %cst_142 = arith.constant dense<0.000000e+00> : vector<8x8xf32>
    %527 = tpu.matmul %522, %524, %cst_142 {dimension_numbers = #tpu.dot_dimension_numbers<[1], [1], [0], [0], [0, 0, 1, 0], [], []>} : vector<8x8xbf16>, vector<8x8xbf16>, vector<8x8xf32> -> vector<8x8xf32>
    %cst_143 = arith.constant 0.353553385 : f32
    %528 = vector.broadcast %cst_143 : f32 to vector<8x8xf32>
    %529 = arith.mulf %527, %528 : vector<8x8xf32>
    %530 = vector.broadcast %60 : vector<1x8xf32> to vector<8x8xf32>
    %531 = arith.addf %529, %530 : vector<8x8xf32>
    %cst_144 = arith.constant dense<0xFF800000> : vector<8xf32>
    %532 = vector.multi_reduction <maximumf>, %531, %cst_144 [1] : vector<8x8xf32> to vector<8xf32>
    %533 = vector.shape_cast %532 : vector<8xf32> to vector<8x1xf32>
    %534 = vector.broadcast %533 : vector<8x1xf32> to vector<8x8xf32>
    %535 = arith.subf %531, %534 : vector<8x8xf32>
    %536 = math.exp %535 : vector<8x8xf32>
    %cst_145 = arith.constant dense<0.000000e+00> : vector<8xf32>
    %537 = vector.multi_reduction <add>, %536, %cst_145 [1] : vector<8x8xf32> to vector<8xf32>
    %538 = vector.shape_cast %537 : vector<8xf32> to vector<8x1xf32>
    %539 = tpu.reciprocal %538 {approx = true} : vector<8x1xf32> -> vector<8x1xf32>
    %540 = vector.broadcast %539 : vector<8x1xf32> to vector<8x8xf32>
    %541 = arith.mulf %536, %540 : vector<8x8xf32>
    %542 = arith.truncf %541 : vector<8x8xf32> to vector<8x8xbf16>
    %cst_146 = arith.constant dense<0.000000e+00> : vector<8x8xf32>
    %543 = tpu.matmul %542, %526, %cst_146 {dimension_numbers = #tpu.dot_dimension_numbers<[1], [0], [0], [1], [0, 0, 1, 1], [], []>} : vector<8x8xbf16>, vector<8x8xbf16>, vector<8x8xf32> -> vector<8x8xf32>
    %544 = tpu.concatenate %474, %497, %520, %543 in 1 : vector<8x8xf32>, vector<8x8xf32>, vector<8x8xf32>, vector<8x8xf32> -> vector<8x32xf32>
    %545 = tpu.concatenate %451, %544 in 0 : vector<8x32xf32>, vector<8x32xf32> -> vector<16x32xf32>
    %546 = arith.truncf %545 : vector<16x32xf32> to vector<16x32xbf16>
    %cst_147 = arith.constant dense<0.000000e+00> : vector<16x32xf32>
    %547 = tpu.matmul %546, %340, %cst_147 {dimension_numbers = #tpu.dot_dimension_numbers<[1], [0], [0], [1], [0, 0, 1, 1], [], []>} : vector<16x32xbf16>, vector<32x32xbf16>, vector<16x32xf32> -> vector<16x32xf32>
    %548 = vector.broadcast %345 : vector<1x32xf32> to vector<16x32xf32>
    %549 = arith.addf %547, %548 : vector<16x32xf32>
    %550 = arith.addf %336, %549 : vector<16x32xf32>
    %cst_148 = arith.constant dense<0.000000e+00> : vector<16xf32>
    %551 = vector.multi_reduction <add>, %550, %cst_148 [1] : vector<16x32xf32> to vector<16xf32>
    %552 = vector.shape_cast %551 : vector<16xf32> to vector<16x1xf32>
    %cst_149 = arith.constant 3.200000e+01 : f32
    %553 = vector.broadcast %cst_149 : f32 to vector<16x1xf32>
    %554 = arith.divf %552, %553 : vector<16x1xf32>
    %555 = vector.broadcast %554 : vector<16x1xf32> to vector<16x32xf32>
    %556 = arith.subf %550, %555 : vector<16x32xf32>
    %557 = arith.mulf %556, %556 : vector<16x32xf32>
    %cst_150 = arith.constant dense<0.000000e+00> : vector<16xf32>
    %558 = vector.multi_reduction <add>, %557, %cst_150 [1] : vector<16x32xf32> to vector<16xf32>
    %559 = vector.shape_cast %558 : vector<16xf32> to vector<16x1xf32>
    %cst_151 = arith.constant 3.200000e+01 : f32
    %560 = vector.broadcast %cst_151 : f32 to vector<16x1xf32>
    %561 = arith.divf %559, %560 : vector<16x1xf32>
    %cst_152 = arith.constant 9.99999996E-13 : f32
    %562 = vector.broadcast %cst_152 : f32 to vector<16x1xf32>
    %563 = arith.addf %561, %562 : vector<16x1xf32>
    %564 = math.rsqrt %563 : vector<16x1xf32>
    %565 = vector.broadcast %564 : vector<16x1xf32> to vector<16x32xf32>
    %566 = arith.mulf %556, %565 : vector<16x32xf32>
    %567 = vector.broadcast %348 : vector<1x32xf32> to vector<16x32xf32>
    %568 = arith.mulf %566, %567 : vector<16x32xf32>
    %569 = vector.broadcast %349 : vector<1x32xf32> to vector<16x32xf32>
    %570 = arith.addf %568, %569 : vector<16x32xf32>
    %571 = arith.truncf %570 : vector<16x32xf32> to vector<16x32xbf16>
    %cst_153 = arith.constant dense<0.000000e+00> : vector<16x64xf32>
    %572 = tpu.matmul %571, %341, %cst_153 {dimension_numbers = #tpu.dot_dimension_numbers<[1], [0], [0], [1], [0, 0, 1, 1], [], []>} : vector<16x32xbf16>, vector<32x64xbf16>, vector<16x64xf32> -> vector<16x64xf32>
    %573 = vector.broadcast %346 : vector<1x64xf32> to vector<16x64xf32>
    %574 = arith.addf %572, %573 : vector<16x64xf32>
    %575 = arith.mulf %574, %574 : vector<16x64xf32>
    %576 = arith.mulf %574, %575 : vector<16x64xf32>
    %cst_154 = arith.constant 4.471500e-02 : f32
    %577 = vector.broadcast %cst_154 : f32 to vector<16x64xf32>
    %578 = arith.mulf %577, %576 : vector<16x64xf32>
    %579 = arith.addf %574, %578 : vector<16x64xf32>
    %cst_155 = arith.constant 0.797884583 : f32
    %580 = vector.broadcast %cst_155 : f32 to vector<16x64xf32>
    %581 = arith.mulf %580, %579 : vector<16x64xf32>
    %582 = math.tanh %581 : vector<16x64xf32>
    %cst_156 = arith.constant 1.000000e+00 : f32
    %583 = vector.broadcast %cst_156 : f32 to vector<16x64xf32>
    %584 = arith.addf %583, %582 : vector<16x64xf32>
    %cst_157 = arith.constant 5.000000e-01 : f32
    %585 = vector.broadcast %cst_157 : f32 to vector<16x64xf32>
    %586 = arith.mulf %585, %584 : vector<16x64xf32>
    %587 = arith.mulf %574, %586 : vector<16x64xf32>
    %588 = arith.truncf %587 : vector<16x64xf32> to vector<16x64xbf16>
    %cst_158 = arith.constant dense<0.000000e+00> : vector<16x32xf32>
    %589 = tpu.matmul %588, %343, %cst_158 {dimension_numbers = #tpu.dot_dimension_numbers<[1], [0], [0], [1], [0, 0, 1, 1], [], []>} : vector<16x64xbf16>, vector<64x32xbf16>, vector<16x32xf32> -> vector<16x32xf32>
    %590 = vector.broadcast %347 : vector<1x32xf32> to vector<16x32xf32>
    %591 = arith.addf %589, %590 : vector<16x32xf32>
    %592 = arith.addf %570, %591 : vector<16x32xf32>
    %cst_159 = arith.constant dense<0.000000e+00> : vector<16xf32>
    %593 = vector.multi_reduction <add>, %592, %cst_159 [1] : vector<16x32xf32> to vector<16xf32>
    %594 = vector.shape_cast %593 : vector<16xf32> to vector<16x1xf32>
    %cst_160 = arith.constant 3.200000e+01 : f32
    %595 = vector.broadcast %cst_160 : f32 to vector<16x1xf32>
    %596 = arith.divf %594, %595 : vector<16x1xf32>
    %597 = vector.broadcast %596 : vector<16x1xf32> to vector<16x32xf32>
    %598 = arith.subf %592, %597 : vector<16x32xf32>
    %599 = arith.mulf %598, %598 : vector<16x32xf32>
    %cst_161 = arith.constant dense<0.000000e+00> : vector<16xf32>
    %600 = vector.multi_reduction <add>, %599, %cst_161 [1] : vector<16x32xf32> to vector<16xf32>
    %601 = vector.shape_cast %600 : vector<16xf32> to vector<16x1xf32>
    %cst_162 = arith.constant 3.200000e+01 : f32
    %602 = vector.broadcast %cst_162 : f32 to vector<16x1xf32>
    %603 = arith.divf %601, %602 : vector<16x1xf32>
    %cst_163 = arith.constant 9.99999996E-13 : f32
    %604 = vector.broadcast %cst_163 : f32 to vector<16x1xf32>
    %605 = arith.addf %603, %604 : vector<16x1xf32>
    %606 = math.rsqrt %605 : vector<16x1xf32>
    %607 = vector.broadcast %606 : vector<16x1xf32> to vector<16x32xf32>
    %608 = arith.mulf %598, %607 : vector<16x32xf32>
    %609 = vector.broadcast %350 : vector<1x32xf32> to vector<16x32xf32>
    %610 = arith.mulf %608, %609 : vector<16x32xf32>
    %611 = vector.broadcast %351 : vector<1x32xf32> to vector<16x32xf32>
    %612 = arith.addf %610, %611 : vector<16x32xf32>
    %613 = arith.truncf %612 : vector<16x32xf32> to vector<16x32xbf16>
    %c0_164 = arith.constant 0 : index
    %c0_165 = arith.constant 0 : index
    %614 = vector.load %arg7[%c0_164, %c0_165] : memref<32x128xbf16, #tpu.memory_space<vmem>>, vector<32x128xbf16>
    %cst_166 = arith.constant dense<0.000000e+00> : vector<16x128xf32>
    %615 = tpu.matmul %613, %614, %cst_166 {dimension_numbers = #tpu.dot_dimension_numbers<[1], [0], [0], [1], [0, 0, 1, 1], [], []>} : vector<16x32xbf16>, vector<32x128xbf16>, vector<16x128xf32> -> vector<16x128xf32>
    %c18 = arith.constant 18 : index
    %c0_167 = arith.constant 0 : index
    %616 = vector.load %arg4[%c18, %c0_167] : memref<27x128xf32, #tpu.memory_space<vmem>>, vector<1x128xf32>
    %617 = vector.broadcast %616 : vector<1x128xf32> to vector<16x128xf32>
    %618 = arith.addf %615, %617 : vector<16x128xf32>
    %c19 = arith.constant 19 : index
    %c0_168 = arith.constant 0 : index
    %619 = vector.load %arg4[%c19, %c0_168] : memref<27x128xf32, #tpu.memory_space<vmem>>, vector<8x16xf32>
    %c19_169 = arith.constant 19 : index
    %c16_170 = arith.constant 16 : index
    %620 = vector.load %arg4[%c19_169, %c16_170] : memref<27x128xf32, #tpu.memory_space<vmem>>, vector<8x16xf32>
    %621 = tpu.iota {dimensions = array<i32: 0>} : vector<8x8xi32>
    %622 = tpu.iota {dimensions = array<i32: 1>} : vector<8x8xi32>
    %623 = arith.cmpi sgt, %621, %622 : vector<8x8xi32>
    %624 = arith.extui %623 : vector<8x8xi1> to vector<8x8xi32>
    %625 = arith.sitofp %624 : vector<8x8xi32> to vector<8x8xf32>
    %cst_171 = arith.constant 9.99999995E+11 : f32
    %626 = vector.broadcast %cst_171 : f32 to vector<8x8xf32>
    %627 = arith.mulf %625, %626 : vector<8x8xf32>
    %628 = vector.extract_strided_slice %49 {offsets = [0, 0], sizes = [1, 8], strides = [1, 1]} : vector<2x8xf32> to vector<1x8xf32>
    %629 = vector.extract_strided_slice %50 {offsets = [0, 0], sizes = [8, 1], strides = [1, 1]} : vector<16x1xf32> to vector<8x1xf32>
    %cst_172 = arith.constant 1.000000e+00 : f32
    %630 = vector.broadcast %cst_172 : f32 to vector<1x8xf32>
    %631 = arith.subf %630, %628 : vector<1x8xf32>
    %cst_173 = arith.constant 9.99999995E+11 : f32
    %632 = vector.broadcast %cst_173 : f32 to vector<1x8xf32>
    %633 = arith.mulf %631, %632 : vector<1x8xf32>
    %cst_174 = arith.constant 1.000000e+00 : f32
    %634 = vector.broadcast %cst_174 : f32 to vector<8x1xf32>
    %635 = arith.subf %634, %629 : vector<8x1xf32>
    %cst_175 = arith.constant 9.99999995E+11 : f32
    %636 = vector.broadcast %cst_175 : f32 to vector<8x1xf32>
    %637 = arith.mulf %635, %636 : vector<8x1xf32>
    %638 = vector.broadcast %633 : vector<1x8xf32> to vector<8x8xf32>
    %639 = vector.broadcast %637 : vector<8x1xf32> to vector<8x8xf32>
    %640 = arith.addf %638, %639 : vector<8x8xf32>
    %641 = arith.addf %640, %627 : vector<8x8xf32>
    %642 = vector.extract_strided_slice %618 {offsets = [0, 0], sizes = [8, 16], strides = [1, 1]} : vector<16x128xf32> to vector<8x16xf32>
    %643 = vector.extract_strided_slice %618 {offsets = [0, 16], sizes = [8, 16], strides = [1, 1]} : vector<16x128xf32> to vector<8x16xf32>
    %644 = vector.extract_strided_slice %618 {offsets = [0, 64], sizes = [8, 16], strides = [1, 1]} : vector<16x128xf32> to vector<8x16xf32>
    %645 = vector.extract_strided_slice %618 {offsets = [0, 80], sizes = [8, 16], strides = [1, 1]} : vector<16x128xf32> to vector<8x16xf32>
    %646 = arith.mulf %642, %619 : vector<8x16xf32>
    %647 = arith.mulf %644, %620 : vector<8x16xf32>
    %648 = arith.addf %646, %647 : vector<8x16xf32>
    %649 = arith.mulf %643, %619 : vector<8x16xf32>
    %650 = arith.mulf %645, %620 : vector<8x16xf32>
    %651 = arith.addf %649, %650 : vector<8x16xf32>
    %652 = arith.truncf %648 : vector<8x16xf32> to vector<8x16xbf16>
    %653 = arith.truncf %651 : vector<8x16xf32> to vector<8x16xbf16>
    %cst_176 = arith.constant dense<0.000000e+00> : vector<8x8xf32>
    %654 = tpu.matmul %652, %653, %cst_176 {dimension_numbers = #tpu.dot_dimension_numbers<[1], [1], [0], [0], [0, 0, 1, 0], [], []>} : vector<8x16xbf16>, vector<8x16xbf16>, vector<8x8xf32> -> vector<8x8xf32>
    %655 = arith.subf %654, %641 : vector<8x8xf32>
    %cst_177 = arith.constant 2.500000e-01 : f32
    %656 = vector.broadcast %cst_177 : f32 to vector<8x8xf32>
    %657 = arith.mulf %655, %656 : vector<8x8xf32>
    %658 = vector.extract_strided_slice %618 {offsets = [0, 32], sizes = [8, 16], strides = [1, 1]} : vector<16x128xf32> to vector<8x16xf32>
    %659 = vector.extract_strided_slice %618 {offsets = [0, 48], sizes = [8, 16], strides = [1, 1]} : vector<16x128xf32> to vector<8x16xf32>
    %660 = vector.extract_strided_slice %618 {offsets = [0, 96], sizes = [8, 16], strides = [1, 1]} : vector<16x128xf32> to vector<8x16xf32>
    %661 = vector.extract_strided_slice %618 {offsets = [0, 112], sizes = [8, 16], strides = [1, 1]} : vector<16x128xf32> to vector<8x16xf32>
    %662 = arith.mulf %658, %619 : vector<8x16xf32>
    %663 = arith.mulf %660, %620 : vector<8x16xf32>
    %664 = arith.addf %662, %663 : vector<8x16xf32>
    %665 = arith.mulf %659, %619 : vector<8x16xf32>
    %666 = arith.mulf %661, %620 : vector<8x16xf32>
    %667 = arith.addf %665, %666 : vector<8x16xf32>
    %668 = arith.truncf %664 : vector<8x16xf32> to vector<8x16xbf16>
    %669 = arith.truncf %667 : vector<8x16xf32> to vector<8x16xbf16>
    %cst_178 = arith.constant dense<0.000000e+00> : vector<8x8xf32>
    %670 = tpu.matmul %668, %669, %cst_178 {dimension_numbers = #tpu.dot_dimension_numbers<[1], [1], [0], [0], [0, 0, 1, 0], [], []>} : vector<8x16xbf16>, vector<8x16xbf16>, vector<8x8xf32> -> vector<8x8xf32>
    %671 = arith.subf %670, %641 : vector<8x8xf32>
    %cst_179 = arith.constant 2.500000e-01 : f32
    %672 = vector.broadcast %cst_179 : f32 to vector<8x8xf32>
    %673 = arith.mulf %671, %672 : vector<8x8xf32>
    %674 = vector.extract_strided_slice %49 {offsets = [1, 0], sizes = [1, 8], strides = [1, 1]} : vector<2x8xf32> to vector<1x8xf32>
    %675 = vector.extract_strided_slice %50 {offsets = [8, 0], sizes = [8, 1], strides = [1, 1]} : vector<16x1xf32> to vector<8x1xf32>
    %cst_180 = arith.constant 1.000000e+00 : f32
    %676 = vector.broadcast %cst_180 : f32 to vector<1x8xf32>
    %677 = arith.subf %676, %674 : vector<1x8xf32>
    %cst_181 = arith.constant 9.99999995E+11 : f32
    %678 = vector.broadcast %cst_181 : f32 to vector<1x8xf32>
    %679 = arith.mulf %677, %678 : vector<1x8xf32>
    %cst_182 = arith.constant 1.000000e+00 : f32
    %680 = vector.broadcast %cst_182 : f32 to vector<8x1xf32>
    %681 = arith.subf %680, %675 : vector<8x1xf32>
    %cst_183 = arith.constant 9.99999995E+11 : f32
    %682 = vector.broadcast %cst_183 : f32 to vector<8x1xf32>
    %683 = arith.mulf %681, %682 : vector<8x1xf32>
    %684 = vector.broadcast %679 : vector<1x8xf32> to vector<8x8xf32>
    %685 = vector.broadcast %683 : vector<8x1xf32> to vector<8x8xf32>
    %686 = arith.addf %684, %685 : vector<8x8xf32>
    %687 = arith.addf %686, %627 : vector<8x8xf32>
    %688 = vector.extract_strided_slice %618 {offsets = [8, 0], sizes = [8, 16], strides = [1, 1]} : vector<16x128xf32> to vector<8x16xf32>
    %689 = vector.extract_strided_slice %618 {offsets = [8, 16], sizes = [8, 16], strides = [1, 1]} : vector<16x128xf32> to vector<8x16xf32>
    %690 = vector.extract_strided_slice %618 {offsets = [8, 64], sizes = [8, 16], strides = [1, 1]} : vector<16x128xf32> to vector<8x16xf32>
    %691 = vector.extract_strided_slice %618 {offsets = [8, 80], sizes = [8, 16], strides = [1, 1]} : vector<16x128xf32> to vector<8x16xf32>
    %692 = arith.mulf %688, %619 : vector<8x16xf32>
    %693 = arith.mulf %690, %620 : vector<8x16xf32>
    %694 = arith.addf %692, %693 : vector<8x16xf32>
    %695 = arith.mulf %689, %619 : vector<8x16xf32>
    %696 = arith.mulf %691, %620 : vector<8x16xf32>
    %697 = arith.addf %695, %696 : vector<8x16xf32>
    %698 = arith.truncf %694 : vector<8x16xf32> to vector<8x16xbf16>
    %699 = arith.truncf %697 : vector<8x16xf32> to vector<8x16xbf16>
    %cst_184 = arith.constant dense<0.000000e+00> : vector<8x8xf32>
    %700 = tpu.matmul %698, %699, %cst_184 {dimension_numbers = #tpu.dot_dimension_numbers<[1], [1], [0], [0], [0, 0, 1, 0], [], []>} : vector<8x16xbf16>, vector<8x16xbf16>, vector<8x8xf32> -> vector<8x8xf32>
    %701 = arith.subf %700, %687 : vector<8x8xf32>
    %cst_185 = arith.constant 2.500000e-01 : f32
    %702 = vector.broadcast %cst_185 : f32 to vector<8x8xf32>
    %703 = arith.mulf %701, %702 : vector<8x8xf32>
    %704 = vector.extract_strided_slice %618 {offsets = [8, 32], sizes = [8, 16], strides = [1, 1]} : vector<16x128xf32> to vector<8x16xf32>
    %705 = vector.extract_strided_slice %618 {offsets = [8, 48], sizes = [8, 16], strides = [1, 1]} : vector<16x128xf32> to vector<8x16xf32>
    %706 = vector.extract_strided_slice %618 {offsets = [8, 96], sizes = [8, 16], strides = [1, 1]} : vector<16x128xf32> to vector<8x16xf32>
    %707 = vector.extract_strided_slice %618 {offsets = [8, 112], sizes = [8, 16], strides = [1, 1]} : vector<16x128xf32> to vector<8x16xf32>
    %708 = arith.mulf %704, %619 : vector<8x16xf32>
    %709 = arith.mulf %706, %620 : vector<8x16xf32>
    %710 = arith.addf %708, %709 : vector<8x16xf32>
    %711 = arith.mulf %705, %619 : vector<8x16xf32>
    %712 = arith.mulf %707, %620 : vector<8x16xf32>
    %713 = arith.addf %711, %712 : vector<8x16xf32>
    %714 = arith.truncf %710 : vector<8x16xf32> to vector<8x16xbf16>
    %715 = arith.truncf %713 : vector<8x16xf32> to vector<8x16xbf16>
    %cst_186 = arith.constant dense<0.000000e+00> : vector<8x8xf32>
    %716 = tpu.matmul %714, %715, %cst_186 {dimension_numbers = #tpu.dot_dimension_numbers<[1], [1], [0], [0], [0, 0, 1, 0], [], []>} : vector<8x16xbf16>, vector<8x16xbf16>, vector<8x8xf32> -> vector<8x8xf32>
    %717 = arith.subf %716, %687 : vector<8x8xf32>
    %cst_187 = arith.constant 2.500000e-01 : f32
    %718 = vector.broadcast %cst_187 : f32 to vector<8x8xf32>
    %719 = arith.mulf %717, %718 : vector<8x8xf32>
    %720 = tpu.concatenate %657, %673, %703, %719 in 1 : vector<8x8xf32>, vector<8x8xf32>, vector<8x8xf32>, vector<8x8xf32> -> vector<8x32xf32>
    %c0_188 = arith.constant 0 : index
    %c0_189 = arith.constant 0 : index
    %721 = vector.load %arg8[%c0_188, %c0_189] : memref<8x32xf32, #tpu.memory_space<vmem>>, vector<8x32xf32>
    tpu.vector_store %arg8[%c0_188, %c0_189], %720 {strides = array<i32>} : memref<8x32xf32, #tpu.memory_space<vmem>>, vector<8x32xf32>,
    return
  }
}

</mosaic_0001>

<bundles_post_ra>
// kernel: bert_gp_forward.1
= control target key start
LH: loop header
LB: loop body
LE: loop exit
PB: predicated region body
PF: predicated region fallthrough
CT: control target
= control target key end

     0   :  { %v3950_v0 = vmov 0   ;;  %v3951_v8 = vmov 0.0   ;;  %v3952_v10 = vmov 1   ;;  %v3953_v14 = vmov 2   ;;  %s3956_s11 = smov 88   ;;  %s3957_s12 = smov 96   ;;  %s4806_s0 = inlined_call_operand.vmem [shape: s32[16,3], index: 0, kind: input, shape index: {}]   ;;  %s4807_s3 = inlined_call_operand.vmem [shape: f32[60,32], index: 3, kind: input, shape index: {}]   ;;  %s4808_s5 = inlined_call_operand.vmem [shape: bf16[2,32,192], index: 5, kind: input, shape index: {}]   ;;  %s4809_s4 = inlined_call_operand.vmem [shape: f32[27,128], index: 4, kind: input, shape index: {}]   ;;  %s4810_s1 = inlined_call_operand.vmem [shape: f32[2,8], index: 1, kind: input, shape index: {}]   ;;  %s4811_s6 = inlined_call_operand.vmem [shape: bf16[2,64,32], index: 6, kind: input, shape index: {}]   ;;  %s4812_s7 = inlined_call_operand.vmem [shape: bf16[32,128], index: 7, kind: input, shape index: {}]   ;;  %s4813_s2 = inlined_call_operand.vmem [shape: f32[16,1], index: 2, kind: input, shape index: {}]   ;;  %s4814_s8 = inlined_call_operand.vmem [shape: f32[8,32], index: 8, kind: output, shape index: {}]  }
   0x1   :  { %3799 = vset.pattern.permute.xlu1 %v3950_v0  ;;  %3797 = vset.pattern.permute.xlu0 %v3950_v0  ;;  %v31_v1 = vld [vmem:[%s4806_s0 + $0x8] sm:$0xff]  ;;  %v30_v2 = vld [vmem:[%s4806_s0] sm:$0xff]  ;;  %v78_v5 = vld [vmem:[%s4807_s3 + $0x10] sm:$0xff]  ;;  %vm91_vm0 = vcmask 1043456   ;;  %vm3954_vm1 = vmmov 1   ;;  %v32_v18 = vlaneseq  ;;  %vm84_vm9 = vcmask 490496  }
   0x2   :  { %v76_v3 = vld [vmem:[%s4807_s3] sm:$0xff]  ;;  %38 = vperm.xlu1 %3799, %v31_v1   ;;  %35 = vperm.xlu0 %3797, %v30_v2   ;;  %v77_v4 = vld [vmem:[%s4807_s3 + $0x8] sm:$0xff]  ;;  %v79_v7 = vld [vmem:[%s4807_s3 + $0x18] sm:$0xff]  ;;  %vm172_vm10 = vcmask 261120   ;;  %vm3955_vm11 = vmmov 0   ;;  %s3958_s13 = smov 112  }
   0x3   :  { %v3758_v6 = vpack.c.bf16 %v77_v4, %v76_v3  ;;  %3462 = vmatprep.subr.bf16.mxu1 %v3951_v8  ;;  %v3762_v9 = vpack.c.bf16 %v79_v7, %v78_v5  ;;  %v80_v11 = vld [vmem:[%s4807_s3 + $0x20] sm:$0xff]  ;;  %v81_v12 = vld [vmem:[%s4807_s3 + $0x28] sm:$0xff]  ;;  %v82_v15 = vld [vmem:[%s4807_s3 + $0x30] sm:$0xff]  ;;  %v4050_v19 = vand.u32 127, %v32_v18  ;;  %3466 = vmatprep.mubr.msk.bf16.mxu1 %vm3955_vm11, %v3951_v8  ;;  %s3959_s14 = smov 120   ;;  %s3960_s15 = smov 104  }
   0x4   :  { %v3766_v13 = vpack.c.bf16 %v81_v12, %v80_v11  ;;  %v83_v16 = vld [vmem:[%s4807_s3 + $0x38] sm:$0xf]  ;;  %vm3771_vm2 = vmpackc.low %vm91_vm0, %vm3954_vm1  ;;  %v4068_v52 = vld [vmem:[%s4808_s5] ss:$8 sps:$4 sm:$0xff]   ;;  %s3961_s16 = smov 80   ;;  %s3962_s0 = smov 72  }
   0x5   :  { %3759 = vmatprep.subr.bf16.mxu0 %v3758_v6  ;;  %v3770_v17 = vpack.c.bf16 %v83_v16, %v82_v15  ;;  %v3225_v22 = vadd.s32 4294967246, %v4050_v19  ;;  %3463 = vmatpush3.bf16.msra.mxu1 %v4068_v52  ;;  %v4078_v53 = vld [vmem:[%s4808_s5 + $0x10] ss:$8 sps:$4 sm:$0xff]   ;;  %v3234_v61 = vld [vmem:[%s4809_s4] ss:$0 sm:$0xff]  ;;  %vm302_vm12 = vcmask 64512  }
   0x6   :  { %3800 = vset.pattern.permute.xlu1 %v3952_v10  ;;  %3798 = vset.pattern.permute.xlu0 %v3952_v10  ;;  %v3237_v7 = vld [vmem:[%s4809_s4 + $0x2] ss:$0 sm:$0xff]  ;;  %s3963_s19 = smov 56   ;;  %s3964_s20 = smov 64   ;;  %vm764_vm13 = vcmask 130048   ;;  %vm766_vm14 = vcmask 195584  }
   0x7   :  { %51 = vperm.xlu1 %3800, %v31_v1   ;;  %48 = vperm.xlu0 %3798, %v30_v2   ;;  %v3228_v25 = vadd.s32 4294967288, %v3225_v22  ;;  %s3965_s21 = smov 48   ;;  %s3966_s22 = smov 40   ;;  %vm1434_vm15 = vcmask 523264  }
   0x8   :  { %3761 = vmatpush3.bf16.msra.mxu0 %v3758_v6  ;;  %3464 = vmatprep.subr.bf16.mxu1 %v3951_v8  ;;  %s3967_s26 = smov 32   ;;  %s3968_s27 = smov 8  }
   0x9   :  { %3763 = vmatprep.subr.bf16.mxu0 %v3762_v9  ;;  %3465 = vmatpush3.bf16.msra.mxu1 %v4078_v53  ;;  %s3969_s28 = smov 16   ;;  %s3970_s29 = smov 24  }
   0xa   :  { %3470 = vmatprep.subr.bf16.mxu1 %v3951_v8 }
   0xb   :  { %3801 = vset.pattern.permute.xlu1 %v3953_v14  ;;  %3802 = vset.pattern.permute.xlu0 %v3953_v14 }
   0xc   :  { %63 = vperm.xlu1 %3801, %v30_v2   ;;  %66 = vperm.xlu0 %3802, %v31_v1  }
   0xd   :  { %3765 = vmatpush3.bf16.msra.mxu0 %v3762_v9 }
   0xe   :  { %3767 = vmatprep.subr.bf16.mxu0 %v3766_v13 }
  0x10   :  { %3833 = vset.pattern.permute.xlu0 %v3950_v0  ;;  %3834 = vset.pattern.permute.xlu1 %v3950_v0  ;;  %v3235_v0 = vld [vmem:[%s4809_s4 + $0x1] ss:$0 sm:$0xff] }
  0x11   :  { %3769 = vmatpush3.bf16.msra.mxu0 %v3766_v13 }
  0x12   :  { %3772 = vmatprep.subr.msk.bf16.mxu0 %vm3771_vm2, %v3770_v17 }
  0x15   :  { %3775 = vmatpush3.bf16.msk.msra.mxu0 %vm3771_vm2, %v3770_v17 }
  0x16   :  { %3476 = vmatprep.subr.bf16.mxu0 %v3951_v8 }
  0x81   :  { %v39_v20 = vpop.permute.xlu1 %38  ;;  %v36_v21 = vpop.permute.xlu0 %35 }
  0x82   :  { %vm41_vm5 = vcmp.eq.s32.totalorder %v39_v20, %v4050_v19  ;;  %vm40_vm6 = vcmp.eq.s32.totalorder %v36_v21, %v4050_v19 }
  0x83   :  { %v3224_v28 = vsel %vm41_vm5, 1.0, %v3951_v8  ;;  %v3223_v29 = vsel %vm40_vm6, 1.0, %v3951_v8 }
  0x86   :  { %v52_v23 = vpop.permute.xlu1 %51  ;;  %v49_v24 = vpop.permute.xlu0 %48 }
  0x87   :  { %vm54_vm3 = vcmp.eq.s32.totalorder %v52_v23, %v3225_v22  ;;  %vm53_vm4 = vcmp.eq.s32.totalorder %v49_v24, %v3225_v22 }
  0x88   :  { %v3227_v26 = vsel %vm54_vm3, 1.0, %v3951_v8  ;;  %v3226_v27 = vsel %vm53_vm4, 1.0, %v3951_v8 }
  0x89   :  { %v60_v32 = vadd.f32 %v3227_v26, %v3224_v28  ;;  %v59_v33 = vadd.f32 %v3226_v27, %v3223_v29 }
  0x8b   :  { %v64_v30 = vpop.permute.xlu1 %63  ;;  %v67_v31 = vpop.permute.xlu0 %66 }
  0x8c   :  { %vm68_vm7 = vcmp.eq.s32.totalorder %v64_v30, %v3228_v25  ;;  %vm69_vm8 = vcmp.eq.s32.totalorder %v67_v31, %v3228_v25 }
  0x8d   :  { %v3230_v34 = vsel %vm69_vm8, 1.0, %v3951_v8  ;;  %v3229_v35 = vsel %vm68_vm7, 1.0, %v3951_v8 }
  0x8e   :  { %v75_v36 = vadd.f32 %v3230_v34, %v60_v32  ;;  %v74_v37 = vadd.f32 %v3229_v35, %v59_v33 }
  0x90   :  { %3459 = vmatprep.mubr.msk.f32.mxu0 %vm84_vm9, %v74_v37 }
  0x91   :  { %3460 = vmatmul.mubr.msk.f32.vlgmr.msra.gmra.mrb[0].mxu0 %vm84_vm9, %v75_v36 }
  0x92   :  { %3478 = vmatprep.mubr.msk.bf16.mxu0 %vm3955_vm11, %v3951_v8 }
 0x164   :  { %v3461_v38 = vpop.f32.mrb[0].mxu0 }
 0x165   :  { %v161_v39 = vpop.f32.mrb[1].mxu0  ;;  %v176_v40 = vsel %vm172_vm10, %v3461_v38, 0.0 }
 0x166   :  { %177 = vadd.xlane.f32.xlu0 %v176_v40  ;;  %v173_v41 = vsel %vm172_vm10, %v161_v39, 0.0 }
 0x167   :  { %174 = vadd.xlane.f32.xlu1 %v173_v41  ;;  %v212_v41 = vld [vmem:[%s4810_s1] sm:$0x3] }
 0x1f3   :  { %v178_v42 = vpop.xlane.xlu0 %177 }
 0x1f4   :  { %v181_v43 = vmul.f32 0.03125, %v178_v42  ;;  %v175_v44 = vpop.xlane.xlu1 %174  ;;  %v3236_v42 = vadd.f32 -1.0, %v212_v41 }
 0x1f5   :  { %v180_v45 = vmul.f32 0.03125, %v175_v44 }
 0x1f6   :  { %v183_v46 = vsub.f32 %v3461_v38, %v181_v43  ;;  %v4179_v43 = vshrl.u32 %v32_v18, 7  ;;  %v216_v44 = vmul.f32 10000.0, %v3236_v42 }
 0x1f7   :  { %v182_v47 = vsub.f32 %v161_v39, %v180_v45 }
 0x1f8   :  { %v185_v48 = vmul.f32 %v183_v46, %v183_v46  ;;  %v352_v45 = vsub.s32 0, %v4179_v43 }
 0x1f9   :  { %v184_v49 = vmul.f32 %v182_v47, %v182_v47 }
 0x1fa   :  { %v189_v50 = vsel %vm172_vm10, %v185_v48, 0.0 }
 0x1fb   :  { %190 = vadd.xlane.f32.xlu0 %v189_v50  ;;  %v186_v51 = vsel %vm172_vm10, %v184_v49, 0.0 }
 0x1fc   :  { %187 = vadd.xlane.f32.xlu1 %v186_v51 }
 0x288   :  { %v191_v54 = vpop.xlane.xlu0 %190 }
 0x289   :  { %v193_v55 = vmul.f32 0.03125, %v191_v54  ;;  %v188_v56 = vpop.xlane.xlu1 %187 }
 0x28a   :  { %v192_v57 = vmul.f32 0.03125, %v188_v56 }
 0x28b   :  { %v195_v58 = vadd.f32 1e-12, %v193_v55 }
 0x28c   :  { %v194_v59 = vadd.f32 1e-12, %v192_v57 }
 0x28d   :  { %3857 = vrsqrt.f32 %v195_v58 }
 0x28e   :  { %3859 = vrsqrt.f32 %v194_v59 }
 0x297   :  { %v3858_v60 = vpop.eup %3857 }
 0x298   :  { %v3860_v62 = vpop.eup %3859  ;;  %v199_v63 = vmul.f32 %v3858_v60, %v183_v46  ;;  %v4184_v46 = vrot.slane %v216_v44, %v352_v45 }
 0x299   :  { %v198_v1 = vmul.f32 %v3860_v62, %v182_v47 }
 0x29a   :  { %v205_v2 = vmul.f32 %v3234_v61, %v199_v63 }
 0x29b   :  { %v204_v3 = vmul.f32 %v3234_v61, %v198_v1 }
 0x29c   :  { %v4089_v4 = vadd.f32 %v3235_v0, %v205_v2 }
 0x29d   :  { %v4091_v5 = vadd.f32 %v3235_v0, %v204_v3 }
 0x29f   :  { %v237_v6 = vpack.c.bf16 %v4089_v4, %v4091_v5 }
 0x2a1   :  { %3467 = vmatmul.mubr.msk.bf16.vlgmr.msra.gmra.mrb[0].mxu1 %vm172_vm10, %v237_v6 }
 0x2a2   :  { %3472 = vmatprep.mubr.msk.bf16.mxu1 %vm3955_vm11, %v3951_v8 }
 0x374   :  { %v291_v9 = vpop.f32.mrb[0].mxu1 }
 0x375   :  { %v292_v10 = vadd.f32 %v3237_v7, %v291_v9  ;;  %v3468_v11 = vpop.f32.mrb[1].mxu1 }
 0x376   :  { %v294_v12 = vpop.f32.mrb[2].mxu1 }
 0x377   :  { %v4101_v13 = vpack.c.bf16 %v292_v10, %v292_v10  ;;  %v3469_v14 = vpop.f32.mrb[3].mxu1  ;;  %v295_v15 = vadd.f32 %v3237_v7, %v294_v12  ;;  %v821_v12 = vsub.s32 1, %v4179_v43 }
 0x379   :  { %417 = vrot.lane.b32.xlu0 %v4101_v13, %s3956_s11  ;;  %300 = vrot.lane.b32.xlu1 %v4101_v13, %s3957_s12  ;;  %v4115_v16 = vpack.c.bf16 %v295_v15, %v295_v15 }
 0x37d   :  { %527 = vrot.lane.b32.xlu0 %v4101_v13, %s3958_s13  ;;  %415 = vrot.lane.b32.xlu1 %v4101_v13, %s3959_s14 }
 0x381   :  { %639 = vrot.lane.b32.xlu0 %v4101_v13, %s3960_s15  ;;  %529 = vrot.lane.b32.xlu1 %v4101_v13, %s3961_s16 }
 0x385   :  { %641 = vrot.lane.b32.xlu1 %v4101_v13, %s3962_s0  ;;  %886 = vrot.lane.b32.xlu0 %v4115_v16, %s3956_s11 }
 0x389   :  { %998 = vrot.lane.b32.xlu0 %v4115_v16, %s3961_s16  ;;  %770 = vrot.lane.b32.xlu1 %v4115_v16, %s3957_s12 }
 0x38d   :  { %1110 = vrot.lane.b32.xlu0 %v4115_v16, %s3962_s0  ;;  %884 = vrot.lane.b32.xlu1 %v4115_v16, %s3959_s14 }
 0x391   :  { %996 = vrot.lane.b32.xlu1 %v4115_v16, %s3958_s13 }
 0x395   :  { %1108 = vrot.lane.b32.xlu1 %v4115_v16, %s3960_s15 }
 0x3eb   :  { %v301_v17 = vpop.permute.xlu1 %300  ;;  %v418_v21 = vpop.permute.xlu0 %417 }
 0x3ec   :  { %v307_v20 = vsel %vm302_vm12, %v301_v17, 0  ;;  %v423_v23 = vsel %vm302_vm12, %v418_v21, 0 }
 0x3ed   :  { %3471 = vmatpush3.bf16.xpose.msra.mxu1 %v307_v20  ;;  %v4206_v20 = vrot.slane %v216_v44, %v821_v12 }
 0x3ee   :  { %3482 = vmatprep.subr.bf16.mxu1 %v3951_v8 }
 0x3ef   :  { %v416_v22 = vpop.permute.xlu1 %415  ;;  %v528_v27 = vpop.permute.xlu0 %527 }
 0x3f3   :  { %v530_v24 = vpop.permute.xlu1 %529  ;;  %v640_v30 = vpop.permute.xlu0 %639 }
 0x3f4   :  { %3473 = vmatmul.mubr.msk.bf16.vlgmr.msra.gmra.mrb[4].mxu1 %vm302_vm12, %v4101_v13  ;;  %v535_v25 = vsel %vm302_vm12, %v530_v24, 0 }
 0x3f5   :  { %3483 = vmatpush3.bf16.xpose.msra.mxu1 %v423_v23  ;;  %3484 = vmatprep.mubr.msk.bf16.mxu1 %vm3955_vm11, %v3951_v8 }
 0x3f6   :  { %3494 = vmatprep.subr.bf16.mxu1 %v3951_v8 }
 0x3f7   :  { %v642_v26 = vpop.permute.xlu1 %641  ;;  %v887_v32 = vpop.permute.xlu0 %886 }
 0x3f8   :  { %v647_v28 = vsel %vm302_vm12, %v642_v26, 0  ;;  %v892_v33 = vsel %vm302_vm12, %v887_v32, 0 }
 0x3fb   :  { %v771_v29 = vpop.permute.xlu1 %770  ;;  %v999_v34 = vpop.permute.xlu0 %998 }
 0x3fc   :  { %3485 = vmatmul.mubr.msk.bf16.vlgmr.msra.gmra.mrb[8].mxu1 %vm302_vm12, %v416_v22  ;;  %v776_v31 = vsel %vm302_vm12, %v771_v29, 0  ;;  %v1004_v36 = vsel %vm302_vm12, %v999_v34, 0 }
 0x3fd   :  { %3495 = vmatpush3.bf16.xpose.msra.mxu1 %v535_v25  ;;  %3496 = vmatprep.mubr.msk.bf16.mxu1 %vm3955_vm11, %v3951_v8 }
 0x3fe   :  { %3506 = vmatprep.subr.bf16.mxu1 %v3951_v8 }
 0x3ff   :  { %v885_v35 = vpop.permute.xlu1 %884  ;;  %v1111_v37 = vpop.permute.xlu0 %1110 }
 0x400   :  { %v1116_v39 = vsel %vm302_vm12, %v1111_v37, 0 }
 0x403   :  { %v997_v38 = vpop.permute.xlu1 %996 }
 0x404   :  { %3497 = vmatmul.mubr.msk.bf16.vlgmr.msra.gmra.mrb[12].mxu1 %vm302_vm12, %v528_v27 }
 0x405   :  { %3507 = vmatpush3.bf16.xpose.msra.mxu1 %v647_v28  ;;  %3508 = vmatprep.mubr.msk.bf16.mxu1 %vm3955_vm11, %v3951_v8 }
 0x406   :  { %3518 = vmatprep.subr.bf16.mxu1 %v3951_v8 }
 0x407   :  { %v1109_v40 = vpop.permute.xlu1 %1108 }
 0x40c   :  { %3509 = vmatmul.mubr.msk.bf16.vlgmr.msra.gmra.mrb[16].mxu1 %vm302_vm12, %v640_v30 }
 0x40d   :  { %3519 = vmatpush3.bf16.xpose.msra.mxu1 %v776_v31  ;;  %3520 = vmatprep.mubr.msk.bf16.mxu1 %vm3955_vm11, %v3951_v8 }
 0x40e   :  { %3530 = vmatprep.subr.bf16.mxu1 %v3951_v8 }
 0x414   :  { %3521 = vmatmul.mubr.msk.bf16.vlgmr.msra.gmra.mrb[20].mxu1 %vm302_vm12, %v4115_v16 }
 0x415   :  { %3531 = vmatpush3.bf16.xpose.msra.mxu1 %v892_v33  ;;  %3532 = vmatprep.mubr.msk.bf16.mxu1 %vm3955_vm11, %v3951_v8 }
 0x416   :  { %3542 = vmatprep.subr.bf16.mxu1 %v3951_v8 }
 0x41c   :  { %3533 = vmatmul.mubr.msk.bf16.vlgmr.msra.gmra.mrb[24].mxu1 %vm302_vm12, %v885_v35 }
 0x41d   :  { %3543 = vmatpush3.bf16.xpose.msra.mxu1 %v1004_v36  ;;  %3544 = vmatprep.mubr.msk.bf16.mxu1 %vm3955_vm11, %v3951_v8 }
 0x41e   :  { %3554 = vmatprep.subr.bf16.mxu1 %v3951_v8 }
 0x424   :  { %3545 = vmatmul.mubr.msk.bf16.vlgmr.msra.gmra.mrb[28].mxu1 %vm302_vm12, %v997_v38 }
 0x425   :  { %3555 = vmatpush3.bf16.xpose.msra.mxu1 %v1116_v39  ;;  %3556 = vmatprep.mubr.msk.bf16.mxu1 %vm3955_vm11, %v3951_v8 }
 0x426   :  { %3566 = vmatprep.subr.bf16.mxu1 %v3951_v8 }
 0x42c   :  { %3557 = vmatmul.mubr.msk.bf16.vlgmr.msra.gmra.mrb[32].mxu1 %vm302_vm12, %v1109_v40 }
 0x42d   :  { %3570 = vmatprep.mubr.msk.bf16.mxu1 %vm3955_vm11, %v3951_v8 }
 0x4c7   :  { %v343_v47 = vpop.f32.mrb[4].mxu1 }
 0x4c8   :  { %v349_v48 = vmul.f32 0.35355338, %v343_v47  ;;  %v3474_v49 = vpop.f32.mrb[5].mxu1 }
 0x4c9   :  { %v346_v50 = vpop.f32.mrb[6].mxu1 }
 0x4ca   :  { %v3475_v51 = vpop.f32.mrb[7].mxu1  ;;  %v4187_v54 = vadd.f32 %v4184_v46, %v349_v48 }
 0x4cc   :  { %v355_v55 = vsel %vm302_vm12, %v4187_v54, -inf }
 0x4cd   :  { %356 = vmax.xlane.f32.xlu0 %v355_v55 }
 0x4cf   :  { %v459_v18 = vpop.f32.mrb[8].mxu1 }
 0x4d0   :  { %v465_v56 = vmul.f32 0.35355338, %v459_v18  ;;  %v3486_v57 = vpop.f32.mrb[9].mxu1 }
 0x4d1   :  { %v462_v58 = vpop.f32.mrb[10].mxu1 }
 0x4d2   :  { %v3487_v59 = vpop.f32.mrb[11].mxu1  ;;  %v4192_v60 = vadd.f32 %v465_v56, %v4184_v46 }
 0x4d4   :  { %v467_v61 = vsel %vm302_vm12, %v4192_v60, -inf }
 0x4d5   :  { %468 = vmax.xlane.f32.xlu1 %v467_v61 }
 0x4d7   :  { %v571_v62 = vpop.f32.mrb[12].mxu1 }
 0x4d8   :  { %v577_v63 = vmul.f32 0.35355338, %v571_v62  ;;  %v3498_v0 = vpop.f32.mrb[13].mxu1 }
 0x4d9   :  { %v574_v1 = vpop.f32.mrb[14].mxu1 }
 0x4da   :  { %v3499_v2 = vpop.f32.mrb[15].mxu1  ;;  %v578_v3 = vadd.f32 %v577_v63, %v4184_v46 }
 0x4dc   :  { %v579_v6 = vsel %vm302_vm12, %v578_v3, -inf }
 0x4dd   :  { %580 = vmax.xlane.f32.xlu0 %v579_v6 }
 0x4df   :  { %v683_v7 = vpop.f32.mrb[16].mxu1 }
 0x4e0   :  { %v689_v9 = vmul.f32 0.35355338, %v683_v7  ;;  %v3510_v10 = vpop.f32.mrb[17].mxu1 }
 0x4e1   :  { %v686_v11 = vpop.f32.mrb[18].mxu1 }
 0x4e2   :  { %v3511_v14 = vpop.f32.mrb[19].mxu1  ;;  %v4200_v15 = vadd.f32 %v689_v9, %v4184_v46 }
 0x4e4   :  { %v691_v17 = vsel %vm302_vm12, %v4200_v15, -inf }
 0x4e5   :  { %692 = vmax.xlane.f32.xlu0 %v691_v17 }
 0x4e7   :  { %v812_v21 = vpop.f32.mrb[20].mxu1 }
 0x4e8   :  { %v818_v22 = vmul.f32 0.35355338, %v812_v21  ;;  %v3522_v23 = vpop.f32.mrb[21].mxu1 }
 0x4e9   :  { %v815_v24 = vpop.f32.mrb[22].mxu1 }
 0x4ea   :  { %v3523_v25 = vpop.f32.mrb[23].mxu1  ;;  %v4209_v26 = vadd.f32 %v4206_v20, %v818_v22 }
 0x4ec   :  { %v824_v27 = vsel %vm302_vm12, %v4209_v26, -inf }
 0x4ed   :  { %825 = vmax.xlane.f32.xlu1 %v824_v27 }
 0x4ef   :  { %v928_v28 = vpop.f32.mrb[24].mxu1 }
 0x4f0   :  { %v934_v29 = vmul.f32 0.35355338, %v928_v28  ;;  %v3534_v30 = vpop.f32.mrb[25].mxu1 }
 0x4f1   :  { %v931_v31 = vpop.f32.mrb[26].mxu1 }
 0x4f2   :  { %v3535_v32 = vpop.f32.mrb[27].mxu1  ;;  %v4214_v33 = vadd.f32 %v934_v29, %v4206_v20 }
 0x4f4   :  { %v936_v34 = vsel %vm302_vm12, %v4214_v33, -inf }
 0x4f5   :  { %937 = vmax.xlane.f32.xlu0 %v936_v34 }
 0x4f7   :  { %v1040_v35 = vpop.f32.mrb[28].mxu1 }
 0x4f8   :  { %v1046_v36 = vmul.f32 0.35355338, %v1040_v35  ;;  %v3546_v37 = vpop.f32.mrb[29].mxu1 }
 0x4f9   :  { %v1043_v38 = vpop.f32.mrb[30].mxu1 }
 0x4fa   :  { %v3547_v39 = vpop.f32.mrb[31].mxu1  ;;  %v1047_v40 = vadd.f32 %v1046_v36, %v4206_v20 }
 0x4fc   :  { %v1048_v41 = vsel %vm302_vm12, %v1047_v40, -inf }
 0x4fd   :  { %1049 = vmax.xlane.f32.xlu1 %v1048_v41 }
 0x4ff   :  { %v1152_v42 = vpop.f32.mrb[32].mxu1 }
 0x500   :  { %v3558_v44 = vpop.f32.mrb[33].mxu1  ;;  %v1158_v49 = vmul.f32 0.35355338, %v1152_v42 }
 0x501   :  { %v1155_v47 = vpop.f32.mrb[34].mxu1 }
 0x502   :  { %v3559_v48 = vpop.f32.mrb[35].mxu1  ;;  %v4225_v50 = vadd.f32 %v1158_v49, %v4206_v20 }
 0x504   :  { %v1160_v51 = vsel %vm302_vm12, %v4225_v50, -inf }
 0x50b   :  { %479 = vrot.lane.b32.xlu0 %v4101_v13, %s3963_s19 }
 0x50e   :  { %367 = vrot.lane.b32.xlu1 %v4101_v13, %s3964_s20 }
 0x52a   :  { %1161 = vmax.xlane.f32.xlu0 %v1160_v51 }
 0x55a   :  { %v357_v55 = vpop.xlane.xlu0 %356 }
 0x55b   :  { %v358_v18 = vsub.f32 %v4187_v54, %v357_v55 }
 0x55d   :  { %v359_v56 = vmul.f32 1.442695, %v358_v18 }
 0x55f   :  { %3861 = vpow2.f32 %v359_v56 }
 0x562   :  { %v469_v57 = vpop.xlane.xlu1 %468 }
 0x563   :  { %v470_v58 = vsub.f32 %v4192_v60, %v469_v57 }
 0x565   :  { %v471_v59 = vmul.f32 1.442695, %v470_v58 }
 0x567   :  { %3863 = vpow2.f32 %v471_v59 }
 0x569   :  { %v4231_v61 = vpop.eup %3861 }
 0x56a   :  { %v581_v62 = vpop.xlane.xlu0 %580  ;;  %v361_v63 = vsel %vm302_vm12, %v4231_v61, 0.0 }
 0x56b   :  { %v582_v0 = vsub.f32 %v578_v3, %v581_v62  ;;  %362 = vadd.xlane.f32.xlu1 %v361_v63 }
 0x56d   :  { %v583_v1 = vmul.f32 1.442695, %v582_v0 }
 0x56f   :  { %3865 = vpow2.f32 %v583_v1 }
 0x571   :  { %v4235_v2 = vpop.eup %3863 }
 0x572   :  { %v473_v54 = vsel %vm302_vm12, %v4235_v2, 0.0  ;;  %v693_v10 = vpop.xlane.xlu0 %692 }
 0x573   :  { %474 = vadd.xlane.f32.xlu0 %v473_v54  ;;  %v694_v14 = vsub.f32 %v4200_v15, %v693_v10 }
 0x575   :  { %v695_v17 = vmul.f32 1.442695, %v694_v14 }
 0x577   :  { %3867 = vpow2.f32 %v695_v17 }
 0x579   :  { %v4239_v6 = vpop.eup %3865 }
 0x57a   :  { %v585_v60 = vsel %vm302_vm12, %v4239_v6, 0.0  ;;  %v826_v7 = vpop.xlane.xlu1 %825 }
 0x57b   :  { %586 = vadd.xlane.f32.xlu1 %v585_v60  ;;  %v827_v21 = vsub.f32 %v4209_v26, %v826_v7 }
 0x57d   :  { %v828_v24 = vmul.f32 1.442695, %v827_v21 }
 0x57f   :  { %3869 = vpow2.f32 %v828_v24 }
 0x581   :  { %v3868_v28 = vpop.eup %3867 }
 0x582   :  { %v938_v22 = vpop.xlane.xlu0 %937  ;;  %v697_v29 = vsel %vm302_vm12, %v3868_v28, 0.0 }
 0x583   :  { %v939_v23 = vsub.f32 %v4214_v33, %v938_v22 }
 0x585   :  { %v940_v27 = vmul.f32 1.442695, %v939_v23 }
 0x586   :  { %v480_v34 = vpop.permute.xlu0 %479 }
 0x587   :  { %3871 = vpow2.f32 %v940_v27  ;;  %v485_v48 = vsel %vm91_vm0, %v480_v34, 0 }
 0x589   :  { %591 = vrot.lane.b32.xlu0 %v4101_v13, %s3965_s21  ;;  %v4253_v30 = vpop.eup %3869 }
 0x58a   :  { %v1050_v3 = vpop.xlane.xlu1 %1049  ;;  %v830_v26 = vsel %vm302_vm12, %v4253_v30, 0.0 }
 0x58b   :  { %v1051_v25 = vsub.f32 %v1047_v40, %v1050_v3 }
 0x58c   :  { %703 = vrot.lane.b32.xlu1 %v4101_v13, %s3966_s22 }
 0x58d   :  { %v1052_v13 = vmul.f32 1.442695, %v1051_v25 }
 0x58e   :  { %v368_v9 = vpop.permute.xlu1 %367 }
 0x58f   :  { %v373_v11 = vsel %vm91_vm0, %v368_v9, 0  ;;  %3873 = vpow2.f32 %v1052_v13 }
 0x590   :  { %3477 = vmatpush3.bf16.msra.mxu0 %v373_v11 }
 0x591   :  { %3488 = vmatprep.subr.bf16.mxu0 %v3951_v8  ;;  %v4255_v15 = vpop.eup %3871 }
 0x592   :  { %v942_v32 = vsel %vm302_vm12, %v4255_v15, 0.0 }
 0x599   :  { %v4259_v31 = vpop.eup %3873 }
 0x59a   :  { %v1054_v33 = vsel %vm302_vm12, %v4259_v31, 0.0 }
 0x5a8   :  { %698 = vadd.xlane.f32.xlu0 %v697_v29 }
 0x5ac   :  { %831 = vadd.xlane.f32.xlu0 %v830_v26 }
 0x5b0   :  { %943 = vadd.xlane.f32.xlu1 %v942_v32  ;;  %1055 = vadd.xlane.f32.xlu0 %v1054_v33  ;;  %v3840_v33 = vld [vmem:[%s4808_s5 + $0x14] ss:$8 sps:$4 sm:$0xff]  }
 0x5b7   :  { %v1162_v35 = vpop.xlane.xlu0 %1161 }
 0x5b8   :  { %v1163_v36 = vsub.f32 %v4225_v50, %v1162_v35 }
 0x5ba   :  { %v1164_v37 = vmul.f32 1.442695, %v1163_v36 }
 0x5bc   :  { %3875 = vpow2.f32 %v1164_v37 }
 0x5c1   :  { %948 = vrot.lane.b32.xlu1 %v4115_v16, %s3963_s19 }
 0x5c5   :  { %1060 = vrot.lane.b32.xlu1 %v4115_v16, %s3965_s21 }
 0x5c6   :  { %v4270_v38 = vpop.eup %3875 }
 0x5c7   :  { %v1166_v39 = vsel %vm302_vm12, %v4270_v38, 0.0 }
 0x5c8   :  { %1167 = vadd.xlane.f32.xlu0 %v1166_v39 }
 0x5c9   :  { %1172 = vrot.lane.b32.xlu1 %v4115_v16, %s3966_s22 }
 0x5cd   :  { %1240 = vrot.lane.b32.xlu1 %v4068_v52, %s3967_s26 }
 0x5de   :  { %836 = vrot.lane.b32.xlu0 %v4115_v16, %s3964_s20 }
 0x5f8   :  { %v363_v40 = vpop.xlane.xlu1 %362 }
 0x5f9   :  { %3877 = vrcp.f32 %v363_v40 }
 0x600   :  { %v475_v41 = vpop.xlane.xlu0 %474 }
 0x601   :  { %3879 = vrcp.f32 %v475_v41 }
 0x603   :  { %v3878_v42 = vpop.eup %3877 }
 0x604   :  { %v365_v44 = vmul.f32 %v3878_v42, %v4231_v61  ;;  %v592_v51 = vpop.permute.xlu0 %591 }
 0x605   :  { %v597_v18 = vsel %vm91_vm0, %v592_v51, 0 }
 0x606   :  { %v366_v47 = vpack.c.bf16 %v365_v44, %v365_v44 }
 0x608   :  { %3479 = vmatmul.mubr.msk.bf16.vlgmr.msra.gmra.mrb[4].mxu0 %vm302_vm12, %v366_v47  ;;  %v587_v49 = vpop.xlane.xlu1 %586 }
 0x609   :  { %3489 = vmatpush3.bf16.msra.mxu0 %v485_v48  ;;  %3881 = vrcp.f32 %v587_v49  ;;  %3490 = vmatprep.mubr.msk.bf16.mxu0 %vm3955_vm11, %v3951_v8 }
 0x60a   :  { %3500 = vmatprep.subr.bf16.mxu0 %v3951_v8 }
 0x60b   :  { %v3880_v16 = vpop.eup %3879 }
 0x60c   :  { %v477_v50 = vmul.f32 %v3880_v16, %v4235_v2  ;;  %v704_v58 = vpop.permute.xlu1 %703 }
 0x60d   :  { %v709_v61 = vsel %vm91_vm0, %v704_v58, 0 }
 0x60e   :  { %v478_v55 = vpack.c.bf16 %v477_v50, %v477_v50 }
 0x610   :  { %3491 = vmatmul.mubr.msk.bf16.vlgmr.msra.gmra.mrb[8].mxu0 %vm302_vm12, %v478_v55 }
 0x611   :  { %3501 = vmatpush3.bf16.msra.mxu0 %v597_v18  ;;  %3502 = vmatprep.mubr.msk.bf16.mxu0 %vm3955_vm11, %v3951_v8 }
 0x612   :  { %3512 = vmatprep.subr.bf16.mxu0 %v3951_v8 }
 0x613   :  { %v3882_v56 = vpop.eup %3881 }
 0x614   :  { %v589_v57 = vmul.f32 %v3882_v56, %v4239_v6 }
 0x616   :  { %v590_v59 = vpack.c.bf16 %v589_v57, %v589_v57 }
 0x618   :  { %3503 = vmatmul.mubr.msk.bf16.vlgmr.msra.gmra.mrb[12].mxu0 %vm302_vm12, %v590_v59 }
 0x619   :  { %3513 = vmatpush3.bf16.msra.mxu0 %v709_v61  ;;  %3514 = vmatprep.mubr.msk.bf16.mxu0 %vm3955_vm11, %v3951_v8 }
 0x61a   :  { %3524 = vmatprep.subr.bf16.mxu0 %v3951_v8 }
 0x635   :  { %v699_v62 = vpop.xlane.xlu0 %698 }
 0x636   :  { %3883 = vrcp.f32 %v699_v62 }
 0x639   :  { %v832_v2 = vpop.xlane.xlu0 %831 }
 0x63a   :  { %3885 = vrcp.f32 %v832_v2 }
 0x63d   :  { %v944_v54 = vpop.xlane.xlu1 %943  ;;  %v1056_v6 = vpop.xlane.xlu0 %1055 }
 0x63e   :  { %3887 = vrcp.f32 %v944_v54 }
 0x63f   :  { %3889 = vrcp.f32 %v1056_v6 }
 0x640   :  { %v3884_v63 = vpop.eup %3883 }
 0x641   :  { %v701_v0 = vmul.f32 %v3884_v63, %v3868_v28  ;;  %v949_v11 = vpop.permute.xlu1 %948 }
 0x642   :  { %v954_v21 = vsel %vm91_vm0, %v949_v11, 0 }
 0x643   :  { %v702_v1 = vpack.c.bf16 %v701_v0, %v701_v0 }
 0x644   :  { %v3886_v60 = vpop.eup %3885 }
 0x645   :  { %3515 = vmatmul.mubr.msk.bf16.vlgmr.msra.gmra.mrb[16].mxu0 %vm302_vm12, %v702_v1  ;;  %v834_v3 = vmul.f32 %v3886_v60, %v4253_v30  ;;  %v1061_v23 = vpop.permute.xlu1 %1060 }
 0x646   :  { %3526 = vmatprep.mubr.msk.bf16.mxu0 %vm3955_vm11, %v3951_v8  ;;  %v1066_v27 = vsel %vm91_vm0, %v1061_v23, 0 }
 0x647   :  { %v835_v14 = vpack.c.bf16 %v834_v3, %v834_v3 }
 0x648   :  { %v3888_v17 = vpop.eup %3887 }
 0x649   :  { %v946_v22 = vmul.f32 %v3888_v17, %v4255_v15  ;;  %v3890_v25 = vpop.eup %3889  ;;  %v1173_v28 = vpop.permute.xlu1 %1172 }
 0x64a   :  { %v1058_v13 = vmul.f32 %v3890_v25, %v4259_v31  ;;  %v1178_v15 = vsel %vm91_vm0, %v1173_v28, 0  ;;  %v3837_v31 = vld [vmem:[%s4808_s5 + $0x4] ss:$8 sps:$4 sm:$0xff]  }
 0x64b   :  { %v947_v24 = vpack.c.bf16 %v946_v22, %v946_v22 }
 0x64c   :  { %v1059_v29 = vpack.c.bf16 %v1058_v13, %v1058_v13 }
 0x64d   :  { %v1241_v55 = vpop.permute.xlu1 %1240 }
 0x64e   :  { %3567 = vmatpush3.bf16.msra.mxu1 %v1241_v55 }
 0x64f   :  { %3568 = vmatprep.subr.bf16.mxu1 %v3951_v8 }
 0x655   :  { %v1168_v7 = vpop.xlane.xlu0 %1167 }
 0x656   :  { %3891 = vrcp.f32 %v1168_v7 }
 0x659   :  { %v837_v9 = vpop.permute.xlu0 %836 }
 0x65a   :  { %v842_v10 = vsel %vm91_vm0, %v837_v9, 0 }
 0x65b   :  { %3525 = vmatpush3.bf16.msra.mxu0 %v842_v10 }
 0x65c   :  { %3536 = vmatprep.subr.bf16.mxu0 %v3951_v8 }
 0x65e   :  { %3527 = vmatmul.mubr.msk.bf16.vlgmr.msra.gmra.mrb[20].mxu0 %vm302_vm12, %v835_v14 }
 0x65f   :  { %3537 = vmatpush3.bf16.msra.mxu0 %v954_v21  ;;  %3538 = vmatprep.mubr.msk.bf16.mxu0 %vm3955_vm11, %v3951_v8 }
 0x660   :  { %3548 = vmatprep.subr.bf16.mxu0 %v3951_v8  ;;  %v3892_v30 = vpop.eup %3891 }
 0x661   :  { %v1170_v26 = vmul.f32 %v3892_v30, %v4270_v38 }
 0x663   :  { %v1171_v32 = vpack.c.bf16 %v1170_v26, %v1170_v26 }
 0x666   :  { %3539 = vmatmul.mubr.msk.bf16.vlgmr.msra.gmra.mrb[24].mxu0 %vm302_vm12, %v947_v24 }
 0x667   :  { %3549 = vmatpush3.bf16.msra.mxu0 %v1066_v27  ;;  %3550 = vmatprep.mubr.msk.bf16.mxu0 %vm3955_vm11, %v3951_v8 }
 0x668   :  { %3560 = vmatprep.subr.bf16.mxu0 %v3951_v8 }
 0x66e   :  { %3551 = vmatmul.mubr.msk.bf16.vlgmr.msra.gmra.mrb[28].mxu0 %vm302_vm12, %v1059_v29 }
 0x66f   :  { %3561 = vmatpush3.bf16.msra.mxu0 %v1178_v15  ;;  %3562 = vmatprep.mubr.msk.bf16.mxu0 %vm3955_vm11, %v3951_v8 }
 0x670   :  { %3574 = vmatprep.subr.bf16.mxu0 %v3951_v8 }
 0x676   :  { %3563 = vmatmul.mubr.msk.bf16.vlgmr.msra.gmra.mrb[32].mxu0 %vm302_vm12, %v1171_v32  ;;  %v3257_v32 = vld [vmem:[%s4809_s4 + $0x3] ss:$0 sm:$0xff] }
 0x677   :  { %3575 = vmatpush3.bf16.msra.mxu0 %v3837_v31  ;;  %3578 = vmatprep.mubr.msk.bf16.mxu0 %vm3955_vm11, %v3951_v8 }
 0x678   :  { %3576 = vmatprep.subr.bf16.mxu0 %v3951_v8 }
 0x67b   :  { %3577 = vmatpush3.bf16.msra.mxu0 %v3840_v33 }
 0x67c   :  { %3594 = vmatprep.subr.bf16.mxu0 %v3951_v8 }
 0x6db   :  { %v409_v34 = vpop.f32.mrb[4].mxu0 }
 0x6dc   :  { %v3480_v35 = vpop.f32.mrb[5].mxu0 }
 0x6dd   :  { %v412_v36 = vpop.f32.mrb[6].mxu0 }
 0x6de   :  { %v3481_v37 = vpop.f32.mrb[7].mxu0 }
 0x6e3   :  { %v521_v38 = vpop.f32.mrb[8].mxu0 }
 0x6e4   :  { %v3492_v39 = vpop.f32.mrb[9].mxu0 }
 0x6e5   :  { %v524_v40 = vpop.f32.mrb[10].mxu0 }
 0x6e6   :  { %v3493_v41 = vpop.f32.mrb[11].mxu0 }
 0x6eb   :  { %v633_v42 = vpop.f32.mrb[12].mxu0 }
 0x6ec   :  { %v3504_v44 = vpop.f32.mrb[13].mxu0 }
 0x6ed   :  { %v636_v47 = vpop.f32.mrb[14].mxu0 }
 0x6ee   :  { %v3505_v48 = vpop.f32.mrb[15].mxu0 }
 0x718   :  { %v745_v49 = vpop.f32.mrb[16].mxu0 }
 0x719   :  { %v3516_v16 = vpop.f32.mrb[17].mxu0 }
 0x71a   :  { %v748_v50 = vpop.f32.mrb[18].mxu0 }
 0x71b   :  { %v3517_v51 = vpop.f32.mrb[19].mxu0 }
 0x731   :  { %v878_v52 = vpop.f32.mrb[20].mxu0 }
 0x732   :  { %v3528_v18 = vpop.f32.mrb[21].mxu0 }
 0x733   :  { %v881_v56 = vpop.f32.mrb[22].mxu0 }
 0x734   :  { %v3529_v57 = vpop.f32.mrb[23].mxu0 }
 0x739   :  { %v990_v58 = vpop.f32.mrb[24].mxu0 }
 0x73a   :  { %v3803_v59 = vpack.i.bf16 %v990_v58, %v521_v38  ;;  %v3540_v61 = vpop.f32.mrb[25].mxu0 }
 0x73b   :  { %v993_v62 = vpop.f32.mrb[26].mxu0 }
 0x73c   :  { %3804 = vrot.lane.b32.xlu1 %v3803_v59, %s3968_s27  ;;  %v3541_v63 = vpop.f32.mrb[27].mxu0  ;;  %v3259_v62 = vld [vmem:[%s4809_s4 + $0x6] ss:$0 sm:$0xff] }
 0x741   :  { %v1102_v0 = vpop.f32.mrb[28].mxu0 }
 0x742   :  { %v3808_v1 = vpack.i.bf16 %v1102_v0, %v633_v42  ;;  %v3552_v2 = vpop.f32.mrb[29].mxu0 }
 0x743   :  { %v1105_v54 = vpop.f32.mrb[30].mxu0 }
 0x744   :  { %3809 = vrot.lane.b32.xlu0 %v3808_v1, %s3969_s28  ;;  %v3553_v6 = vpop.f32.mrb[31].mxu0  ;;  %v3260_v54 = vld [vmem:[%s4809_s4 + $0x7] ss:$0 sm:$0xff] }
 0x748   :  { %1242 = vrot.lane.b32.xlu0 %v4078_v53, %s3967_s26 }
 0x749   :  { %v1214_v60 = vpop.f32.mrb[32].mxu0 }
 0x74a   :  { %v3813_v7 = vpack.i.bf16 %v1214_v60, %v745_v49  ;;  %v3564_v3 = vpop.f32.mrb[33].mxu0 }
 0x74b   :  { %v1217_v9 = vpop.f32.mrb[34].mxu0 }
 0x74c   :  { %3814 = vrot.lane.b32.xlu1 %v3813_v7, %s3970_s29  ;;  %v3565_v10 = vpop.f32.mrb[35].mxu0  ;;  %v3841_v9 = vld [vmem:[%s4811_s6] sm:$0xff]  }
 0x74d   :  { %v3842_v10 = vld [vmem:[%s4811_s6 + $0x8] sm:$0xff]  }
 0x7ae   :  { %v3805_v14 = vpop.permute.xlu1 %3804 }
 0x7af   :  { %v3807_v21 = vunpack.i.h.bf16 %v3805_v14  ;;  %v3806_v22 = vunpack.i.l.bf16 %v3805_v14  ;;  %v3844_v14 = vld [vmem:[%s4811_s6 + $0x18] sm:$0xff]  }
 0x7b1   :  { %v1232_v25 = vsel %vm302_vm12, %v878_v52, %v3807_v21  ;;  %v763_v27 = vsel %vm302_vm12, %v409_v34, %v3806_v22 }
 0x7b6   :  { %v3810_v11 = vpop.permute.xlu0 %3809 }
 0x7b7   :  { %v3812_v23 = vunpack.i.h.bf16 %v3810_v11  ;;  %v3811_v24 = vunpack.i.l.bf16 %v3810_v11  ;;  %v3843_v11 = vld [vmem:[%s4811_s6 + $0x10] sm:$0xff]  }
 0x7b9   :  { %v1233_v29 = vsel %vm764_vm13, %v1232_v25, %v3812_v23  ;;  %v765_v30 = vsel %vm764_vm13, %v763_v27, %v3811_v24 }
 0x7ba   :  { %v1243_v17 = vpop.permute.xlu0 %1242 }
 0x7bb   :  { %3569 = vmatpush3.bf16.msra.mxu1 %v1243_v17  ;;  %v3261_v17 = vld [vmem:[%s4809_s4 + $0x4] ss:$0 sm:$0xff] }
 0x7bc   :  { %3582 = vmatprep.subr.bf16.mxu1 %v3951_v8 }
 0x7be   :  { %v3815_v53 = vpop.permute.xlu1 %3814 }
 0x7bf   :  { %v3817_v13 = vunpack.i.h.bf16 %v3815_v53  ;;  %v3816_v28 = vunpack.i.l.bf16 %v3815_v53 }
 0x7c1   :  { %v1234_v15 = vsel %vm766_vm14, %v1233_v29, %v3817_v13  ;;  %v767_v26 = vsel %vm766_vm14, %v765_v30, %v3816_v28 }
 0x7c2   :  { %v1235_v31 = vpack.c.bf16 %v1234_v15, %v767_v26 }
 0x7c4   :  { %3571 = vmatmul.mubr.msk.bf16.vlgmr.msra.gmra.mrb[36].mxu1 %vm172_vm10, %v1235_v31 }
 0x7c5   :  { %3590 = vmatprep.mubr.msk.bf16.mxu1 %vm3955_vm11, %v3951_v8  ;;  %3583 = vmatpush3.bf16.msra.mxu1 %v3841_v9 }
 0x7c6   :  { %3584 = vmatprep.subr.bf16.mxu1 %v3951_v8 }
 0x7c9   :  { %3585 = vmatpush3.bf16.msra.mxu1 %v3842_v10 }
 0x7ca   :  { %3586 = vmatprep.subr.bf16.mxu1 %v3951_v8 }
 0x7cd   :  { %3587 = vmatpush3.bf16.msra.mxu1 %v3843_v11 }
 0x7ce   :  { %3588 = vmatprep.subr.bf16.mxu1 %v3951_v8 }
 0x7d1   :  { %3589 = vmatpush3.bf16.msra.mxu1 %v3844_v14  ;;  %v3271_v14 = vld [vmem:[%s4809_s4 + $0x8] ss:$0 sm:$0xff] }
 0x7d2   :  { %3608 = vmatprep.subr.bf16.mxu1 %v3951_v8 }
 0x897   :  { %v1283_v33 = vpop.f32.mrb[36].mxu1 }
 0x898   :  { %v1284_v34 = vadd.f32 %v3257_v32, %v1283_v33  ;;  %v3572_v35 = vpop.f32.mrb[37].mxu1 }
 0x899   :  { %v1286_v36 = vpop.f32.mrb[38].mxu1 }
 0x89a   :  { %v1287_v37 = vadd.f32 %v3257_v32, %v1286_v36  ;;  %v3573_v38 = vpop.f32.mrb[39].mxu1  ;;  %v1290_v39 = vadd.f32 %v1284_v34, %v4091_v5 }
 0x89c   :  { %v1292_v40 = vsel %vm172_vm10, %v1290_v39, 0.0  ;;  %v1291_v41 = vadd.f32 %v1287_v37, %v4089_v4 }
 0x89d   :  { %1293 = vadd.xlane.f32.xlu1 %v1292_v40 }
 0x89e   :  { %v1295_v42 = vsel %vm172_vm10, %v1291_v41, 0.0 }
 0x89f   :  { %1296 = vadd.xlane.f32.xlu0 %v1295_v42 }
 0x92a   :  { %v1294_v44 = vpop.xlane.xlu1 %1293 }
 0x92b   :  { %v1298_v47 = vmul.f32 0.03125, %v1294_v44  ;;  %v3265_v44 = vld [vmem:[%s4809_s4 + $0x5] ss:$0 sm:$0xff] }
 0x92c   :  { %v1297_v48 = vpop.xlane.xlu0 %1296 }
 0x92d   :  { %v1300_v49 = vsub.f32 %v1290_v39, %v1298_v47  ;;  %v1299_v16 = vmul.f32 0.03125, %v1297_v48 }
 0x92f   :  { %v1301_v50 = vsub.f32 %v1291_v41, %v1299_v16  ;;  %v1302_v51 = vmul.f32 %v1300_v49, %v1300_v49 }
 0x931   :  { %v1304_v55 = vsel %vm172_vm10, %v1302_v51, 0.0  ;;  %v1303_v52 = vmul.f32 %v1301_v50, %v1301_v50 }
 0x932   :  { %1305 = vadd.xlane.f32.xlu0 %v1304_v55 }
 0x933   :  { %v1307_v5 = vsel %vm172_vm10, %v1303_v52, 0.0 }
 0x934   :  { %1308 = vadd.xlane.f32.xlu1 %v1307_v5 }
 0x9bf   :  { %v1306_v18 = vpop.xlane.xlu0 %1305 }
 0x9c0   :  { %v1310_v4 = vmul.f32 0.03125, %v1306_v18 }
 0x9c1   :  { %v1309_v56 = vpop.xlane.xlu1 %1308 }
 0x9c2   :  { %v1312_v57 = vadd.f32 1e-12, %v1310_v4  ;;  %v1311_v58 = vmul.f32 0.03125, %v1309_v56 }
 0x9c4   :  { %3893 = vrsqrt.f32 %v1312_v57  ;;  %v1313_v59 = vadd.f32 1e-12, %v1311_v58 }
 0x9c6   :  { %3895 = vrsqrt.f32 %v1313_v59 }
 0x9ce   :  { %v3894_v61 = vpop.eup %3893 }
 0x9cf   :  { %v1316_v63 = vmul.f32 %v3894_v61, %v1300_v49 }
 0x9d0   :  { %v3896_v0 = vpop.eup %3895 }
 0x9d1   :  { %v1322_v1 = vmul.f32 %v3259_v62, %v1316_v63  ;;  %v1317_v2 = vmul.f32 %v3896_v0, %v1301_v50 }
 0x9d3   :  { %v1323_v6 = vmul.f32 %v3259_v62, %v1317_v2  ;;  %v1328_v60 = vadd.f32 %v3260_v54, %v1322_v1  ;;  %v4399_v2 = vld [vmem:[%s4808_s5 + $0x20] ss:$8 sps:$4 sm:$0xff]  }
 0x9d5   :  { %v1329_v7 = vadd.f32 %v3260_v54, %v1323_v6  ;;  %v4405_v54 = vld [vmem:[%s4808_s5 + $0x30] ss:$8 sps:$4 sm:$0xff]  }
 0x9d7   :  { %v1330_v3 = vpack.c.bf16 %v1329_v7, %v1328_v60 }
 0x9d9   :  { %3579 = vmatmul.mubr.msk.bf16.vlgmr.msra.gmra.mrb[36].mxu0 %vm172_vm10, %v1330_v3 }
 0x9da   :  { %3598 = vmatprep.mubr.msk.bf16.mxu0 %vm3955_vm11, %v3951_v8  ;;  %3595 = vmatpush3.bf16.msra.mxu0 %v4399_v2 }
 0x9db   :  { %3596 = vmatprep.subr.bf16.mxu0 %v3951_v8 }
 0x9de   :  { %3597 = vmatpush3.bf16.msra.mxu0 %v4405_v54 }
 0x9df   :  { %3602 = vmatprep.subr.bf16.mxu0 %v3951_v8 }
 0xaac   :  { %v1380_v21 = vpop.f32.mrb[36].mxu0 }
 0xaad   :  { %v1381_v22 = vadd.f32 %v3261_v17, %v1380_v21  ;;  %v3580_v23 = vpop.f32.mrb[37].mxu0 }
 0xaae   :  { %v1383_v24 = vpop.f32.mrb[38].mxu0 }
 0xaaf   :  { %v1387_v53 = vmul.f32 %v1381_v22, %v1381_v22  ;;  %v1384_v25 = vadd.f32 %v3261_v17, %v1383_v24  ;;  %v3581_v27 = vpop.f32.mrb[39].mxu0  ;;  %v3272_v24 = vld [vmem:[%s4809_s4 + $0x9] ss:$0 sm:$0xff] }
 0xab1   :  { %v1389_v13 = vmul.f32 %v1387_v53, %v1381_v22  ;;  %v1388_v28 = vmul.f32 %v1384_v25, %v1384_v25 }
 0xab3   :  { %v1391_v29 = vmul.f32 0.044715, %v1389_v13  ;;  %v1390_v30 = vmul.f32 %v1388_v28, %v1384_v25  ;;  %v3285_v28 = vld [vmem:[%s4809_s4 + $0xa] ss:$0 sm:$0xff] }
 0xab5   :  { %v1393_v15 = vadd.f32 %v1391_v29, %v1381_v22  ;;  %v1392_v26 = vmul.f32 0.044715, %v1390_v30 }
 0xab7   :  { %v1395_v31 = vmul.f32 0.7978846, %v1393_v15  ;;  %v1394_v32 = vadd.f32 %v1392_v26, %v1384_v25 }
 0xab9   :  { %3897 = vtanh.f32 %v1395_v31  ;;  %v1396_v33 = vmul.f32 0.7978846, %v1394_v32 }
 0xabb   :  { %3899 = vtanh.f32 %v1396_v33 }
 0xac3   :  { %v3898_v34 = vpop.eup %3897 }
 0xac4   :  { %v1399_v35 = vadd.f32 1.0, %v3898_v34 }
 0xac5   :  { %v3900_v36 = vpop.eup %3899 }
 0xac6   :  { %v1401_v37 = vmul.f32 0.5, %v1399_v35  ;;  %v1400_v38 = vadd.f32 1.0, %v3900_v36 }
 0xac8   :  { %v1402_v39 = vmul.f32 0.5, %v1400_v38  ;;  %v1403_v40 = vmul.f32 %v1401_v37, %v1381_v22 }
 0xaca   :  { %v1404_v41 = vmul.f32 %v1402_v39, %v1384_v25 }
 0xacc   :  { %v1405_v42 = vpack.c.bf16 %v1404_v41, %v1403_v40 }
 0xace   :  { %3591 = vmatmul.mubr.msk.bf16.vlgmr.msra.gmra.mrb[40].mxu1 %vm1434_vm15, %v1405_v42 }
 0xacf   :  { %3610 = vmatprep.mubr.msk.bf16.mxu1 %vm3955_vm11, %v3951_v8 }
 0xba1   :  { %v1472_v47 = vpop.f32.mrb[40].mxu1 }
 0xba2   :  { %v1473_v48 = vadd.f32 %v3265_v44, %v1472_v47  ;;  %v3592_v49 = vpop.f32.mrb[41].mxu1 }
 0xba3   :  { %v1475_v16 = vpop.f32.mrb[42].mxu1 }
 0xba4   :  { %v1476_v50 = vadd.f32 %v3265_v44, %v1475_v16  ;;  %v3593_v51 = vpop.f32.mrb[43].mxu1  ;;  %v1479_v55 = vadd.f32 %v1473_v48, %v1328_v60 }
 0xba6   :  { %v1481_v52 = vsel %vm172_vm10, %v1479_v55, 0.0  ;;  %v1480_v5 = vadd.f32 %v1476_v50, %v1329_v7 }
 0xba7   :  { %1482 = vadd.xlane.f32.xlu0 %v1481_v52 }
 0xba8   :  { %v1484_v18 = vsel %vm172_vm10, %v1480_v5, 0.0 }
 0xba9   :  { %1485 = vadd.xlane.f32.xlu1 %v1484_v18 }
 0xc34   :  { %v1483_v4 = vpop.xlane.xlu0 %1482 }
 0xc35   :  { %v1487_v56 = vmul.f32 0.03125, %v1483_v4 }
 0xc36   :  { %v1486_v57 = vpop.xlane.xlu1 %1485 }
 0xc37   :  { %v1489_v58 = vsub.f32 %v1479_v55, %v1487_v56  ;;  %v1488_v59 = vmul.f32 0.03125, %v1486_v57 }
 0xc39   :  { %v1490_v61 = vsub.f32 %v1480_v5, %v1488_v59  ;;  %v1491_v62 = vmul.f32 %v1489_v58, %v1489_v58 }
 0xc3b   :  { %v1493_v63 = vsel %vm172_vm10, %v1491_v62, 0.0  ;;  %v1492_v0 = vmul.f32 %v1490_v61, %v1490_v61 }
 0xc3c   :  { %1494 = vadd.xlane.f32.xlu0 %v1493_v63 }
 0xc3d   :  { %v1496_v1 = vsel %vm172_vm10, %v1492_v0, 0.0 }
 0xc3e   :  { %1497 = vadd.xlane.f32.xlu1 %v1496_v1 }
 0xcc9   :  { %v1495_v6 = vpop.xlane.xlu0 %1494 }
 0xcca   :  { %v1499_v60 = vmul.f32 0.03125, %v1495_v6 }
 0xccb   :  { %v1498_v7 = vpop.xlane.xlu1 %1497 }
 0xccc   :  { %v1501_v3 = vadd.f32 1e-12, %v1499_v60  ;;  %v1500_v9 = vmul.f32 0.03125, %v1498_v7 }
 0xcce   :  { %3901 = vrsqrt.f32 %v1501_v3  ;;  %v1502_v10 = vadd.f32 1e-12, %v1500_v9 }
 0xcd0   :  { %3903 = vrsqrt.f32 %v1502_v10 }
 0xcd8   :  { %v3902_v11 = vpop.eup %3901 }
 0xcd9   :  { %v1505_v17 = vmul.f32 %v3902_v11, %v1489_v58 }
 0xcda   :  { %v3904_v21 = vpop.eup %3903 }
 0xcdb   :  { %v1511_v22 = vmul.f32 %v3271_v14, %v1505_v17  ;;  %v1506_v23 = vmul.f32 %v3904_v21, %v1490_v61 }
 0xcdd   :  { %v1512_v53 = vmul.f32 %v3271_v14, %v1506_v23  ;;  %v4416_v25 = vadd.f32 %v3272_v24, %v1511_v22 }
 0xcdf   :  { %v4418_v27 = vadd.f32 %v3272_v24, %v1512_v53 }
 0xce1   :  { %v1541_v13 = vpack.c.bf16 %v4418_v27, %v4416_v25 }
 0xce3   :  { %3599 = vmatmul.mubr.msk.bf16.vlgmr.msra.gmra.mrb[40].mxu0 %vm172_vm10, %v1541_v13 }
 0xce4   :  { %3604 = vmatprep.mubr.msk.bf16.mxu0 %vm3955_vm11, %v3951_v8 }
 0xdb6   :  { %v1595_v29 = vpop.f32.mrb[40].mxu0 }
 0xdb7   :  { %v1596_v30 = vadd.f32 %v3285_v28, %v1595_v29  ;;  %v3600_v15 = vpop.f32.mrb[41].mxu0 }
 0xdb8   :  { %v1598_v26 = vpop.f32.mrb[42].mxu0 }
 0xdb9   :  { %v4428_v31 = vpack.c.bf16 %v1596_v30, %v1596_v30  ;;  %v3601_v32 = vpop.f32.mrb[43].mxu0  ;;  %v1599_v33 = vadd.f32 %v3285_v28, %v1598_v26 }
 0xdbb   :  { %1716 = vrot.lane.b32.xlu1 %v4428_v31, %s3956_s11  ;;  %1604 = vrot.lane.b32.xlu0 %v4428_v31, %s3957_s12  ;;  %v4442_v34 = vpack.c.bf16 %v1599_v33, %v1599_v33 }
 0xdbf   :  { %1714 = vrot.lane.b32.xlu1 %v4428_v31, %s3959_s14  ;;  %1828 = vrot.lane.b32.xlu0 %v4428_v31, %s3961_s16 }
 0xdc3   :  { %1826 = vrot.lane.b32.xlu1 %v4428_v31, %s3958_s13  ;;  %1940 = vrot.lane.b32.xlu0 %v4428_v31, %s3962_s0 }
 0xdc7   :  { %1938 = vrot.lane.b32.xlu1 %v4428_v31, %s3960_s15  ;;  %2067 = vrot.lane.b32.xlu0 %v4442_v34, %s3957_s12 }
 0xdcb   :  { %2179 = vrot.lane.b32.xlu1 %v4442_v34, %s3956_s11  ;;  %2177 = vrot.lane.b32.xlu0 %v4442_v34, %s3959_s14 }
 0xdcf   :  { %2291 = vrot.lane.b32.xlu1 %v4442_v34, %s3961_s16  ;;  %2289 = vrot.lane.b32.xlu0 %v4442_v34, %s3958_s13 }
 0xdd3   :  { %2403 = vrot.lane.b32.xlu1 %v4442_v34, %s3962_s0  ;;  %2401 = vrot.lane.b32.xlu0 %v4442_v34, %s3960_s15 }
 0xe2d   :  { %v1605_v35 = vpop.permute.xlu0 %1604  ;;  %v1717_v37 = vpop.permute.xlu1 %1716 }
 0xe2e   :  { %v1610_v36 = vsel %vm302_vm12, %v1605_v35, 0  ;;  %v1722_v38 = vsel %vm302_vm12, %v1717_v37, 0 }
 0xe2f   :  { %3603 = vmatpush3.bf16.xpose.msra.mxu0 %v1610_v36 }
 0xe30   :  { %3614 = vmatprep.subr.bf16.mxu0 %v3951_v8 }
 0xe31   :  { %v1829_v39 = vpop.permute.xlu0 %1828  ;;  %v1715_v40 = vpop.permute.xlu1 %1714 }
 0xe32   :  { %v1834_v41 = vsel %vm302_vm12, %v1829_v39, 0 }
 0xe35   :  { %v1941_v42 = vpop.permute.xlu0 %1940  ;;  %v1827_v44 = vpop.permute.xlu1 %1826 }
 0xe36   :  { %3605 = vmatmul.mubr.msk.bf16.vlgmr.msra.gmra.mrb[44].mxu0 %vm302_vm12, %v4428_v31  ;;  %v1946_v47 = vsel %vm302_vm12, %v1941_v42, 0 }
 0xe37   :  { %3615 = vmatpush3.bf16.xpose.msra.mxu0 %v1722_v38  ;;  %3616 = vmatprep.mubr.msk.bf16.mxu0 %vm3955_vm11, %v3951_v8 }
 0xe38   :  { %3626 = vmatprep.subr.bf16.mxu0 %v3951_v8 }
 0xe39   :  { %v2068_v48 = vpop.permute.xlu0 %2067  ;;  %v1939_v49 = vpop.permute.xlu1 %1938 }
 0xe3a   :  { %v2073_v16 = vsel %vm302_vm12, %v2068_v48, 0 }
 0xe3d   :  { %v2180_v50 = vpop.permute.xlu1 %2179  ;;  %v2178_v52 = vpop.permute.xlu0 %2177 }
 0xe3e   :  { %3617 = vmatmul.mubr.msk.bf16.vlgmr.msra.gmra.mrb[48].mxu0 %vm302_vm12, %v1715_v40  ;;  %v2185_v51 = vsel %vm302_vm12, %v2180_v50, 0 }
 0xe3f   :  { %3627 = vmatpush3.bf16.xpose.msra.mxu0 %v1834_v41  ;;  %3628 = vmatprep.mubr.msk.bf16.mxu0 %vm3955_vm11, %v3951_v8 }
 0xe40   :  { %3638 = vmatprep.subr.bf16.mxu0 %v3951_v8 }
 0xe41   :  { %v2292_v55 = vpop.permute.xlu1 %2291  ;;  %v2290_v4 = vpop.permute.xlu0 %2289 }
 0xe42   :  { %v2297_v5 = vsel %vm302_vm12, %v2292_v55, 0 }
 0xe45   :  { %v2404_v18 = vpop.permute.xlu1 %2403  ;;  %v2402_v57 = vpop.permute.xlu0 %2401 }
 0xe46   :  { %3629 = vmatmul.mubr.msk.bf16.vlgmr.msra.gmra.mrb[52].mxu0 %vm302_vm12, %v1827_v44  ;;  %v2409_v56 = vsel %vm302_vm12, %v2404_v18, 0 }
 0xe47   :  { %3639 = vmatpush3.bf16.xpose.msra.mxu0 %v1946_v47  ;;  %3640 = vmatprep.mubr.msk.bf16.mxu0 %vm3955_vm11, %v3951_v8 }
 0xe48   :  { %3650 = vmatprep.subr.bf16.mxu0 %v3951_v8 }
 0xe4e   :  { %3641 = vmatmul.mubr.msk.bf16.vlgmr.msra.gmra.mrb[56].mxu0 %vm302_vm12, %v1939_v49 }
 0xe4f   :  { %3651 = vmatpush3.bf16.xpose.msra.mxu0 %v2073_v16  ;;  %3652 = vmatprep.mubr.msk.bf16.mxu0 %vm3955_vm11, %v3951_v8 }
 0xe50   :  { %3662 = vmatprep.subr.bf16.mxu0 %v3951_v8 }
 0xe56   :  { %3653 = vmatmul.mubr.msk.bf16.vlgmr.msra.gmra.mrb[60].mxu0 %vm302_vm12, %v4442_v34 }
 0xe57   :  { %3663 = vmatpush3.bf16.xpose.msra.mxu0 %v2185_v51  ;;  %3664 = vmatprep.mubr.msk.bf16.mxu0 %vm3955_vm11, %v3951_v8 }
 0xe58   :  { %3674 = vmatprep.subr.bf16.mxu0 %v3951_v8 }
 0xe5e   :  { %3665 = vmatmul.mubr.msk.bf16.vlgmr.msra.gmra.mrb[64].mxu0 %vm302_vm12, %v2178_v52 }
 0xe5f   :  { %3675 = vmatpush3.bf16.xpose.msra.mxu0 %v2297_v5  ;;  %3676 = vmatprep.mubr.msk.bf16.mxu0 %vm3955_vm11, %v3951_v8 }
 0xe60   :  { %3686 = vmatprep.subr.bf16.mxu0 %v3951_v8 }
 0xe66   :  { %3677 = vmatmul.mubr.msk.bf16.vlgmr.msra.gmra.mrb[68].mxu0 %vm302_vm12, %v2290_v4 }
 0xe67   :  { %3687 = vmatpush3.bf16.xpose.msra.mxu0 %v2409_v56  ;;  %3688 = vmatprep.mubr.msk.bf16.mxu0 %vm3955_vm11, %v3951_v8 }
 0xe68   :  { %3698 = vmatprep.subr.bf16.mxu0 %v3951_v8 }
 0xe6e   :  { %3689 = vmatmul.mubr.msk.bf16.vlgmr.msra.gmra.mrb[72].mxu0 %vm302_vm12, %v2402_v57 }
 0xe6f   :  { %3702 = vmatprep.mubr.msk.bf16.mxu0 %vm3955_vm11, %v3951_v8 }
 0xf09   :  { %v1646_v58 = vpop.f32.mrb[44].mxu0 }
 0xf0a   :  { %v1652_v59 = vmul.f32 0.35355338, %v1646_v58  ;;  %v3606_v61 = vpop.f32.mrb[45].mxu0 }
 0xf0b   :  { %v1649_v62 = vpop.f32.mrb[46].mxu0 }
 0xf0c   :  { %v3607_v63 = vpop.f32.mrb[47].mxu0  ;;  %v4503_v0 = vadd.f32 %v1652_v59, %v4184_v46 }
 0xf0e   :  { %v1654_v1 = vsel %vm302_vm12, %v4503_v0, -inf }
 0xf0f   :  { %1655 = vmax.xlane.f32.xlu1 %v1654_v1 }
 0xf11   :  { %v1758_v6 = vpop.f32.mrb[48].mxu0 }
 0xf12   :  { %v1764_v60 = vmul.f32 0.35355338, %v1758_v6  ;;  %v3618_v7 = vpop.f32.mrb[49].mxu0 }
 0xf13   :  { %v1761_v3 = vpop.f32.mrb[50].mxu0 }
 0xf14   :  { %v3619_v9 = vpop.f32.mrb[51].mxu0  ;;  %v1765_v10 = vadd.f32 %v1764_v60, %v4184_v46 }
 0xf16   :  { %v1766_v11 = vsel %vm302_vm12, %v1765_v10, -inf }
 0xf17   :  { %1767 = vmax.xlane.f32.xlu0 %v1766_v11 }
 0xf19   :  { %v1870_v14 = vpop.f32.mrb[52].mxu0 }
 0xf1a   :  { %v1876_v17 = vmul.f32 0.35355338, %v1870_v14  ;;  %v3630_v21 = vpop.f32.mrb[53].mxu0 }
 0xf1b   :  { %v1873_v22 = vpop.f32.mrb[54].mxu0 }
 0xf1c   :  { %v3631_v23 = vpop.f32.mrb[55].mxu0  ;;  %v1877_v24 = vadd.f32 %v1876_v17, %v4184_v46 }
 0xf1e   :  { %v1878_v53 = vsel %vm302_vm12, %v1877_v24, -inf }
 0xf1f   :  { %1879 = vmax.xlane.f32.xlu0 %v1878_v53 }
 0xf21   :  { %v1982_v13 = vpop.f32.mrb[56].mxu0 }
 0xf22   :  { %v1988_v28 = vmul.f32 0.35355338, %v1982_v13  ;;  %v3642_v29 = vpop.f32.mrb[57].mxu0 }
 0xf23   :  { %v1985_v30 = vpop.f32.mrb[58].mxu0 }
 0xf24   :  { %v3643_v15 = vpop.f32.mrb[59].mxu0  ;;  %v1989_v26 = vadd.f32 %v1988_v28, %v4184_v46 }
 0xf26   :  { %v1990_v32 = vsel %vm302_vm12, %v1989_v26, -inf }
 0xf27   :  { %1991 = vmax.xlane.f32.xlu1 %v1990_v32 }
 0xf29   :  { %v2109_v33 = vpop.f32.mrb[60].mxu0 }
 0xf2a   :  { %v2115_v35 = vmul.f32 0.35355338, %v2109_v33  ;;  %v3654_v36 = vpop.f32.mrb[61].mxu0 }
 0xf2b   :  { %v2112_v37 = vpop.f32.mrb[62].mxu0 }
 0xf2c   :  { %v3655_v38 = vpop.f32.mrb[63].mxu0  ;;  %v2116_v39 = vadd.f32 %v2115_v35, %v4206_v20 }
 0xf2e   :  { %v2117_v40 = vsel %vm302_vm12, %v2116_v39, -inf }
 0xf2f   :  { %2118 = vmax.xlane.f32.xlu0 %v2117_v40 }
 0xf31   :  { %v2221_v41 = vpop.f32.mrb[64].mxu0 }
 0xf32   :  { %v2227_v42 = vmul.f32 0.35355338, %v2221_v41  ;;  %v3666_v44 = vpop.f32.mrb[65].mxu0 }
 0xf33   :  { %v2224_v47 = vpop.f32.mrb[66].mxu0 }
 0xf34   :  { %v3667_v48 = vpop.f32.mrb[67].mxu0  ;;  %v4516_v46 = vadd.f32 %v2227_v42, %v4206_v20 }
 0xf36   :  { %v2229_v49 = vsel %vm302_vm12, %v4516_v46, -inf }
 0xf37   :  { %2230 = vmax.xlane.f32.xlu1 %v2229_v49 }
 0xf39   :  { %v2333_v16 = vpop.f32.mrb[68].mxu0 }
 0xf3a   :  { %v2339_v50 = vmul.f32 0.35355338, %v2333_v16  ;;  %v3678_v51 = vpop.f32.mrb[69].mxu0 }
 0xf3b   :  { %v2336_v55 = vpop.f32.mrb[70].mxu0 }
 0xf3c   :  { %v3679_v52 = vpop.f32.mrb[71].mxu0  ;;  %v2340_v5 = vadd.f32 %v2339_v50, %v4206_v20 }
 0xf3e   :  { %v2341_v18 = vsel %vm302_vm12, %v2340_v5, -inf }
 0xf3f   :  { %2342 = vmax.xlane.f32.xlu0 %v2341_v18 }
 0xf41   :  { %v2445_v4 = vpop.f32.mrb[72].mxu0 }
 0xf42   :  { %v3690_v56 = vpop.f32.mrb[73].mxu0  ;;  %v2451_v59 = vmul.f32 0.35355338, %v2445_v4 }
 0xf43   :  { %v2448_v57 = vpop.f32.mrb[74].mxu0 }
 0xf44   :  { %v3691_v58 = vpop.f32.mrb[75].mxu0  ;;  %v2452_v61 = vadd.f32 %v2451_v59, %v4206_v20 }
 0xf46   :  { %v2453_v62 = vsel %vm302_vm12, %v2452_v61, -inf }
 0xf48   :  { %1778 = vrot.lane.b32.xlu1 %v4428_v31, %s3963_s19 }
 0xf55   :  { %1666 = vrot.lane.b32.xlu0 %v4428_v31, %s3964_s20 }
 0xf6c   :  { %2454 = vmax.xlane.f32.xlu1 %v2453_v62 }
 0xf7d   :  { %1890 = vrot.lane.b32.xlu1 %v4428_v31, %s3965_s21 }
 0xf9c   :  { %v1656_v63 = vpop.xlane.xlu1 %1655 }
 0xf9d   :  { %v1657_v1 = vsub.f32 %v4503_v0, %v1656_v63 }
 0xf9f   :  { %v1658_v6 = vmul.f32 1.442695, %v1657_v1 }
 0xfa1   :  { %3905 = vpow2.f32 %v1658_v6 }
 0xfa4   :  { %v1768_v60 = vpop.xlane.xlu0 %1767 }
 0xfa5   :  { %v1769_v7 = vsub.f32 %v1765_v10, %v1768_v60 }
 0xfa7   :  { %v1770_v3 = vmul.f32 1.442695, %v1769_v7 }
 0xfa9   :  { %3907 = vpow2.f32 %v1770_v3 }
 0xfab   :  { %v4531_v9 = vpop.eup %3905 }
 0xfac   :  { %v1880_v11 = vpop.xlane.xlu0 %1879  ;;  %v1660_v20 = vsel %vm302_vm12, %v4531_v9, 0.0 }
 0xfad   :  { %v1881_v14 = vsub.f32 %v1877_v24, %v1880_v11  ;;  %1661 = vadd.xlane.f32.xlu0 %v1660_v20 }
 0xfaf   :  { %v1882_v17 = vmul.f32 1.442695, %v1881_v14 }
 0xfb1   :  { %3909 = vpow2.f32 %v1882_v17 }
 0xfb3   :  { %v4535_v21 = vpop.eup %3907 }
 0xfb4   :  { %v1992_v22 = vpop.xlane.xlu1 %1991  ;;  %v1772_v0 = vsel %vm302_vm12, %v4535_v21, 0.0 }
 0xfb5   :  { %v1993_v23 = vsub.f32 %v1989_v26, %v1992_v22  ;;  %1773 = vadd.xlane.f32.xlu1 %v1772_v0 }
 0xfb7   :  { %v1994_v10 = vmul.f32 1.442695, %v1993_v23 }
 0xfb9   :  { %3911 = vpow2.f32 %v1994_v10 }
 0xfbb   :  { %v4539_v53 = vpop.eup %3909 }
 0xfbc   :  { %v2119_v13 = vpop.xlane.xlu0 %2118  ;;  %v1884_v28 = vsel %vm302_vm12, %v4539_v53, 0.0 }
 0xfbd   :  { %v2120_v24 = vsub.f32 %v2116_v39, %v2119_v13  ;;  %1885 = vadd.xlane.f32.xlu0 %v1884_v28 }
 0xfbf   :  { %v2121_v29 = vmul.f32 1.442695, %v2120_v24 }
 0xfc1   :  { %3913 = vpow2.f32 %v2121_v29 }
 0xfc3   :  { %v4543_v30 = vpop.eup %3911 }
 0xfc4   :  { %v1996_v15 = vsel %vm302_vm12, %v4543_v30, 0.0  ;;  %v2231_v39 = vpop.xlane.xlu1 %2230 }
 0xfc5   :  { %1997 = vadd.xlane.f32.xlu1 %v1996_v15  ;;  %v2232_v41 = vsub.f32 %v4516_v46, %v2231_v39 }
 0xfc7   :  { %v2233_v44 = vmul.f32 1.442695, %v2232_v41 }
 0xfcb   :  { %v4547_v26 = vpop.eup %3913 }
 0xfcc   :  { %v2343_v32 = vpop.xlane.xlu0 %2342  ;;  %v2123_v33 = vsel %vm302_vm12, %v4547_v26, 0.0 }
 0xfcd   :  { %v2344_v35 = vsub.f32 %v2340_v5, %v2343_v32  ;;  %2124 = vadd.xlane.f32.xlu1 %v2123_v33 }
 0xfcf   :  { %v2345_v36 = vmul.f32 1.442695, %v2344_v35 }
 0xfd0   :  { %v1667_v37 = vpop.permute.xlu0 %1666 }
 0xfd1   :  { %3915 = vpow2.f32 %v2345_v36  ;;  %v1672_v38 = vsel %vm91_vm0, %v1667_v37, 0 }
 0xfd2   :  { %3609 = vmatpush3.bf16.msra.mxu1 %v1672_v38  ;;  %3917 = vpow2.f32 %v2233_v44 }
 0xfd3   :  { %2002 = vrot.lane.b32.xlu0 %v4428_v31, %s3966_s22  ;;  %3620 = vmatprep.subr.bf16.mxu1 %v3951_v8  ;;  %v1779_v31 = vpop.permute.xlu1 %1778 }
 0xfd4   :  { %v1784_v57 = vsel %vm91_vm0, %v1779_v31, 0 }
 0xfdb   :  { %v4555_v40 = vpop.eup %3915 }
 0xfdc   :  { %v2347_v42 = vsel %vm302_vm12, %v4555_v40, 0.0  ;;  %v4560_v47 = vpop.eup %3917 }
 0xfdd   :  { %2348 = vadd.xlane.f32.xlu1 %v2347_v42  ;;  %v2235_v48 = vsel %vm302_vm12, %v4560_v47, 0.0 }
 0xff2   :  { %2236 = vadd.xlane.f32.xlu0 %v2235_v48 }
 0xff9   :  { %v2455_v49 = vpop.xlane.xlu1 %2454 }
 0xffa   :  { %v2456_v16 = vsub.f32 %v2452_v61, %v2455_v49 }
 0xffc   :  { %v2457_v50 = vmul.f32 1.442695, %v2456_v16 }
 0xffd   :  { %v1891_v52 = vpop.permute.xlu1 %1890 }
 0xffe   :  { %3919 = vpow2.f32 %v2457_v50  ;;  %v1896_v61 = vsel %vm91_vm0, %v1891_v52, 0 }
0x1008   :  { %v4564_v51 = vpop.eup %3919  ;;  %2241 = vrot.lane.b32.xlu0 %v4442_v34, %s3963_s19 }
0x1009   :  { %v2459_v46 = vsel %vm302_vm12, %v4564_v51, 0.0 }
0x100a   :  { %2460 = vadd.xlane.f32.xlu1 %v2459_v46 }
0x100c   :  { %2353 = vrot.lane.b32.xlu0 %v4442_v34, %s3965_s21 }
0x1010   :  { %2465 = vrot.lane.b32.xlu0 %v4442_v34, %s3966_s22 }
0x101b   :  { %2129 = vrot.lane.b32.xlu1 %v4442_v34, %s3964_s20 }
0x101f   :  { %2533 = vrot.lane.b32.xlu1 %v4399_v2, %s3967_s26 }
0x103a   :  { %v1662_v55 = vpop.xlane.xlu0 %1661 }
0x103b   :  { %3921 = vrcp.f32 %v1662_v55 }
0x1042   :  { %v1774_v5 = vpop.xlane.xlu1 %1773 }
0x1043   :  { %3923 = vrcp.f32 %v1774_v5 }
0x1045   :  { %v3922_v18 = vpop.eup %3921 }
0x1046   :  { %v1664_v4 = vmul.f32 %v3922_v18, %v4531_v9 }
0x1048   :  { %v1665_v56 = vpack.c.bf16 %v1664_v4, %v1664_v4 }
0x104a   :  { %3611 = vmatmul.mubr.msk.bf16.vlgmr.msra.gmra.mrb[44].mxu1 %vm302_vm12, %v1665_v56  ;;  %v1886_v58 = vpop.xlane.xlu0 %1885 }
0x104b   :  { %3621 = vmatpush3.bf16.msra.mxu1 %v1784_v57  ;;  %3925 = vrcp.f32 %v1886_v58  ;;  %3622 = vmatprep.mubr.msk.bf16.mxu1 %vm3955_vm11, %v3951_v8 }
0x104c   :  { %3632 = vmatprep.subr.bf16.mxu1 %v3951_v8 }
0x104d   :  { %v3924_v2 = vpop.eup %3923 }
0x104e   :  { %v1776_v34 = vmul.f32 %v3924_v2, %v4535_v21  ;;  %v2003_v6 = vpop.permute.xlu0 %2002 }
0x104f   :  { %v2008_v7 = vsel %vm91_vm0, %v2003_v6, 0 }
0x1050   :  { %v1777_v59 = vpack.c.bf16 %v1776_v34, %v1776_v34 }
0x1052   :  { %3623 = vmatmul.mubr.msk.bf16.vlgmr.msra.gmra.mrb[48].mxu1 %vm302_vm12, %v1777_v59  ;;  %v1998_v62 = vpop.xlane.xlu1 %1997 }
0x1053   :  { %3633 = vmatpush3.bf16.msra.mxu1 %v1896_v61  ;;  %3927 = vrcp.f32 %v1998_v62  ;;  %3634 = vmatprep.mubr.msk.bf16.mxu1 %vm3955_vm11, %v3951_v8 }
0x1054   :  { %3644 = vmatprep.subr.bf16.mxu1 %v3951_v8 }
0x1055   :  { %v3926_v63 = vpop.eup %3925 }
0x1056   :  { %v1888_v1 = vmul.f32 %v3926_v63, %v4539_v53 }
0x1058   :  { %v1889_v60 = vpack.c.bf16 %v1888_v1, %v1888_v1 }
0x105a   :  { %3635 = vmatmul.mubr.msk.bf16.vlgmr.msra.gmra.mrb[52].mxu1 %vm302_vm12, %v1889_v60  ;;  %v2125_v20 = vpop.xlane.xlu1 %2124 }
0x105b   :  { %3645 = vmatpush3.bf16.msra.mxu1 %v2008_v7  ;;  %3646 = vmatprep.mubr.msk.bf16.mxu1 %vm3955_vm11, %v3951_v8  ;;  %3929 = vrcp.f32 %v2125_v20 }
0x105c   :  { %3656 = vmatprep.subr.bf16.mxu1 %v3951_v8 }
0x105d   :  { %v3928_v3 = vpop.eup %3927 }
0x105e   :  { %v2000_v9 = vmul.f32 %v3928_v3, %v4543_v30 }
0x1060   :  { %v2001_v11 = vpack.c.bf16 %v2000_v9, %v2000_v9 }
0x1062   :  { %3647 = vmatmul.mubr.msk.bf16.vlgmr.msra.gmra.mrb[56].mxu1 %vm302_vm12, %v2001_v11 }
0x1063   :  { %3658 = vmatprep.mubr.msk.bf16.mxu1 %vm3955_vm11, %v3951_v8 }
0x1065   :  { %v3930_v21 = vpop.eup %3929 }
0x1066   :  { %v2127_v0 = vmul.f32 %v3930_v21, %v4547_v26 }
0x1068   :  { %v2128_v13 = vpack.c.bf16 %v2127_v0, %v2127_v0 }
0x106a   :  { %v2349_v17 = vpop.xlane.xlu1 %2348 }
0x107f   :  { %v2237_v14 = vpop.xlane.xlu0 %2236 }
0x1080   :  { %3931 = vrcp.f32 %v2237_v14 }
0x1081   :  { %3933 = vrcp.f32 %v2349_v17 }
0x1083   :  { %v2242_v53 = vpop.permute.xlu0 %2241 }
0x1084   :  { %v2247_v24 = vsel %vm91_vm0, %v2242_v53, 0 }
0x1087   :  { %v2354_v30 = vpop.permute.xlu0 %2353 }
0x1088   :  { %v2359_v32 = vsel %vm91_vm0, %v2354_v30, 0 }
0x108a   :  { %v3932_v28 = vpop.eup %3931 }
0x108b   :  { %v2239_v29 = vmul.f32 %v3932_v28, %v4560_v47  ;;  %v3934_v26 = vpop.eup %3933  ;;  %v2466_v35 = vpop.permute.xlu0 %2465 }
0x108c   :  { %v2351_v33 = vmul.f32 %v3934_v26, %v4555_v40  ;;  %v2471_v38 = vsel %vm91_vm0, %v2466_v35, 0 }
0x108d   :  { %v2240_v15 = vpack.c.bf16 %v2239_v29, %v2239_v29 }
0x108e   :  { %v2352_v36 = vpack.c.bf16 %v2351_v33, %v2351_v33 }
0x1097   :  { %v2461_v22 = vpop.xlane.xlu1 %2460 }
0x1098   :  { %3935 = vrcp.f32 %v2461_v22 }
0x109b   :  { %v2130_v23 = vpop.permute.xlu1 %2129 }
0x109c   :  { %v2135_v10 = vsel %vm91_vm0, %v2130_v23, 0  ;;  %vm2880_vm0 = vcmp.gt.s32.totalorder %v4179_v43, %v4050_v19 }
0x109d   :  { %3657 = vmatpush3.bf16.msra.mxu1 %v2135_v10 }
0x109e   :  { %3668 = vmatprep.subr.bf16.mxu1 %v3951_v8 }
0x109f   :  { %v2534_v57 = vpop.permute.xlu1 %2533 }
0x10a0   :  { %3659 = vmatmul.mubr.msk.bf16.vlgmr.msra.gmra.mrb[60].mxu1 %vm302_vm12, %v2128_v13  ;;  %3699 = vmatpush3.bf16.msra.mxu0 %v2534_v57 }
0x10a1   :  { %3669 = vmatpush3.bf16.msra.mxu1 %v2247_v24  ;;  %3670 = vmatprep.mubr.msk.bf16.mxu1 %vm3955_vm11, %v3951_v8 }
0x10a2   :  { %3680 = vmatprep.subr.bf16.mxu1 %v3951_v8  ;;  %v3936_v37 = vpop.eup %3935  ;;  %3700 = vmatprep.subr.bf16.mxu0 %v3951_v8 }
0x10a3   :  { %v2463_v39 = vmul.f32 %v3936_v37, %v4564_v51  ;;  %v3305_v37 = vld [vmem:[%s4809_s4 + $0xb] ss:$0 sm:$0xff] }
0x10a5   :  { %v2464_v41 = vpack.c.bf16 %v2463_v39, %v2463_v39 }
0x10a8   :  { %3671 = vmatmul.mubr.msk.bf16.vlgmr.msra.gmra.mrb[64].mxu1 %vm302_vm12, %v2240_v15 }
0x10a9   :  { %3681 = vmatpush3.bf16.msra.mxu1 %v2359_v32  ;;  %3682 = vmatprep.mubr.msk.bf16.mxu1 %vm3955_vm11, %v3951_v8 }
0x10aa   :  { %3692 = vmatprep.subr.bf16.mxu1 %v3951_v8 }
0x10b0   :  { %3683 = vmatmul.mubr.msk.bf16.vlgmr.msra.gmra.mrb[68].mxu1 %vm302_vm12, %v2352_v36 }
0x10b1   :  { %3693 = vmatpush3.bf16.msra.mxu1 %v2471_v38  ;;  %3694 = vmatprep.mubr.msk.bf16.mxu1 %vm3955_vm11, %v3951_v8 }
0x10b2   :  { %3706 = vmatprep.subr.bf16.mxu1 %v3951_v8 }
0x10b8   :  { %3695 = vmatmul.mubr.msk.bf16.vlgmr.msra.gmra.mrb[72].mxu1 %vm302_vm12, %v2464_v41 }
0x10b9   :  { %3710 = vmatprep.mubr.msk.bf16.mxu1 %vm3955_vm11, %v3951_v8 }
0x111d   :  { %v1708_v40 = vpop.f32.mrb[44].mxu1 }
0x111e   :  { %v3612_v42 = vpop.f32.mrb[45].mxu1 }
0x111f   :  { %v1711_v44 = vpop.f32.mrb[46].mxu1 }
0x1120   :  { %v3613_v47 = vpop.f32.mrb[47].mxu1 }
0x1125   :  { %v1820_v48 = vpop.f32.mrb[48].mxu1 }
0x1126   :  { %v3624_v31 = vpop.f32.mrb[49].mxu1 }
0x1127   :  { %v1823_v49 = vpop.f32.mrb[50].mxu1 }
0x1128   :  { %v3625_v16 = vpop.f32.mrb[51].mxu1 }
0x112d   :  { %v1932_v50 = vpop.f32.mrb[52].mxu1 }
0x112e   :  { %v3636_v46 = vpop.f32.mrb[53].mxu1 }
0x112f   :  { %v1935_v55 = vpop.f32.mrb[54].mxu1 }
0x1130   :  { %v3637_v51 = vpop.f32.mrb[55].mxu1 }
0x1135   :  { %v2044_v52 = vpop.f32.mrb[56].mxu1 }
0x1136   :  { %v3648_v5 = vpop.f32.mrb[57].mxu1 }
0x1137   :  { %v2047_v18 = vpop.f32.mrb[58].mxu1 }
0x1138   :  { %v3649_v4 = vpop.f32.mrb[59].mxu1 }
0x1173   :  { %v2171_v56 = vpop.f32.mrb[60].mxu1 }
0x1174   :  { %v3660_v58 = vpop.f32.mrb[61].mxu1 }
0x1175   :  { %v2174_v2 = vpop.f32.mrb[62].mxu1 }
0x1176   :  { %v3661_v34 = vpop.f32.mrb[63].mxu1 }
0x117b   :  { %v2283_v59 = vpop.f32.mrb[64].mxu1 }
0x117c   :  { %v3818_v61 = vpack.i.bf16 %v2283_v59, %v1820_v48  ;;  %v3672_v62 = vpop.f32.mrb[65].mxu1 }
0x117d   :  { %v2286_v63 = vpop.f32.mrb[66].mxu1 }
0x117e   :  { %3819 = vrot.lane.b32.xlu0 %v3818_v61, %s3968_s27  ;;  %v3673_v1 = vpop.f32.mrb[67].mxu1 }
0x117f   :  { %v3307_v1 = vld [vmem:[%s4809_s4 + $0xe] ss:$0 sm:$0xff] }
0x1183   :  { %v2395_v6 = vpop.f32.mrb[68].mxu1 }
0x1184   :  { %v3823_v60 = vpack.i.bf16 %v2395_v6, %v1932_v50  ;;  %v3684_v7 = vpop.f32.mrb[69].mxu1 }
0x1185   :  { %v2398_v3 = vpop.f32.mrb[70].mxu1 }
0x1186   :  { %3824 = vrot.lane.b32.xlu1 %v3823_v60, %s3969_s28  ;;  %v3685_v9 = vpop.f32.mrb[71].mxu1  ;;  %v3308_v3 = vld [vmem:[%s4809_s4 + $0xf] ss:$0 sm:$0xff] }
0x118a   :  { %2535 = vrot.lane.b32.xlu1 %v4405_v54, %s3967_s26 }
0x118b   :  { %v2507_v11 = vpop.f32.mrb[72].mxu1 }
0x118c   :  { %v3828_v20 = vpack.i.bf16 %v2507_v11, %v2044_v52  ;;  %v3696_v14 = vpop.f32.mrb[73].mxu1 }
0x118d   :  { %v2510_v17 = vpop.f32.mrb[74].mxu1 }
0x118e   :  { %3829 = vrot.lane.b32.xlu0 %v3828_v20, %s3970_s29  ;;  %v3697_v21 = vpop.f32.mrb[75].mxu1  ;;  %v3851_v17 = vld [vmem:[%s4811_s6 + $0x20] sm:$0xff]  }
0x118f   :  { %v3852_v21 = vld [vmem:[%s4811_s6 + $0x28] sm:$0xff]  }
0x11f0   :  { %v3820_v0 = vpop.permute.xlu0 %3819 }
0x11f1   :  { %v3822_v10 = vunpack.i.h.bf16 %v3820_v0  ;;  %v3821_v53 = vunpack.i.l.bf16 %v3820_v0  ;;  %v3854_v0 = vld [vmem:[%s4811_s6 + $0x38] sm:$0xff]  }
0x11f3   :  { %v2525_v54 = vsel %vm302_vm12, %v2171_v56, %v3822_v10  ;;  %v2062_v29 = vsel %vm302_vm12, %v1708_v40, %v3821_v53  ;;  %v3850_v56 = vld [vmem:[%s4808_s5 + $0x34] ss:$8 sps:$4 sm:$0xff]  }
0x11f8   :  { %v3825_v22 = vpop.permute.xlu1 %3824 }
0x11f9   :  { %v3827_v13 = vunpack.i.h.bf16 %v3825_v22  ;;  %v3826_v28 = vunpack.i.l.bf16 %v3825_v22  ;;  %v3853_v22 = vld [vmem:[%s4811_s6 + $0x30] sm:$0xff]  }
0x11fb   :  { %v2526_v26 = vsel %vm764_vm13, %v2525_v54, %v3827_v13  ;;  %v2063_v32 = vsel %vm764_vm13, %v2062_v29, %v3826_v28 }
0x11fc   :  { %v2536_v23 = vpop.permute.xlu1 %2535 }
0x11fd   :  { %3701 = vmatpush3.bf16.msra.mxu0 %v2536_v23  ;;  %v3309_v23 = vld [vmem:[%s4809_s4 + $0xc] ss:$0 sm:$0xff] }
0x11fe   :  { %3714 = vmatprep.subr.bf16.mxu0 %v3951_v8 }
0x1200   :  { %v3830_v24 = vpop.permute.xlu0 %3829 }
0x1201   :  { %v3832_v30 = vunpack.i.h.bf16 %v3830_v24  ;;  %v3831_v15 = vunpack.i.l.bf16 %v3830_v24 }
0x1203   :  { %v2527_v33 = vsel %vm766_vm14, %v2526_v26, %v3832_v30  ;;  %v2064_v35 = vsel %vm766_vm14, %v2063_v32, %v3831_v15 }
0x1204   :  { %v2528_v36 = vpack.c.bf16 %v2527_v33, %v2064_v35 }
0x1206   :  { %3703 = vmatmul.mubr.msk.bf16.vlgmr.msra.gmra.mrb[76].mxu0 %vm172_vm10, %v2528_v36 }
0x1207   :  { %3722 = vmatprep.mubr.msk.bf16.mxu0 %vm3955_vm11, %v3951_v8  ;;  %3715 = vmatpush3.bf16.msra.mxu0 %v3851_v17 }
0x1208   :  { %3716 = vmatprep.subr.bf16.mxu0 %v3951_v8 }
0x120b   :  { %3717 = vmatpush3.bf16.msra.mxu0 %v3852_v21 }
0x120c   :  { %3718 = vmatprep.subr.bf16.mxu0 %v3951_v8 }
0x120f   :  { %3719 = vmatpush3.bf16.msra.mxu0 %v3853_v22  ;;  %v3319_v22 = vld [vmem:[%s4809_s4 + $0x10] ss:$0 sm:$0xff] }
0x1210   :  { %3720 = vmatprep.subr.bf16.mxu0 %v3951_v8 }
0x1213   :  { %3721 = vmatpush3.bf16.msra.mxu0 %v3854_v0 }
0x1214   :  { %3740 = vmatprep.subr.bf16.mxu0 %v3951_v8 }
0x12d9   :  { %v2576_v38 = vpop.f32.mrb[76].mxu0 }
0x12da   :  { %v2577_v39 = vadd.f32 %v3305_v37, %v2576_v38  ;;  %v3704_v41 = vpop.f32.mrb[77].mxu0 }
0x12db   :  { %v2579_v40 = vpop.f32.mrb[78].mxu0 }
0x12dc   :  { %v2583_v42 = vadd.f32 %v2577_v39, %v4416_v25  ;;  %v2580_v44 = vadd.f32 %v3305_v37, %v2579_v40  ;;  %v3705_v47 = vpop.f32.mrb[79].mxu0 }
0x12de   :  { %v2584_v48 = vadd.f32 %v2580_v44, %v4418_v27  ;;  %v2585_v31 = vsel %vm172_vm10, %v2583_v42, 0.0  ;;  %v3849_v27 = vld [vmem:[%s4808_s5 + $0x24] ss:$8 sps:$4 sm:$0xff]  }
0x12df   :  { %2586 = vadd.xlane.f32.xlu0 %v2585_v31  ;;  %3707 = vmatpush3.bf16.msra.mxu1 %v3849_v27 }
0x12e0   :  { %v2588_v49 = vsel %vm172_vm10, %v2584_v48, 0.0  ;;  %3708 = vmatprep.subr.bf16.mxu1 %v3951_v8 }
0x12e1   :  { %2589 = vadd.xlane.f32.xlu1 %v2588_v49 }
0x12e3   :  { %3709 = vmatpush3.bf16.msra.mxu1 %v3850_v56 }
0x12e4   :  { %3726 = vmatprep.subr.bf16.mxu1 %v3951_v8 }
0x136c   :  { %v2587_v16 = vpop.xlane.xlu0 %2586 }
0x136d   :  { %v2591_v50 = vmul.f32 0.03125, %v2587_v16  ;;  %v3313_v16 = vld [vmem:[%s4809_s4 + $0xd] ss:$0 sm:$0xff] }
0x136e   :  { %v2590_v46 = vpop.xlane.xlu1 %2589 }
0x136f   :  { %v2593_v55 = vsub.f32 %v2583_v42, %v2591_v50  ;;  %v2592_v51 = vmul.f32 0.03125, %v2590_v46 }
0x1371   :  { %v2594_v52 = vsub.f32 %v2584_v48, %v2592_v51  ;;  %v2595_v5 = vmul.f32 %v2593_v55, %v2593_v55 }
0x1373   :  { %v2597_v18 = vsel %vm172_vm10, %v2595_v5, 0.0  ;;  %v2596_v25 = vmul.f32 %v2594_v52, %v2594_v52 }
0x1374   :  { %2598 = vadd.xlane.f32.xlu0 %v2597_v18 }
0x1375   :  { %v2600_v4 = vsel %vm172_vm10, %v2596_v25, 0.0 }
0x1378   :  { %2601 = vadd.xlane.f32.xlu0 %v2600_v4 }
0x1401   :  { %v2599_v57 = vpop.xlane.xlu0 %2598 }
0x1402   :  { %v2603_v58 = vmul.f32 0.03125, %v2599_v57 }
0x1404   :  { %v2605_v2 = vadd.f32 1e-12, %v2603_v58 }
0x1405   :  { %v2602_v34 = vpop.xlane.xlu0 %2601 }
0x1406   :  { %3937 = vrsqrt.f32 %v2605_v2  ;;  %v2604_v59 = vmul.f32 0.03125, %v2602_v34 }
0x1408   :  { %v2606_v61 = vadd.f32 1e-12, %v2604_v59 }
0x140a   :  { %3939 = vrsqrt.f32 %v2606_v61 }
0x1410   :  { %v3938_v62 = vpop.eup %3937 }
0x1411   :  { %v2609_v63 = vmul.f32 %v3938_v62, %v2593_v55 }
0x1413   :  { %v2615_v60 = vmul.f32 %v3307_v1, %v2609_v63 }
0x1414   :  { %v3940_v6 = vpop.eup %3939 }
0x1415   :  { %v2610_v7 = vmul.f32 %v3940_v6, %v2594_v52  ;;  %v2621_v11 = vadd.f32 %v3308_v3, %v2615_v60  ;;  %v3855_v6 = vld [vmem:[%s4812_s7] sm:$0xff]   ;;  %v3856_v60 = vld [vmem:[%s4812_s7 + $0x8] sm:$0xff]  }
0x1417   :  { %v2616_v9 = vmul.f32 %v3307_v1, %v2610_v7  ;;  %v4706_v7 = vld [vmem:[%s4809_s4 + $0x13] sm:$0xff] }
0x1419   :  { %v2622_v20 = vadd.f32 %v3308_v3, %v2616_v9 }
0x141b   :  { %v2623_v14 = vpack.c.bf16 %v2622_v20, %v2621_v11 }
0x141d   :  { %3711 = vmatmul.mubr.msk.bf16.vlgmr.msra.gmra.mrb[76].mxu1 %vm172_vm10, %v2623_v14 }
0x141e   :  { %3730 = vmatprep.mubr.msk.bf16.mxu1 %vm3955_vm11, %v3951_v8  ;;  %3727 = vmatpush3.bf16.msra.mxu1 %v3855_v6  ;;  %v214_v6 = vld [vmem:[%s4813_s2 + $0x8] sm:$0xff] }
0x141f   :  { %3728 = vmatprep.subr.bf16.mxu1 %v3951_v8 }
0x1422   :  { %3729 = vmatpush3.bf16.msra.mxu1 %v3856_v60 }
0x1423   :  { %3734 = vmatprep.subr.bf16.mxu1 %v3951_v8 }
0x14f0   :  { %v2673_v10 = vpop.f32.mrb[76].mxu1 }
0x14f1   :  { %v2674_v53 = vadd.f32 %v3309_v23, %v2673_v10  ;;  %v3712_v13 = vpop.f32.mrb[77].mxu1 }
0x14f2   :  { %v2676_v28 = vpop.f32.mrb[78].mxu1  ;;  %v3320_v13 = vld [vmem:[%s4809_s4 + $0x11] ss:$0 sm:$0xff] }
0x14f3   :  { %v2680_v24 = vmul.f32 %v2674_v53, %v2674_v53  ;;  %v2677_v54 = vadd.f32 %v3309_v23, %v2676_v28  ;;  %v3713_v29 = vpop.f32.mrb[79].mxu1 }
0x14f5   :  { %v2682_v30 = vmul.f32 %v2680_v24, %v2674_v53  ;;  %v2681_v15 = vmul.f32 %v2677_v54, %v2677_v54 }
0x14f7   :  { %v2684_v26 = vmul.f32 0.044715, %v2682_v30  ;;  %v2683_v32 = vmul.f32 %v2681_v15, %v2677_v54  ;;  %v3321_v30 = vld [vmem:[%s4809_s4 + $0x12] ss:$0 sm:$0xff] }
0x14f9   :  { %v2686_v33 = vadd.f32 %v2684_v26, %v2674_v53  ;;  %v2685_v35 = vmul.f32 0.044715, %v2683_v32 }
0x14fb   :  { %v2688_v36 = vmul.f32 0.7978846, %v2686_v33  ;;  %v2687_v37 = vadd.f32 %v2685_v35, %v2677_v54 }
0x14fd   :  { %3941 = vtanh.f32 %v2688_v36  ;;  %v2689_v38 = vmul.f32 0.7978846, %v2687_v37 }
0x14ff   :  { %3943 = vtanh.f32 %v2689_v38 }
0x1507   :  { %v3942_v39 = vpop.eup %3941 }
0x1508   :  { %v2692_v41 = vadd.f32 1.0, %v3942_v39 }
0x1509   :  { %v3944_v40 = vpop.eup %3943 }
0x150a   :  { %v2694_v42 = vmul.f32 0.5, %v2692_v41  ;;  %v2693_v44 = vadd.f32 1.0, %v3944_v40 }
0x150c   :  { %v2695_v47 = vmul.f32 0.5, %v2693_v44  ;;  %v2696_v48 = vmul.f32 %v2694_v42, %v2674_v53 }
0x150e   :  { %v2697_v31 = vmul.f32 %v2695_v47, %v2677_v54 }
0x1510   :  { %v2698_v49 = vpack.c.bf16 %v2697_v31, %v2696_v48 }
0x1512   :  { %3723 = vmatmul.mubr.msk.bf16.vlgmr.msra.gmra.mrb[80].mxu0 %vm1434_vm15, %v2698_v49 }
0x1513   :  { %3742 = vmatprep.mubr.msk.bf16.mxu0 %vm3955_vm11, %v3951_v8 }
0x15e5   :  { %v2764_v50 = vpop.f32.mrb[80].mxu0 }
0x15e6   :  { %v2765_v46 = vadd.f32 %v3313_v16, %v2764_v50  ;;  %v3724_v55 = vpop.f32.mrb[81].mxu0 }
0x15e7   :  { %v2767_v51 = vpop.f32.mrb[82].mxu0 }
0x15e8   :  { %v2771_v52 = vadd.f32 %v2765_v46, %v2621_v11  ;;  %v2768_v5 = vadd.f32 %v3313_v16, %v2767_v51  ;;  %v3725_v18 = vpop.f32.mrb[83].mxu0 }
0x15ea   :  { %v2772_v25 = vadd.f32 %v2768_v5, %v2622_v20  ;;  %v2773_v4 = vsel %vm172_vm10, %v2771_v52, 0.0 }
0x15eb   :  { %2774 = vadd.xlane.f32.xlu1 %v2773_v4 }
0x15ec   :  { %v2776_v27 = vsel %vm172_vm10, %v2772_v25, 0.0 }
0x15ed   :  { %2777 = vadd.xlane.f32.xlu0 %v2776_v27 }
0x1678   :  { %v2775_v56 = vpop.xlane.xlu1 %2774 }
0x1679   :  { %v2779_v57 = vmul.f32 0.03125, %v2775_v56 }
0x167a   :  { %v2778_v58 = vpop.xlane.xlu0 %2777 }
0x167b   :  { %v2781_v2 = vsub.f32 %v2771_v52, %v2779_v57  ;;  %v2780_v34 = vmul.f32 0.03125, %v2778_v58 }
0x167d   :  { %v2782_v59 = vsub.f32 %v2772_v25, %v2780_v34  ;;  %v2783_v61 = vmul.f32 %v2781_v2, %v2781_v2 }
0x167f   :  { %v2785_v62 = vsel %vm172_vm10, %v2783_v61, 0.0  ;;  %v2784_v63 = vmul.f32 %v2782_v59, %v2782_v59 }
0x1680   :  { %2786 = vadd.xlane.f32.xlu1 %v2785_v62 }
0x1681   :  { %v2788_v1 = vsel %vm172_vm10, %v2784_v63, 0.0 }
0x1682   :  { %2789 = vadd.xlane.f32.xlu0 %v2788_v1  ;;  %v213_v1 = vld [vmem:[%s4813_s2] sm:$0xff] }
0x1691   :  { %2914 = vrot.lane.b32.xlu1 %v4706_v7, %s3964_s20 }
0x1695   :  { %2980 = vrot.lane.b32.xlu1 %v4706_v7, %s3961_s16 }
0x1698   :  { %2989 = vrot.lane.b32.xlu0 %v4706_v7, %s3957_s12 }
0x1699   :  { %2910 = vrot.lane.b32.xlu1 %v4706_v7, %s3969_s28 }
0x169c   :  { %2901 = vrot.lane.b32.xlu0 %v4706_v7, %s3965_s21 }
0x170d   :  { %v2787_v3 = vpop.xlane.xlu1 %2786 }
0x170e   :  { %v2791_v9 = vmul.f32 0.03125, %v2787_v3 }
0x170f   :  { %v2790_v11 = vpop.xlane.xlu0 %2789 }
0x1710   :  { %v2793_v20 = vadd.f32 1e-12, %v2791_v9  ;;  %v2792_v14 = vmul.f32 0.03125, %v2790_v11 }
0x1711   :  { %v2915_v36 = vpop.permute.xlu1 %2914 }
0x1712   :  { %3945 = vrsqrt.f32 %v2793_v20  ;;  %v2794_v17 = vadd.f32 1e-12, %v2792_v14  ;;  %v2886_v20 = vsub.f32 1.0, %v213_v1  ;;  %v3054_v14 = vsub.f32 1.0, %v214_v6 }
0x1713   :  { %v2990_v33 = vpop.permute.xlu0 %2989 }
0x1714   :  { %3947 = vrsqrt.f32 %v2794_v17 }
0x1715   :  { %v2981_v42 = vpop.permute.xlu1 %2980 }
0x1717   :  { %v2902_v31 = vpop.permute.xlu0 %2901 }
0x1719   :  { %v2911_v49 = vpop.permute.xlu1 %2910 }
0x171c   :  { %v3946_v21 = vpop.eup %3945 }
0x171d   :  { %v2797_v0 = vmul.f32 %v3946_v21, %v2781_v2  ;;  %v2887_v21 = vmul.f32 1e+12, %v2886_v20 }
0x171e   :  { %v3948_v23 = vpop.eup %3947 }
0x171f   :  { %v2803_v10 = vmul.f32 %v3319_v22, %v2797_v0  ;;  %v2798_v53 = vmul.f32 %v3948_v23, %v2782_v59 }
0x1721   :  { %v2804_v28 = vmul.f32 %v3319_v22, %v2798_v53  ;;  %v2809_v24 = vadd.f32 %v3320_v13, %v2803_v10  ;;  %v3055_v22 = vmul.f32 1e+12, %v3054_v14 }
0x1723   :  { %v2810_v54 = vadd.f32 %v3320_v13, %v2804_v28 }
0x1725   :  { %v2811_v29 = vpack.c.bf16 %v2810_v54, %v2809_v24 }
0x1727   :  { %3731 = vmatmul.mubr.msk.bf16.vlgmr.msra.gmra.mrb[80].mxu1 %vm172_vm10, %v2811_v29 }
0x1728   :  { %3736 = vmatprep.mubr.msk.bf16.mxu1 %vm3955_vm11, %v3951_v8 }
0x17fa   :  { %v2870_v15 = vpop.f32.mrb[80].mxu1 }
0x17fb   :  { %v4730_v26 = vadd.f32 %v3321_v30, %v2870_v15  ;;  %v3732_v32 = vpop.f32.mrb[81].mxu1 }
0x17fc   :  { %v2873_v35 = vpop.f32.mrb[82].mxu1 }
0x17fd   :  { %v4732_v37 = vadd.f32 %v3321_v30, %v2873_v35  ;;  %v3733_v38 = vpop.f32.mrb[83].mxu1  ;;  %v2992_v39 = vmul.f32 %v2990_v33, %v4730_v26  ;;  %v2917_v41 = vmul.f32 %v2915_v36, %v4730_v26  ;;  %v2983_v47 = vmul.f32 %v2981_v42, %v4730_v26 }
0x17fe   :  { %v2904_v16 = vmul.f32 %v2902_v31, %v4730_v26  ;;  %v2913_v50 = vmul.f32 %v2911_v49, %v4730_v26  ;;  %v2899_v13 = vmul.f32 %v4706_v7, %v4730_v26 }
0x17ff   :  { %2994 = vrot.lane.b32.xlu0 %v2992_v39, %s3964_s20  ;;  %2919 = vrot.lane.b32.xlu1 %v2917_v41, %s3964_s20  ;;  %v3075_v40 = vmul.f32 %v2915_v36, %v4732_v37  ;;  %v3141_v44 = vmul.f32 %v2990_v33, %v4732_v37  ;;  %v3135_v48 = vmul.f32 %v2981_v42, %v4732_v37  ;;  %v3949_v41 = vld [vmem:[%s4810_s1] sm:$0x3] }
0x1800   :  { %v3074_v18 = vmul.f32 %v2911_v49, %v4732_v37  ;;  %v3068_v58 = vmul.f32 %v2902_v31, %v4732_v37 }
0x1803   :  { %3077 = vrot.lane.b32.xlu0 %v3075_v40, %s3964_s20  ;;  %2976 = vrot.lane.b32.xlu1 %v4706_v7, %s3967_s26  ;;  %v2884_v40 = vsub.f32 1.0, %v3949_v41 }
0x1807   :  { %3143 = vrot.lane.b32.xlu0 %v3141_v44, %s3964_s20  ;;  %2985 = vrot.lane.b32.xlu1 %v2983_v47, %s3964_s20  ;;  %v3325_v44 = vsel %vm2880_vm0, 1.0, %v3951_v8 }
0x180b   :  { %3137 = vrot.lane.b32.xlu1 %v3135_v48, %s3964_s20  ;;  %v2883_v48 = vmul.f32 1e+12, %v3325_v44 }
0x1871   :  { %v2995_v46 = vpop.permute.xlu0 %2994  ;;  %v2920_v51 = vpop.permute.xlu1 %2919 }
0x1872   :  { %v2997_v55 = vadd.f32 %v2995_v46, %v2904_v16  ;;  %v2922_v52 = vadd.f32 %v2920_v51, %v2913_v50 }
0x1874   :  { %v2999_v5 = vpack.c.bf16 %v2997_v55, %v2997_v55  ;;  %v2924_v25 = vpack.c.bf16 %v2922_v52, %v2922_v52 }
0x1875   :  { %v3078_v4 = vpop.permute.xlu0 %3077  ;;  %v2977_v27 = vpop.permute.xlu1 %2976 }
0x1876   :  { %v3080_v56 = vadd.f32 %v3078_v4, %v3074_v18  ;;  %3004 = vrot.lane.b32.xlu1 %v2999_v5, %s3961_s16  ;;  %2926 = vrot.lane.b32.xlu0 %v2924_v25, %s3958_s13  ;;  %v2979_v2 = vmul.f32 %v2977_v27, %v4730_v26  ;;  %v3134_v60 = vmul.f32 %v2977_v27, %v4732_v37 }
0x1877   :  { %v3067_v26 = vmul.f32 %v4706_v7, %v4732_v37  ;;  %v2885_v7 = vmul.f32 1e+12, %v2884_v40 }
0x1878   :  { %v3082_v57 = vpack.c.bf16 %v3080_v56, %v3080_v56 }
0x1879   :  { %v3144_v34 = vpop.permute.xlu0 %3143  ;;  %v2986_v59 = vpop.permute.xlu1 %2985  ;;  %v2891_v37 = vrot.slane %v2885_v7, %v352_v45  ;;  %v3059_v49 = vrot.slane %v2885_v7, %v821_v12 }
0x187a   :  { %v3146_v61 = vadd.f32 %v3144_v34, %v3068_v58  ;;  %3084 = vrot.lane.b32.xlu1 %v3082_v57, %s3958_s13  ;;  %v2988_v62 = vadd.f32 %v2986_v59, %v2979_v2  ;;  %2906 = vrot.lane.b32.xlu0 %v2904_v16, %s3964_s20 }
0x187c   :  { %v3148_v63 = vpack.c.bf16 %v3146_v61, %v3146_v61  ;;  %v2998_v3 = vpack.c.bf16 %v2988_v62, %v2988_v62 }
0x187d   :  { %v3138_v9 = vpop.permute.xlu1 %3137 }
0x187e   :  { %3153 = vrot.lane.b32.xlu1 %v3148_v63, %s3961_s16  ;;  %v3140_v11 = vadd.f32 %v3138_v9, %v3134_v60  ;;  %3001 = vrot.lane.b32.xlu0 %v2998_v3, %s3957_s12 }
0x1880   :  { %v3147_v17 = vpack.c.bf16 %v3140_v11, %v3140_v11 }
0x1882   :  { %3070 = vrot.lane.b32.xlu0 %v3068_v58, %s3964_s20  ;;  %3150 = vrot.lane.b32.xlu1 %v3147_v17, %s3957_s12 }
0x1886   :  { %2894 = vperm.xlu0 %3833, %v2887_v21   ;;  %3062 = vperm.xlu1 %3834, %v3055_v22  }
0x18e8   :  { %v3005_v0 = vpop.permute.xlu1 %3004  ;;  %v2927_v10 = vpop.permute.xlu0 %2926 }
0x18e9   :  { %v3010_v23 = vsel %vm764_vm13, %v3005_v0, 0  ;;  %v2932_v53 = vsel %vm764_vm13, %v2927_v10, 0 }
0x18ea   :  { %3741 = vmatpush3.bf16.xpose.msra.mxu0 %v3010_v23  ;;  %3735 = vmatpush3.bf16.xpose.msra.mxu1 %v2932_v53 }
0x18eb   :  { %3752 = vmatprep.subr.bf16.mxu0 %v3951_v8  ;;  %3746 = vmatprep.subr.bf16.mxu1 %v3951_v8 }
0x18ec   :  { %v3085_v28 = vpop.permute.xlu1 %3084  ;;  %v2907_v24 = vpop.permute.xlu0 %2906 }
0x18ed   :  { %v2909_v54 = vadd.f32 %v2907_v24, %v2899_v13  ;;  %v3090_v33 = vsel %vm764_vm13, %v3085_v28, 0 }
0x18ef   :  { %v2923_v29 = vpack.c.bf16 %v2909_v54, %v2909_v54 }
0x18f0   :  { %v3154_v30 = vpop.permute.xlu1 %3153  ;;  %v3002_v15 = vpop.permute.xlu0 %3001 }
0x18f1   :  { %v3159_v32 = vsel %vm764_vm13, %v3154_v30, 0  ;;  %3737 = vmatmul.mubr.msk.bf16.vlgmr.msra.gmra.mrb[84].mxu1 %vm764_vm13, %v2923_v29  ;;  %3743 = vmatmul.mubr.msk.bf16.vlgmr.msra.gmra.mrb[84].mxu0 %vm764_vm13, %v3002_v15 }
0x18f2   :  { %3747 = vmatpush3.bf16.xpose.msra.mxu1 %v3090_v33  ;;  %3753 = vmatpush3.bf16.xpose.msra.mxu0 %v3159_v32 }
0x18f3   :  { %3748 = vmatprep.mubr.msk.bf16.mxu1 %vm3955_vm11, %v3951_v8  ;;  %3754 = vmatprep.mubr.msk.bf16.mxu0 %vm3955_vm11, %v3951_v8 }
0x18f4   :  { %v3071_v35 = vpop.permute.xlu0 %3070  ;;  %v3151_v39 = vpop.permute.xlu1 %3150 }
0x18f5   :  { %v3073_v36 = vadd.f32 %v3071_v35, %v3067_v26 }
0x18f7   :  { %v3081_v38 = vpack.c.bf16 %v3073_v36, %v3073_v36 }
0x18f9   :  { %3749 = vmatmul.mubr.msk.bf16.vlgmr.msra.gmra.mrb[88].mxu1 %vm764_vm13, %v3081_v38  ;;  %3755 = vmatmul.mubr.msk.bf16.vlgmr.msra.gmra.mrb[88].mxu0 %vm764_vm13, %v3151_v39 }
0x1905   :  { %v2895_v42 = vpop.permute.xlu0 %2894  ;;  %v3063_v16 = vpop.permute.xlu1 %3062 }
0x1906   :  { %v2897_v47 = vadd.f32 %v2895_v42, %v2891_v37  ;;  %v3065_v19 = vadd.f32 %v3063_v16, %v3059_v49 }
0x1908   :  { %v2898_v31 = vadd.f32 %v2897_v47, %v2883_v48  ;;  %v3066_v8 = vadd.f32 %v3065_v19, %v2883_v48 }
0x19c4   :  { %v2968_v50 = vpop.f32.mrb[84].mxu1  ;;  %v3046_v46 = vpop.f32.mrb[84].mxu0 }
0x19c5   :  { %v2974_v55 = vsub.f32 %v2968_v50, %v2898_v31  ;;  %v3052_v51 = vsub.f32 %v3046_v46, %v2898_v31  ;;  %v3738_v52 = vpop.f32.mrb[85].mxu1  ;;  %v3744_v5 = vpop.f32.mrb[85].mxu0 }
0x19c6   :  { %v2971_v18 = vpop.f32.mrb[86].mxu1  ;;  %v3049_v25 = vpop.f32.mrb[86].mxu0 }
0x19c7   :  { %v3053_v45 = vmul.f32 0.25, %v3052_v51  ;;  %v3739_v4 = vpop.f32.mrb[87].mxu1  ;;  %v3745_v27 = vpop.f32.mrb[87].mxu0  ;;  %v2975_v60 = vmul.f32 0.25, %v2974_v55 }
0x19c9   :  { %3204 = vrot.lane.b32.xlu1 %v3053_v45, %s3968_s27 }
0x19cc   :  { %v3126_v56 = vpop.f32.mrb[88].mxu1  ;;  %v3195_v57 = vpop.f32.mrb[88].mxu0 }
0x19cd   :  { %v3132_v43 = vsub.f32 %v3126_v56, %v3066_v8  ;;  %v3201_v12 = vsub.f32 %v3195_v57, %v3066_v8  ;;  %v3750_v58 = vpop.f32.mrb[89].mxu1  ;;  %v3756_v2 = vpop.f32.mrb[89].mxu0 }
0x19ce   :  { %v3129_v34 = vpop.f32.mrb[90].mxu1  ;;  %v3198_v59 = vpop.f32.mrb[90].mxu0 }
0x19cf   :  { %v3133_v61 = vmul.f32 0.25, %v3132_v43  ;;  %v3202_v62 = vmul.f32 0.25, %v3201_v12  ;;  %v3751_v63 = vpop.f32.mrb[91].mxu1  ;;  %v3757_v1 = vpop.f32.mrb[91].mxu0 }
0x19d1   :  { %3212 = vrot.lane.b32.xlu1 %v3202_v62, %s3970_s29  ;;  %3208 = vrot.lane.b32.xlu0 %v3133_v61, %s3969_s28 }
0x1a3b   :  { %v3205_v6 = vpop.permute.xlu1 %3204 }
0x1a3c   :  { %v3215_v3 = vsel %vm302_vm12, %v2975_v60, %v3205_v6 }
0x1a43   :  { %v3213_v9 = vpop.permute.xlu1 %3212  ;;  %v3209_v11 = vpop.permute.xlu0 %3208 }
0x1a44   :  { %v3216_v20 = vsel %vm764_vm13, %v3215_v3, %v3209_v11 }
0x1a45   :  { %v3217_v14 = vsel %vm766_vm14, %v3216_v20, %v3213_v9 }
0x1a46   :  { %3218 = vst.msk [vmem:[%s4814_s8] sm:$0xff] %vm172_vm10, %v3217_v14 }

</bundles_post_ra>
